<compile_context>
chip_gen: v6e
topology: v6e:2x2x1
jax: 0.10.0
libtpu: 0.0.40
codegen_flags: <defaults>
</compile_context>

<pallas_src>
import numpy as np
import jax
import jax.numpy as jnp
from jax.experimental import pallas as pl
from jax.experimental.pallas import tpu as pltpu

_EPS = 1e-5


def _make_dense_block_kernel(N, H, W, C_in, G, L):
    NHW = N * H * W
    HALO = W + 1                 # max |flattened pixel shift| of a 3x3 tap
    C_final = C_in + L * G

    def kernel(*refs):
        x_ref = refs[0]                    # (C_in, NHW)   raw input, channel-first
        mask_ref = refs[1]                 # (9, NHW)      per-tap validity masks
        p_refs = refs[2:2 + 3 * L]         # gamma_i (c,1), beta_i (c,1), w_i (G, 9c)
        out_ref = refs[2 + 3 * L]          # (C_final, NHW) raw block output
        yflat_ref, slab_ref, mean_ref, inv_ref = refs[3 + 3 * L:]

        cmax = yflat_ref.shape[0]

        # ---- zero ONLY the halo lanes of the flattened line buffer (once) ----
        yflat_ref[:, :HALO] = jnp.zeros((cmax, HALO), jnp.float32)
        yflat_ref[:, HALO + NHW:] = jnp.zeros((cmax, HALO), jnp.float32)

        def record_stats(vals, row0, rows):
            # per-channel batch mean / inv-std over all N*H*W positions
            m = jnp.mean(vals, axis=1, keepdims=True)
            v = jnp.mean((vals - m) ** 2, axis=1, keepdims=True)
            mean_ref[row0:row0 + rows, :] = m
            inv_ref[row0:row0 + rows, :] = jax.lax.rsqrt(v + _EPS)

        # ---- raw input channels occupy the trailing rows of the output ----
        x_raw = x_ref[...]
        out_ref[L * G:, :] = x_raw
        record_stats(x_raw, L * G, C_in)

        for i in range(L):
            cin = C_in + i * G             # conv input channels of layer i
            c0 = (L - i) * G               # first input-channel row of layer i
            gamma = p_refs[3 * i][...]             # (cin, 1)
            beta = p_refs[3 * i + 1][...]          # (cin, 1)
            w2d = p_refs[3 * i + 2][...]           # (G, 9*cin)

            # BatchNorm (precomputed batch stats) + ReLU: one FMA + max.
            scale = gamma * inv_ref[c0:, :]                         # (cin, 1)
            shift = beta - mean_ref[c0:, :] * scale                 # (cin, 1)
            y = jnp.maximum(out_ref[c0:, :] * scale + shift, 0.0)   # (cin, NHW)

            # Stage y in the zero-halo flattened line buffer.
            yflat_ref[:cin, HALO:HALO + NHW] = y

            # Build the (9*cin, NHW) im2col slab: one lane-shifted, masked
            # copy per 3x3 tap (tap-major, channel-minor row order).
            for ky in range(3):
                for kx in range(3):
                    t = ky * 3 + kx
                    d = (ky - 1) * W + (kx - 1)     # flattened pixel shift
                    if d == 0:
                        slab_ref[t * cin:(t + 1) * cin, :] = y
                    else:
                        piece = yflat_ref[:cin, HALO + d:HALO + d + NHW]
                        slab_ref[t * cin:(t + 1) * cin, :] = (
                            piece * mask_ref[t:t + 1, :])

            # Single im2col matmul on the MXU; lane-dense (G, NHW) result.
            res = jnp.dot(w2d, slab_ref[:9 * cin, :],
                          preferred_element_type=jnp.float32)

            # Raw conv output goes straight into its channel slice — this IS
            # torch.cat((out, x), dim=1), with no copy of x.
            out_ref[c0 - G:c0, :] = res

            # Later layers re-normalize these channels; stats never change.
            if i < L - 1:
                record_stats(res, c0 - G, G)

    return kernel


def _tap_masks(N, H, W):
    """(9, N*H*W) {0,1} masks marking in-image source pixels for each 3x3 tap."""
    p = np.arange(N * H * W)
    w_idx = p % W
    h_idx = (p // W) % H
    rows = []
    for ky in range(3):
        for kx in range(3):
            dy, dx = ky - 1, kx - 1
            ok = ((w_idx + dx >= 0) & (w_idx + dx < W) &
                  (h_idx + dy >= 0) & (h_idx + dy < H))
            rows.append(ok.astype(np.float32))
    return jnp.asarray(np.stack(rows, axis=0))


def dense_block_forward(x_nchw, params):
    """Matches dense_block.forward; x is NCHW like the PyTorch module."""
    N, C_in, H, W = x_nchw.shape
    L = len(params)
    G = params[0][2].shape[0]
    C_final = C_in + L * G
    NHW = N * H * W
    c_max = C_in + (L - 1) * G          # widest conv input of any layer

    # channel-first, pixel-flattened layout for lane-dense kernel access
    x2d = jnp.transpose(x_nchw.astype(jnp.float32), (1, 0, 2, 3)).reshape(C_in, NHW)

    inputs = [x2d, _tap_masks(N, H, W)]
    for gamma, beta, w in params:
        cin = gamma.shape[0]
        # torch conv weight (G, C, 3, 3) -> (G, 9*C), tap-major columns
        w2d = jnp.transpose(w.astype(jnp.float32), (0, 2, 3, 1)).reshape(G, 9 * cin)
        inputs += [gamma.reshape(cin, 1).astype(jnp.float32),
                   beta.reshape(cin, 1).astype(jnp.float32),
                   w2d]

    out2d = pl.pallas_call(
        _make_dense_block_kernel(N, H, W, C_in, G, L),
        out_shape=jax.ShapeDtypeStruct((C_final, NHW), jnp.float32),
        in_specs=[pl.BlockSpec(memory_space=pltpu.MemorySpace.VMEM)] * len(inputs),
        out_specs=pl.BlockSpec(memory_space=pltpu.MemorySpace.VMEM),
        scratch_shapes=[
            pltpu.VMEM((c_max, NHW + 2 * (W + 1)), jnp.float32),  # zero-halo line buffer
            pltpu.VMEM((9 * c_max, NHW), jnp.float32),            # im2col slab
            pltpu.VMEM((C_final, 1), jnp.float32),                # per-channel mean
            pltpu.VMEM((C_final, 1), jnp.float32),                # per-channel inv-std
        ],
    )(*inputs)

    # back to the module's NCHW layout
    return jnp.transpose(out2d.reshape(C_final, N, H, W), (1, 0, 2, 3))


def init_dense_block_params(key, in_channel, growth_rate, num_layers):
    """Deterministic synthetic params. Per layer: gamma (C,), beta (C,),
    conv weight in PyTorch layout (G, C, 3, 3)."""
    params = []
    c = in_channel
    for _ in range(num_layers):
        key, k1, k2, k3 = jax.random.split(key, 4)
        gamma = 1.0 + 0.1 * jax.random.normal(k1, (c,), jnp.float32)
        beta = 0.1 * jax.random.normal(k2, (c,), jnp.float32)
        w = 0.1 * jax.random.normal(k3, (growth_rate, c, 3, 3), jnp.float32)
        params.append((gamma, beta, w))
        c += growth_rate
    return params


def _reference_forward(x_nchw, params):
    """Pure-JAX reference for verification."""
    x = jnp.transpose(x_nchw, (0, 2, 3, 1)).astype(jnp.float32)   # NCHW -> NHWC
    for gamma, beta, w in params:
        mean = jnp.mean(x, axis=(0, 1, 2))
        var = jnp.mean((x - mean) ** 2, axis=(0, 1, 2))
        y = (x - mean) * jax.lax.rsqrt(var + _EPS) * gamma + beta
        y = jnp.maximum(y, 0.0)
        w_hwio = jnp.transpose(w, (2, 3, 1, 0))                   # (3,3,C,G)
        out = jax.lax.conv_general_dilated(
            y, w_hwio, window_strides=(1, 1), padding="SAME",
            dimension_numbers=("NHWC", "HWIO", "NHWC"))
        x = jnp.concatenate([out, x], axis=-1)                    # cat((out, x), dim=1)
    return jnp.transpose(x, (0, 3, 1, 2))                         # back to NCHW


if __name__ == "__main__":
    key = jax.random.PRNGKey(0)
    k_x, k_p = jax.random.split(key)

    # Small shapes consistent with the module.
    N, C_in, H, W = 2, 4, 16, 16
    growth_rate, num_layers = 8, 3

    x = jax.random.normal(k_x, (N, C_in, H, W), jnp.float32)
    params = init_dense_block_params(k_p, C_in, growth_rate, num_layers)

    out = jax.block_until_ready(dense_block_forward(x, params))

    expected_channels = C_in + growth_rate * num_layers
    assert out.shape == (N, expected_channels, H, W), out.shape

    ref = jax.block_until_ready(_reference_forward(x, params))
    np.testing.assert_allclose(np.asarray(out), np.asarray(ref),
                               rtol=1e-4, atol=1e-4)

    print("KERNEL_OK")
</pallas_src>

<mosaic_0001>
module attributes {stable_mosaic.version = 11 : i64} {
  func.func @kernel(%arg0: memref<4x512xf32, #tpu.memory_space<vmem>>, %arg1: memref<9x512xf32, #tpu.memory_space<vmem>>, %arg2: memref<4x1xf32, #tpu.memory_space<vmem>>, %arg3: memref<4x1xf32, #tpu.memory_space<vmem>>, %arg4: memref<8x36xf32, #tpu.memory_space<vmem>>, %arg5: memref<12x1xf32, #tpu.memory_space<vmem>>, %arg6: memref<12x1xf32, #tpu.memory_space<vmem>>, %arg7: memref<8x108xf32, #tpu.memory_space<vmem>>, %arg8: memref<20x1xf32, #tpu.memory_space<vmem>>, %arg9: memref<20x1xf32, #tpu.memory_space<vmem>>, %arg10: memref<8x180xf32, #tpu.memory_space<vmem>>, %arg11: memref<28x512xf32, #tpu.memory_space<vmem>>, %arg12: memref<20x546xf32, #tpu.memory_space<vmem>>, %arg13: memref<180x512xf32, #tpu.memory_space<vmem>>, %arg14: memref<28x1xf32, #tpu.memory_space<vmem>>, %arg15: memref<28x1xf32, #tpu.memory_space<vmem>>) attributes {dimension_semantics = [], scalar_prefetch = 0 : i64, scratch_operands = 4 : i64, tpu.core_type = #tpu.core_type<tc>} {
    %cst = arith.constant 0.000000e+00 : f32
    %0 = vector.broadcast %cst : f32 to vector<20x17xf32>
    %c0 = arith.constant 0 : index
    %c0_0 = arith.constant 0 : index
    %1 = vector.load %arg12[%c0, %c0_0] : memref<20x546xf32, #tpu.memory_space<vmem>>, vector<20x17xf32>
    tpu.vector_store %arg12[%c0, %c0_0], %0 {strides = array<i32>} : memref<20x546xf32, #tpu.memory_space<vmem>>, vector<20x17xf32>,
    %cst_1 = arith.constant 0.000000e+00 : f32
    %2 = vector.broadcast %cst_1 : f32 to vector<20x17xf32>
    %c0_2 = arith.constant 0 : index
    %c529 = arith.constant 529 : index
    %3 = vector.load %arg12[%c0_2, %c529] : memref<20x546xf32, #tpu.memory_space<vmem>>, vector<20x17xf32>
    tpu.vector_store %arg12[%c0_2, %c529], %2 {strides = array<i32>} : memref<20x546xf32, #tpu.memory_space<vmem>>, vector<20x17xf32>,
    %c0_3 = arith.constant 0 : index
    %c0_4 = arith.constant 0 : index
    %4 = vector.load %arg0[%c0_3, %c0_4] : memref<4x512xf32, #tpu.memory_space<vmem>>, vector<4x512xf32>
    %c24 = arith.constant 24 : index
    %c0_5 = arith.constant 0 : index
    %5 = vector.load %arg11[%c24, %c0_5] : memref<28x512xf32, #tpu.memory_space<vmem>>, vector<4x512xf32>
    tpu.vector_store %arg11[%c24, %c0_5], %4 {strides = array<i32>} : memref<28x512xf32, #tpu.memory_space<vmem>>, vector<4x512xf32>,
    %cst_6 = arith.constant dense<0.000000e+00> : vector<4xf32>
    %6 = vector.multi_reduction <add>, %4, %cst_6 [1] : vector<4x512xf32> to vector<4xf32>
    %7 = vector.shape_cast %6 : vector<4xf32> to vector<4x1xf32>
    %cst_7 = arith.constant 5.120000e+02 : f32
    %8 = vector.broadcast %cst_7 : f32 to vector<4x1xf32>
    %9 = arith.divf %7, %8 : vector<4x1xf32>
    %10 = vector.broadcast %9 : vector<4x1xf32> to vector<4x512xf32>
    %11 = arith.subf %4, %10 : vector<4x512xf32>
    %12 = arith.mulf %11, %11 : vector<4x512xf32>
    %cst_8 = arith.constant dense<0.000000e+00> : vector<4xf32>
    %13 = vector.multi_reduction <add>, %12, %cst_8 [1] : vector<4x512xf32> to vector<4xf32>
    %14 = vector.shape_cast %13 : vector<4xf32> to vector<4x1xf32>
    %cst_9 = arith.constant 5.120000e+02 : f32
    %15 = vector.broadcast %cst_9 : f32 to vector<4x1xf32>
    %16 = arith.divf %14, %15 : vector<4x1xf32>
    %c24_10 = arith.constant 24 : index
    %c0_11 = arith.constant 0 : index
    %17 = vector.load %arg14[%c24_10, %c0_11] : memref<28x1xf32, #tpu.memory_space<vmem>>, vector<4x1xf32>
    tpu.vector_store %arg14[%c24_10, %c0_11], %9 {strides = array<i32>} : memref<28x1xf32, #tpu.memory_space<vmem>>, vector<4x1xf32>,
    %cst_12 = arith.constant 9.99999974E-6 : f32
    %18 = vector.broadcast %cst_12 : f32 to vector<4x1xf32>
    %19 = arith.addf %16, %18 : vector<4x1xf32>
    %20 = math.rsqrt %19 : vector<4x1xf32>
    %c24_13 = arith.constant 24 : index
    %c0_14 = arith.constant 0 : index
    %21 = vector.load %arg15[%c24_13, %c0_14] : memref<28x1xf32, #tpu.memory_space<vmem>>, vector<4x1xf32>
    tpu.vector_store %arg15[%c24_13, %c0_14], %20 {strides = array<i32>} : memref<28x1xf32, #tpu.memory_space<vmem>>, vector<4x1xf32>,
    %c0_15 = arith.constant 0 : index
    %c0_16 = arith.constant 0 : index
    %22 = vector.load %arg2[%c0_15, %c0_16] : memref<4x1xf32, #tpu.memory_space<vmem>>, vector<4x1xf32>
    %c0_17 = arith.constant 0 : index
    %c0_18 = arith.constant 0 : index
    %23 = vector.load %arg3[%c0_17, %c0_18] : memref<4x1xf32, #tpu.memory_space<vmem>>, vector<4x1xf32>
    %c0_19 = arith.constant 0 : index
    %c0_20 = arith.constant 0 : index
    %24 = vector.load %arg4[%c0_19, %c0_20] : memref<8x36xf32, #tpu.memory_space<vmem>>, vector<8x36xf32>
    %c24_21 = arith.constant 24 : index
    %c0_22 = arith.constant 0 : index
    %25 = vector.load %arg15[%c24_21, %c0_22] : memref<28x1xf32, #tpu.memory_space<vmem>>, vector<4x1xf32>
    %26 = arith.mulf %22, %25 : vector<4x1xf32>
    %c24_23 = arith.constant 24 : index
    %c0_24 = arith.constant 0 : index
    %27 = vector.load %arg14[%c24_23, %c0_24] : memref<28x1xf32, #tpu.memory_space<vmem>>, vector<4x1xf32>
    %28 = arith.mulf %27, %26 : vector<4x1xf32>
    %29 = arith.subf %23, %28 : vector<4x1xf32>
    %c24_25 = arith.constant 24 : index
    %c0_26 = arith.constant 0 : index
    %30 = vector.load %arg11[%c24_25, %c0_26] : memref<28x512xf32, #tpu.memory_space<vmem>>, vector<4x512xf32>
    %31 = vector.broadcast %26 : vector<4x1xf32> to vector<4x512xf32>
    %32 = arith.mulf %30, %31 : vector<4x512xf32>
    %33 = vector.broadcast %29 : vector<4x1xf32> to vector<4x512xf32>
    %34 = arith.addf %32, %33 : vector<4x512xf32>
    %cst_27 = arith.constant 0.000000e+00 : f32
    %35 = vector.broadcast %cst_27 : f32 to vector<4x512xf32>
    %36 = arith.maximumf %34, %35 : vector<4x512xf32>
    %c0_28 = arith.constant 0 : index
    %c17 = arith.constant 17 : index
    %37 = vector.load %arg12[%c0_28, %c17] : memref<20x546xf32, #tpu.memory_space<vmem>>, vector<4x512xf32>
    tpu.vector_store %arg12[%c0_28, %c17], %36 {strides = array<i32>} : memref<20x546xf32, #tpu.memory_space<vmem>>, vector<4x512xf32>,
    %c0_29 = arith.constant 0 : index
    %c0_30 = arith.constant 0 : index
    %38 = vector.load %arg12[%c0_29, %c0_30] : memref<20x546xf32, #tpu.memory_space<vmem>>, vector<4x512xf32>
    %c0_31 = arith.constant 0 : index
    %c0_32 = arith.constant 0 : index
    %39 = vector.load %arg1[%c0_31, %c0_32] : memref<9x512xf32, #tpu.memory_space<vmem>>, vector<1x512xf32>
    %40 = vector.broadcast %39 : vector<1x512xf32> to vector<4x512xf32>
    %41 = arith.mulf %38, %40 : vector<4x512xf32>
    %c0_33 = arith.constant 0 : index
    %c0_34 = arith.constant 0 : index
    %42 = vector.load %arg13[%c0_33, %c0_34] : memref<180x512xf32, #tpu.memory_space<vmem>>, vector<4x512xf32>
    tpu.vector_store %arg13[%c0_33, %c0_34], %41 {strides = array<i32>} : memref<180x512xf32, #tpu.memory_space<vmem>>, vector<4x512xf32>,
    %c0_35 = arith.constant 0 : index
    %c1 = arith.constant 1 : index
    %43 = vector.load %arg12[%c0_35, %c1] : memref<20x546xf32, #tpu.memory_space<vmem>>, vector<4x512xf32>
    %c1_36 = arith.constant 1 : index
    %c0_37 = arith.constant 0 : index
    %44 = vector.load %arg1[%c1_36, %c0_37] : memref<9x512xf32, #tpu.memory_space<vmem>>, vector<1x512xf32>
    %45 = vector.broadcast %44 : vector<1x512xf32> to vector<4x512xf32>
    %46 = arith.mulf %43, %45 : vector<4x512xf32>
    %c4 = arith.constant 4 : index
    %c0_38 = arith.constant 0 : index
    %47 = vector.load %arg13[%c4, %c0_38] : memref<180x512xf32, #tpu.memory_space<vmem>>, vector<4x512xf32>
    tpu.vector_store %arg13[%c4, %c0_38], %46 {strides = array<i32>} : memref<180x512xf32, #tpu.memory_space<vmem>>, vector<4x512xf32>,
    %c0_39 = arith.constant 0 : index
    %c2 = arith.constant 2 : index
    %48 = vector.load %arg12[%c0_39, %c2] : memref<20x546xf32, #tpu.memory_space<vmem>>, vector<4x512xf32>
    %c2_40 = arith.constant 2 : index
    %c0_41 = arith.constant 0 : index
    %49 = vector.load %arg1[%c2_40, %c0_41] : memref<9x512xf32, #tpu.memory_space<vmem>>, vector<1x512xf32>
    %50 = vector.broadcast %49 : vector<1x512xf32> to vector<4x512xf32>
    %51 = arith.mulf %48, %50 : vector<4x512xf32>
    %c8 = arith.constant 8 : index
    %c0_42 = arith.constant 0 : index
    %52 = vector.load %arg13[%c8, %c0_42] : memref<180x512xf32, #tpu.memory_space<vmem>>, vector<4x512xf32>
    tpu.vector_store %arg13[%c8, %c0_42], %51 {strides = array<i32>} : memref<180x512xf32, #tpu.memory_space<vmem>>, vector<4x512xf32>,
    %c0_43 = arith.constant 0 : index
    %c16 = arith.constant 16 : index
    %53 = vector.load %arg12[%c0_43, %c16] : memref<20x546xf32, #tpu.memory_space<vmem>>, vector<4x512xf32>
    %c3 = arith.constant 3 : index
    %c0_44 = arith.constant 0 : index
    %54 = vector.load %arg1[%c3, %c0_44] : memref<9x512xf32, #tpu.memory_space<vmem>>, vector<1x512xf32>
    %55 = vector.broadcast %54 : vector<1x512xf32> to vector<4x512xf32>
    %56 = arith.mulf %53, %55 : vector<4x512xf32>
    %c12 = arith.constant 12 : index
    %c0_45 = arith.constant 0 : index
    %57 = vector.load %arg13[%c12, %c0_45] : memref<180x512xf32, #tpu.memory_space<vmem>>, vector<4x512xf32>
    tpu.vector_store %arg13[%c12, %c0_45], %56 {strides = array<i32>} : memref<180x512xf32, #tpu.memory_space<vmem>>, vector<4x512xf32>,
    %c16_46 = arith.constant 16 : index
    %c0_47 = arith.constant 0 : index
    %58 = vector.load %arg13[%c16_46, %c0_47] : memref<180x512xf32, #tpu.memory_space<vmem>>, vector<4x512xf32>
    tpu.vector_store %arg13[%c16_46, %c0_47], %36 {strides = array<i32>} : memref<180x512xf32, #tpu.memory_space<vmem>>, vector<4x512xf32>,
    %c0_48 = arith.constant 0 : index
    %c18 = arith.constant 18 : index
    %59 = vector.load %arg12[%c0_48, %c18] : memref<20x546xf32, #tpu.memory_space<vmem>>, vector<4x512xf32>
    %c5 = arith.constant 5 : index
    %c0_49 = arith.constant 0 : index
    %60 = vector.load %arg1[%c5, %c0_49] : memref<9x512xf32, #tpu.memory_space<vmem>>, vector<1x512xf32>
    %61 = vector.broadcast %60 : vector<1x512xf32> to vector<4x512xf32>
    %62 = arith.mulf %59, %61 : vector<4x512xf32>
    %c20 = arith.constant 20 : index
    %c0_50 = arith.constant 0 : index
    %63 = vector.load %arg13[%c20, %c0_50] : memref<180x512xf32, #tpu.memory_space<vmem>>, vector<4x512xf32>
    tpu.vector_store %arg13[%c20, %c0_50], %62 {strides = array<i32>} : memref<180x512xf32, #tpu.memory_space<vmem>>, vector<4x512xf32>,
    %c0_51 = arith.constant 0 : index
    %c32 = arith.constant 32 : index
    %64 = vector.load %arg12[%c0_51, %c32] : memref<20x546xf32, #tpu.memory_space<vmem>>, vector<4x512xf32>
    %c6 = arith.constant 6 : index
    %c0_52 = arith.constant 0 : index
    %65 = vector.load %arg1[%c6, %c0_52] : memref<9x512xf32, #tpu.memory_space<vmem>>, vector<1x512xf32>
    %66 = vector.broadcast %65 : vector<1x512xf32> to vector<4x512xf32>
    %67 = arith.mulf %64, %66 : vector<4x512xf32>
    %c24_53 = arith.constant 24 : index
    %c0_54 = arith.constant 0 : index
    %68 = vector.load %arg13[%c24_53, %c0_54] : memref<180x512xf32, #tpu.memory_space<vmem>>, vector<4x512xf32>
    tpu.vector_store %arg13[%c24_53, %c0_54], %67 {strides = array<i32>} : memref<180x512xf32, #tpu.memory_space<vmem>>, vector<4x512xf32>,
    %c0_55 = arith.constant 0 : index
    %c33 = arith.constant 33 : index
    %69 = vector.load %arg12[%c0_55, %c33] : memref<20x546xf32, #tpu.memory_space<vmem>>, vector<4x512xf32>
    %c7 = arith.constant 7 : index
    %c0_56 = arith.constant 0 : index
    %70 = vector.load %arg1[%c7, %c0_56] : memref<9x512xf32, #tpu.memory_space<vmem>>, vector<1x512xf32>
    %71 = vector.broadcast %70 : vector<1x512xf32> to vector<4x512xf32>
    %72 = arith.mulf %69, %71 : vector<4x512xf32>
    %c28 = arith.constant 28 : index
    %c0_57 = arith.constant 0 : index
    %73 = vector.load %arg13[%c28, %c0_57] : memref<180x512xf32, #tpu.memory_space<vmem>>, vector<4x512xf32>
    tpu.vector_store %arg13[%c28, %c0_57], %72 {strides = array<i32>} : memref<180x512xf32, #tpu.memory_space<vmem>>, vector<4x512xf32>,
    %c0_58 = arith.constant 0 : index
    %c34 = arith.constant 34 : index
    %74 = vector.load %arg12[%c0_58, %c34] : memref<20x546xf32, #tpu.memory_space<vmem>>, vector<4x512xf32>
    %c8_59 = arith.constant 8 : index
    %c0_60 = arith.constant 0 : index
    %75 = vector.load %arg1[%c8_59, %c0_60] : memref<9x512xf32, #tpu.memory_space<vmem>>, vector<1x512xf32>
    %76 = vector.broadcast %75 : vector<1x512xf32> to vector<4x512xf32>
    %77 = arith.mulf %74, %76 : vector<4x512xf32>
    %c32_61 = arith.constant 32 : index
    %c0_62 = arith.constant 0 : index
    %78 = vector.load %arg13[%c32_61, %c0_62] : memref<180x512xf32, #tpu.memory_space<vmem>>, vector<4x512xf32>
    tpu.vector_store %arg13[%c32_61, %c0_62], %77 {strides = array<i32>} : memref<180x512xf32, #tpu.memory_space<vmem>>, vector<4x512xf32>,
    %c0_63 = arith.constant 0 : index
    %c0_64 = arith.constant 0 : index
    %79 = vector.load %arg13[%c0_63, %c0_64] : memref<180x512xf32, #tpu.memory_space<vmem>>, vector<36x512xf32>
    %cst_65 = arith.constant dense<0.000000e+00> : vector<8x512xf32>
    %80 = tpu.matmul %24, %79, %cst_65 {dimension_numbers = #tpu.dot_dimension_numbers<[1], [0], [0], [1], [0, 0, 1, 1], [], []>} : vector<8x36xf32>, vector<36x512xf32>, vector<8x512xf32> -> vector<8x512xf32>
    %c16_66 = arith.constant 16 : index
    %c0_67 = arith.constant 0 : index
    %81 = vector.load %arg11[%c16_66, %c0_67] : memref<28x512xf32, #tpu.memory_space<vmem>>, vector<8x512xf32>
    tpu.vector_store %arg11[%c16_66, %c0_67], %80 {strides = array<i32>} : memref<28x512xf32, #tpu.memory_space<vmem>>, vector<8x512xf32>,
    %cst_68 = arith.constant dense<0.000000e+00> : vector<8xf32>
    %82 = vector.multi_reduction <add>, %80, %cst_68 [1] : vector<8x512xf32> to vector<8xf32>
    %83 = vector.shape_cast %82 : vector<8xf32> to vector<8x1xf32>
    %cst_69 = arith.constant 5.120000e+02 : f32
    %84 = vector.broadcast %cst_69 : f32 to vector<8x1xf32>
    %85 = arith.divf %83, %84 : vector<8x1xf32>
    %86 = vector.broadcast %85 : vector<8x1xf32> to vector<8x512xf32>
    %87 = arith.subf %80, %86 : vector<8x512xf32>
    %88 = arith.mulf %87, %87 : vector<8x512xf32>
    %cst_70 = arith.constant dense<0.000000e+00> : vector<8xf32>
    %89 = vector.multi_reduction <add>, %88, %cst_70 [1] : vector<8x512xf32> to vector<8xf32>
    %90 = vector.shape_cast %89 : vector<8xf32> to vector<8x1xf32>
    %cst_71 = arith.constant 5.120000e+02 : f32
    %91 = vector.broadcast %cst_71 : f32 to vector<8x1xf32>
    %92 = arith.divf %90, %91 : vector<8x1xf32>
    %c16_72 = arith.constant 16 : index
    %c0_73 = arith.constant 0 : index
    %93 = vector.load %arg14[%c16_72, %c0_73] : memref<28x1xf32, #tpu.memory_space<vmem>>, vector<8x1xf32>
    tpu.vector_store %arg14[%c16_72, %c0_73], %85 {strides = array<i32>} : memref<28x1xf32, #tpu.memory_space<vmem>>, vector<8x1xf32>,
    %cst_74 = arith.constant 9.99999974E-6 : f32
    %94 = vector.broadcast %cst_74 : f32 to vector<8x1xf32>
    %95 = arith.addf %92, %94 : vector<8x1xf32>
    %96 = math.rsqrt %95 : vector<8x1xf32>
    %c16_75 = arith.constant 16 : index
    %c0_76 = arith.constant 0 : index
    %97 = vector.load %arg15[%c16_75, %c0_76] : memref<28x1xf32, #tpu.memory_space<vmem>>, vector<8x1xf32>
    tpu.vector_store %arg15[%c16_75, %c0_76], %96 {strides = array<i32>} : memref<28x1xf32, #tpu.memory_space<vmem>>, vector<8x1xf32>,
    %c0_77 = arith.constant 0 : index
    %c0_78 = arith.constant 0 : index
    %98 = vector.load %arg5[%c0_77, %c0_78] : memref<12x1xf32, #tpu.memory_space<vmem>>, vector<12x1xf32>
    %c0_79 = arith.constant 0 : index
    %c0_80 = arith.constant 0 : index
    %99 = vector.load %arg6[%c0_79, %c0_80] : memref<12x1xf32, #tpu.memory_space<vmem>>, vector<12x1xf32>
    %c0_81 = arith.constant 0 : index
    %c0_82 = arith.constant 0 : index
    %100 = vector.load %arg7[%c0_81, %c0_82] : memref<8x108xf32, #tpu.memory_space<vmem>>, vector<8x108xf32>
    %c16_83 = arith.constant 16 : index
    %c0_84 = arith.constant 0 : index
    %101 = vector.load %arg15[%c16_83, %c0_84] : memref<28x1xf32, #tpu.memory_space<vmem>>, vector<12x1xf32>
    %102 = arith.mulf %98, %101 : vector<12x1xf32>
    %c16_85 = arith.constant 16 : index
    %c0_86 = arith.constant 0 : index
    %103 = vector.load %arg14[%c16_85, %c0_86] : memref<28x1xf32, #tpu.memory_space<vmem>>, vector<12x1xf32>
    %104 = arith.mulf %103, %102 : vector<12x1xf32>
    %105 = arith.subf %99, %104 : vector<12x1xf32>
    %c16_87 = arith.constant 16 : index
    %c0_88 = arith.constant 0 : index
    %106 = vector.load %arg11[%c16_87, %c0_88] : memref<28x512xf32, #tpu.memory_space<vmem>>, vector<12x512xf32>
    %107 = vector.broadcast %102 : vector<12x1xf32> to vector<12x512xf32>
    %108 = arith.mulf %106, %107 : vector<12x512xf32>
    %109 = vector.broadcast %105 : vector<12x1xf32> to vector<12x512xf32>
    %110 = arith.addf %108, %109 : vector<12x512xf32>
    %cst_89 = arith.constant 0.000000e+00 : f32
    %111 = vector.broadcast %cst_89 : f32 to vector<12x512xf32>
    %112 = arith.maximumf %110, %111 : vector<12x512xf32>
    %c0_90 = arith.constant 0 : index
    %c17_91 = arith.constant 17 : index
    %113 = vector.load %arg12[%c0_90, %c17_91] : memref<20x546xf32, #tpu.memory_space<vmem>>, vector<12x512xf32>
    tpu.vector_store %arg12[%c0_90, %c17_91], %112 {strides = array<i32>} : memref<20x546xf32, #tpu.memory_space<vmem>>, vector<12x512xf32>,
    %c0_92 = arith.constant 0 : index
    %c0_93 = arith.constant 0 : index
    %114 = vector.load %arg12[%c0_92, %c0_93] : memref<20x546xf32, #tpu.memory_space<vmem>>, vector<12x512xf32>
    %c0_94 = arith.constant 0 : index
    %c0_95 = arith.constant 0 : index
    %115 = vector.load %arg1[%c0_94, %c0_95] : memref<9x512xf32, #tpu.memory_space<vmem>>, vector<1x512xf32>
    %116 = vector.broadcast %115 : vector<1x512xf32> to vector<12x512xf32>
    %117 = arith.mulf %114, %116 : vector<12x512xf32>
    %c0_96 = arith.constant 0 : index
    %c0_97 = arith.constant 0 : index
    %118 = vector.load %arg13[%c0_96, %c0_97] : memref<180x512xf32, #tpu.memory_space<vmem>>, vector<12x512xf32>
    tpu.vector_store %arg13[%c0_96, %c0_97], %117 {strides = array<i32>} : memref<180x512xf32, #tpu.memory_space<vmem>>, vector<12x512xf32>,
    %c0_98 = arith.constant 0 : index
    %c1_99 = arith.constant 1 : index
    %119 = vector.load %arg12[%c0_98, %c1_99] : memref<20x546xf32, #tpu.memory_space<vmem>>, vector<12x512xf32>
    %c1_100 = arith.constant 1 : index
    %c0_101 = arith.constant 0 : index
    %120 = vector.load %arg1[%c1_100, %c0_101] : memref<9x512xf32, #tpu.memory_space<vmem>>, vector<1x512xf32>
    %121 = vector.broadcast %120 : vector<1x512xf32> to vector<12x512xf32>
    %122 = arith.mulf %119, %121 : vector<12x512xf32>
    %c12_102 = arith.constant 12 : index
    %c0_103 = arith.constant 0 : index
    %123 = vector.load %arg13[%c12_102, %c0_103] : memref<180x512xf32, #tpu.memory_space<vmem>>, vector<12x512xf32>
    tpu.vector_store %arg13[%c12_102, %c0_103], %122 {strides = array<i32>} : memref<180x512xf32, #tpu.memory_space<vmem>>, vector<12x512xf32>,
    %c0_104 = arith.constant 0 : index
    %c2_105 = arith.constant 2 : index
    %124 = vector.load %arg12[%c0_104, %c2_105] : memref<20x546xf32, #tpu.memory_space<vmem>>, vector<12x512xf32>
    %c2_106 = arith.constant 2 : index
    %c0_107 = arith.constant 0 : index
    %125 = vector.load %arg1[%c2_106, %c0_107] : memref<9x512xf32, #tpu.memory_space<vmem>>, vector<1x512xf32>
    %126 = vector.broadcast %125 : vector<1x512xf32> to vector<12x512xf32>
    %127 = arith.mulf %124, %126 : vector<12x512xf32>
    %c24_108 = arith.constant 24 : index
    %c0_109 = arith.constant 0 : index
    %128 = vector.load %arg13[%c24_108, %c0_109] : memref<180x512xf32, #tpu.memory_space<vmem>>, vector<12x512xf32>
    tpu.vector_store %arg13[%c24_108, %c0_109], %127 {strides = array<i32>} : memref<180x512xf32, #tpu.memory_space<vmem>>, vector<12x512xf32>,
    %c0_110 = arith.constant 0 : index
    %c16_111 = arith.constant 16 : index
    %129 = vector.load %arg12[%c0_110, %c16_111] : memref<20x546xf32, #tpu.memory_space<vmem>>, vector<12x512xf32>
    %c3_112 = arith.constant 3 : index
    %c0_113 = arith.constant 0 : index
    %130 = vector.load %arg1[%c3_112, %c0_113] : memref<9x512xf32, #tpu.memory_space<vmem>>, vector<1x512xf32>
    %131 = vector.broadcast %130 : vector<1x512xf32> to vector<12x512xf32>
    %132 = arith.mulf %129, %131 : vector<12x512xf32>
    %c36 = arith.constant 36 : index
    %c0_114 = arith.constant 0 : index
    %133 = vector.load %arg13[%c36, %c0_114] : memref<180x512xf32, #tpu.memory_space<vmem>>, vector<12x512xf32>
    tpu.vector_store %arg13[%c36, %c0_114], %132 {strides = array<i32>} : memref<180x512xf32, #tpu.memory_space<vmem>>, vector<12x512xf32>,
    %c48 = arith.constant 48 : index
    %c0_115 = arith.constant 0 : index
    %134 = vector.load %arg13[%c48, %c0_115] : memref<180x512xf32, #tpu.memory_space<vmem>>, vector<12x512xf32>
    tpu.vector_store %arg13[%c48, %c0_115], %112 {strides = array<i32>} : memref<180x512xf32, #tpu.memory_space<vmem>>, vector<12x512xf32>,
    %c0_116 = arith.constant 0 : index
    %c18_117 = arith.constant 18 : index
    %135 = vector.load %arg12[%c0_116, %c18_117] : memref<20x546xf32, #tpu.memory_space<vmem>>, vector<12x512xf32>
    %c5_118 = arith.constant 5 : index
    %c0_119 = arith.constant 0 : index
    %136 = vector.load %arg1[%c5_118, %c0_119] : memref<9x512xf32, #tpu.memory_space<vmem>>, vector<1x512xf32>
    %137 = vector.broadcast %136 : vector<1x512xf32> to vector<12x512xf32>
    %138 = arith.mulf %135, %137 : vector<12x512xf32>
    %c60 = arith.constant 60 : index
    %c0_120 = arith.constant 0 : index
    %139 = vector.load %arg13[%c60, %c0_120] : memref<180x512xf32, #tpu.memory_space<vmem>>, vector<12x512xf32>
    tpu.vector_store %arg13[%c60, %c0_120], %138 {strides = array<i32>} : memref<180x512xf32, #tpu.memory_space<vmem>>, vector<12x512xf32>,
    %c0_121 = arith.constant 0 : index
    %c32_122 = arith.constant 32 : index
    %140 = vector.load %arg12[%c0_121, %c32_122] : memref<20x546xf32, #tpu.memory_space<vmem>>, vector<12x512xf32>
    %c6_123 = arith.constant 6 : index
    %c0_124 = arith.constant 0 : index
    %141 = vector.load %arg1[%c6_123, %c0_124] : memref<9x512xf32, #tpu.memory_space<vmem>>, vector<1x512xf32>
    %142 = vector.broadcast %141 : vector<1x512xf32> to vector<12x512xf32>
    %143 = arith.mulf %140, %142 : vector<12x512xf32>
    %c72 = arith.constant 72 : index
    %c0_125 = arith.constant 0 : index
    %144 = vector.load %arg13[%c72, %c0_125] : memref<180x512xf32, #tpu.memory_space<vmem>>, vector<12x512xf32>
    tpu.vector_store %arg13[%c72, %c0_125], %143 {strides = array<i32>} : memref<180x512xf32, #tpu.memory_space<vmem>>, vector<12x512xf32>,
    %c0_126 = arith.constant 0 : index
    %c33_127 = arith.constant 33 : index
    %145 = vector.load %arg12[%c0_126, %c33_127] : memref<20x546xf32, #tpu.memory_space<vmem>>, vector<12x512xf32>
    %c7_128 = arith.constant 7 : index
    %c0_129 = arith.constant 0 : index
    %146 = vector.load %arg1[%c7_128, %c0_129] : memref<9x512xf32, #tpu.memory_space<vmem>>, vector<1x512xf32>
    %147 = vector.broadcast %146 : vector<1x512xf32> to vector<12x512xf32>
    %148 = arith.mulf %145, %147 : vector<12x512xf32>
    %c84 = arith.constant 84 : index
    %c0_130 = arith.constant 0 : index
    %149 = vector.load %arg13[%c84, %c0_130] : memref<180x512xf32, #tpu.memory_space<vmem>>, vector<12x512xf32>
    tpu.vector_store %arg13[%c84, %c0_130], %148 {strides = array<i32>} : memref<180x512xf32, #tpu.memory_space<vmem>>, vector<12x512xf32>,
    %c0_131 = arith.constant 0 : index
    %c34_132 = arith.constant 34 : index
    %150 = vector.load %arg12[%c0_131, %c34_132] : memref<20x546xf32, #tpu.memory_space<vmem>>, vector<12x512xf32>
    %c8_133 = arith.constant 8 : index
    %c0_134 = arith.constant 0 : index
    %151 = vector.load %arg1[%c8_133, %c0_134] : memref<9x512xf32, #tpu.memory_space<vmem>>, vector<1x512xf32>
    %152 = vector.broadcast %151 : vector<1x512xf32> to vector<12x512xf32>
    %153 = arith.mulf %150, %152 : vector<12x512xf32>
    %c96 = arith.constant 96 : index
    %c0_135 = arith.constant 0 : index
    %154 = vector.load %arg13[%c96, %c0_135] : memref<180x512xf32, #tpu.memory_space<vmem>>, vector<12x512xf32>
    tpu.vector_store %arg13[%c96, %c0_135], %153 {strides = array<i32>} : memref<180x512xf32, #tpu.memory_space<vmem>>, vector<12x512xf32>,
    %c0_136 = arith.constant 0 : index
    %c0_137 = arith.constant 0 : index
    %155 = vector.load %arg13[%c0_136, %c0_137] : memref<180x512xf32, #tpu.memory_space<vmem>>, vector<108x512xf32>
    %cst_138 = arith.constant dense<0.000000e+00> : vector<8x512xf32>
    %156 = tpu.matmul %100, %155, %cst_138 {dimension_numbers = #tpu.dot_dimension_numbers<[1], [0], [0], [1], [0, 0, 1, 1], [], []>} : vector<8x108xf32>, vector<108x512xf32>, vector<8x512xf32> -> vector<8x512xf32>
    %c8_139 = arith.constant 8 : index
    %c0_140 = arith.constant 0 : index
    %157 = vector.load %arg11[%c8_139, %c0_140] : memref<28x512xf32, #tpu.memory_space<vmem>>, vector<8x512xf32>
    tpu.vector_store %arg11[%c8_139, %c0_140], %156 {strides = array<i32>} : memref<28x512xf32, #tpu.memory_space<vmem>>, vector<8x512xf32>,
    %cst_141 = arith.constant dense<0.000000e+00> : vector<8xf32>
    %158 = vector.multi_reduction <add>, %156, %cst_141 [1] : vector<8x512xf32> to vector<8xf32>
    %159 = vector.shape_cast %158 : vector<8xf32> to vector<8x1xf32>
    %cst_142 = arith.constant 5.120000e+02 : f32
    %160 = vector.broadcast %cst_142 : f32 to vector<8x1xf32>
    %161 = arith.divf %159, %160 : vector<8x1xf32>
    %162 = vector.broadcast %161 : vector<8x1xf32> to vector<8x512xf32>
    %163 = arith.subf %156, %162 : vector<8x512xf32>
    %164 = arith.mulf %163, %163 : vector<8x512xf32>
    %cst_143 = arith.constant dense<0.000000e+00> : vector<8xf32>
    %165 = vector.multi_reduction <add>, %164, %cst_143 [1] : vector<8x512xf32> to vector<8xf32>
    %166 = vector.shape_cast %165 : vector<8xf32> to vector<8x1xf32>
    %cst_144 = arith.constant 5.120000e+02 : f32
    %167 = vector.broadcast %cst_144 : f32 to vector<8x1xf32>
    %168 = arith.divf %166, %167 : vector<8x1xf32>
    %c8_145 = arith.constant 8 : index
    %c0_146 = arith.constant 0 : index
    %169 = vector.load %arg14[%c8_145, %c0_146] : memref<28x1xf32, #tpu.memory_space<vmem>>, vector<8x1xf32>
    tpu.vector_store %arg14[%c8_145, %c0_146], %161 {strides = array<i32>} : memref<28x1xf32, #tpu.memory_space<vmem>>, vector<8x1xf32>,
    %cst_147 = arith.constant 9.99999974E-6 : f32
    %170 = vector.broadcast %cst_147 : f32 to vector<8x1xf32>
    %171 = arith.addf %168, %170 : vector<8x1xf32>
    %172 = math.rsqrt %171 : vector<8x1xf32>
    %c8_148 = arith.constant 8 : index
    %c0_149 = arith.constant 0 : index
    %173 = vector.load %arg15[%c8_148, %c0_149] : memref<28x1xf32, #tpu.memory_space<vmem>>, vector<8x1xf32>
    tpu.vector_store %arg15[%c8_148, %c0_149], %172 {strides = array<i32>} : memref<28x1xf32, #tpu.memory_space<vmem>>, vector<8x1xf32>,
    %c0_150 = arith.constant 0 : index
    %c0_151 = arith.constant 0 : index
    %174 = vector.load %arg8[%c0_150, %c0_151] : memref<20x1xf32, #tpu.memory_space<vmem>>, vector<20x1xf32>
    %c0_152 = arith.constant 0 : index
    %c0_153 = arith.constant 0 : index
    %175 = vector.load %arg9[%c0_152, %c0_153] : memref<20x1xf32, #tpu.memory_space<vmem>>, vector<20x1xf32>
    %c0_154 = arith.constant 0 : index
    %c0_155 = arith.constant 0 : index
    %176 = vector.load %arg10[%c0_154, %c0_155] : memref<8x180xf32, #tpu.memory_space<vmem>>, vector<8x180xf32>
    %c8_156 = arith.constant 8 : index
    %c0_157 = arith.constant 0 : index
    %177 = vector.load %arg15[%c8_156, %c0_157] : memref<28x1xf32, #tpu.memory_space<vmem>>, vector<20x1xf32>
    %178 = arith.mulf %174, %177 : vector<20x1xf32>
    %c8_158 = arith.constant 8 : index
    %c0_159 = arith.constant 0 : index
    %179 = vector.load %arg14[%c8_158, %c0_159] : memref<28x1xf32, #tpu.memory_space<vmem>>, vector<20x1xf32>
    %180 = arith.mulf %179, %178 : vector<20x1xf32>
    %181 = arith.subf %175, %180 : vector<20x1xf32>
    %c8_160 = arith.constant 8 : index
    %c0_161 = arith.constant 0 : index
    %182 = vector.load %arg11[%c8_160, %c0_161] : memref<28x512xf32, #tpu.memory_space<vmem>>, vector<20x512xf32>
    %183 = vector.broadcast %178 : vector<20x1xf32> to vector<20x512xf32>
    %184 = arith.mulf %182, %183 : vector<20x512xf32>
    %185 = vector.broadcast %181 : vector<20x1xf32> to vector<20x512xf32>
    %186 = arith.addf %184, %185 : vector<20x512xf32>
    %cst_162 = arith.constant 0.000000e+00 : f32
    %187 = vector.broadcast %cst_162 : f32 to vector<20x512xf32>
    %188 = arith.maximumf %186, %187 : vector<20x512xf32>
    %c0_163 = arith.constant 0 : index
    %c17_164 = arith.constant 17 : index
    %189 = vector.load %arg12[%c0_163, %c17_164] : memref<20x546xf32, #tpu.memory_space<vmem>>, vector<20x512xf32>
    tpu.vector_store %arg12[%c0_163, %c17_164], %188 {strides = array<i32>} : memref<20x546xf32, #tpu.memory_space<vmem>>, vector<20x512xf32>,
    %c0_165 = arith.constant 0 : index
    %c0_166 = arith.constant 0 : index
    %190 = vector.load %arg12[%c0_165, %c0_166] : memref<20x546xf32, #tpu.memory_space<vmem>>, vector<20x512xf32>
    %c0_167 = arith.constant 0 : index
    %c0_168 = arith.constant 0 : index
    %191 = vector.load %arg1[%c0_167, %c0_168] : memref<9x512xf32, #tpu.memory_space<vmem>>, vector<1x512xf32>
    %192 = vector.broadcast %191 : vector<1x512xf32> to vector<20x512xf32>
    %193 = arith.mulf %190, %192 : vector<20x512xf32>
    %c0_169 = arith.constant 0 : index
    %c0_170 = arith.constant 0 : index
    %194 = vector.load %arg13[%c0_169, %c0_170] : memref<180x512xf32, #tpu.memory_space<vmem>>, vector<20x512xf32>
    tpu.vector_store %arg13[%c0_169, %c0_170], %193 {strides = array<i32>} : memref<180x512xf32, #tpu.memory_space<vmem>>, vector<20x512xf32>,
    %c0_171 = arith.constant 0 : index
    %c1_172 = arith.constant 1 : index
    %195 = vector.load %arg12[%c0_171, %c1_172] : memref<20x546xf32, #tpu.memory_space<vmem>>, vector<20x512xf32>
    %c1_173 = arith.constant 1 : index
    %c0_174 = arith.constant 0 : index
    %196 = vector.load %arg1[%c1_173, %c0_174] : memref<9x512xf32, #tpu.memory_space<vmem>>, vector<1x512xf32>
    %197 = vector.broadcast %196 : vector<1x512xf32> to vector<20x512xf32>
    %198 = arith.mulf %195, %197 : vector<20x512xf32>
    %c20_175 = arith.constant 20 : index
    %c0_176 = arith.constant 0 : index
    %199 = vector.load %arg13[%c20_175, %c0_176] : memref<180x512xf32, #tpu.memory_space<vmem>>, vector<20x512xf32>
    tpu.vector_store %arg13[%c20_175, %c0_176], %198 {strides = array<i32>} : memref<180x512xf32, #tpu.memory_space<vmem>>, vector<20x512xf32>,
    %c0_177 = arith.constant 0 : index
    %c2_178 = arith.constant 2 : index
    %200 = vector.load %arg12[%c0_177, %c2_178] : memref<20x546xf32, #tpu.memory_space<vmem>>, vector<20x512xf32>
    %c2_179 = arith.constant 2 : index
    %c0_180 = arith.constant 0 : index
    %201 = vector.load %arg1[%c2_179, %c0_180] : memref<9x512xf32, #tpu.memory_space<vmem>>, vector<1x512xf32>
    %202 = vector.broadcast %201 : vector<1x512xf32> to vector<20x512xf32>
    %203 = arith.mulf %200, %202 : vector<20x512xf32>
    %c40 = arith.constant 40 : index
    %c0_181 = arith.constant 0 : index
    %204 = vector.load %arg13[%c40, %c0_181] : memref<180x512xf32, #tpu.memory_space<vmem>>, vector<20x512xf32>
    tpu.vector_store %arg13[%c40, %c0_181], %203 {strides = array<i32>} : memref<180x512xf32, #tpu.memory_space<vmem>>, vector<20x512xf32>,
    %c0_182 = arith.constant 0 : index
    %c16_183 = arith.constant 16 : index
    %205 = vector.load %arg12[%c0_182, %c16_183] : memref<20x546xf32, #tpu.memory_space<vmem>>, vector<20x512xf32>
    %c3_184 = arith.constant 3 : index
    %c0_185 = arith.constant 0 : index
    %206 = vector.load %arg1[%c3_184, %c0_185] : memref<9x512xf32, #tpu.memory_space<vmem>>, vector<1x512xf32>
    %207 = vector.broadcast %206 : vector<1x512xf32> to vector<20x512xf32>
    %208 = arith.mulf %205, %207 : vector<20x512xf32>
    %c60_186 = arith.constant 60 : index
    %c0_187 = arith.constant 0 : index
    %209 = vector.load %arg13[%c60_186, %c0_187] : memref<180x512xf32, #tpu.memory_space<vmem>>, vector<20x512xf32>
    tpu.vector_store %arg13[%c60_186, %c0_187], %208 {strides = array<i32>} : memref<180x512xf32, #tpu.memory_space<vmem>>, vector<20x512xf32>,
    %c80 = arith.constant 80 : index
    %c0_188 = arith.constant 0 : index
    %210 = vector.load %arg13[%c80, %c0_188] : memref<180x512xf32, #tpu.memory_space<vmem>>, vector<20x512xf32>
    tpu.vector_store %arg13[%c80, %c0_188], %188 {strides = array<i32>} : memref<180x512xf32, #tpu.memory_space<vmem>>, vector<20x512xf32>,
    %c0_189 = arith.constant 0 : index
    %c18_190 = arith.constant 18 : index
    %211 = vector.load %arg12[%c0_189, %c18_190] : memref<20x546xf32, #tpu.memory_space<vmem>>, vector<20x512xf32>
    %c5_191 = arith.constant 5 : index
    %c0_192 = arith.constant 0 : index
    %212 = vector.load %arg1[%c5_191, %c0_192] : memref<9x512xf32, #tpu.memory_space<vmem>>, vector<1x512xf32>
    %213 = vector.broadcast %212 : vector<1x512xf32> to vector<20x512xf32>
    %214 = arith.mulf %211, %213 : vector<20x512xf32>
    %c100 = arith.constant 100 : index
    %c0_193 = arith.constant 0 : index
    %215 = vector.load %arg13[%c100, %c0_193] : memref<180x512xf32, #tpu.memory_space<vmem>>, vector<20x512xf32>
    tpu.vector_store %arg13[%c100, %c0_193], %214 {strides = array<i32>} : memref<180x512xf32, #tpu.memory_space<vmem>>, vector<20x512xf32>,
    %c0_194 = arith.constant 0 : index
    %c32_195 = arith.constant 32 : index
    %216 = vector.load %arg12[%c0_194, %c32_195] : memref<20x546xf32, #tpu.memory_space<vmem>>, vector<20x512xf32>
    %c6_196 = arith.constant 6 : index
    %c0_197 = arith.constant 0 : index
    %217 = vector.load %arg1[%c6_196, %c0_197] : memref<9x512xf32, #tpu.memory_space<vmem>>, vector<1x512xf32>
    %218 = vector.broadcast %217 : vector<1x512xf32> to vector<20x512xf32>
    %219 = arith.mulf %216, %218 : vector<20x512xf32>
    %c120 = arith.constant 120 : index
    %c0_198 = arith.constant 0 : index
    %220 = vector.load %arg13[%c120, %c0_198] : memref<180x512xf32, #tpu.memory_space<vmem>>, vector<20x512xf32>
    tpu.vector_store %arg13[%c120, %c0_198], %219 {strides = array<i32>} : memref<180x512xf32, #tpu.memory_space<vmem>>, vector<20x512xf32>,
    %c0_199 = arith.constant 0 : index
    %c33_200 = arith.constant 33 : index
    %221 = vector.load %arg12[%c0_199, %c33_200] : memref<20x546xf32, #tpu.memory_space<vmem>>, vector<20x512xf32>
    %c7_201 = arith.constant 7 : index
    %c0_202 = arith.constant 0 : index
    %222 = vector.load %arg1[%c7_201, %c0_202] : memref<9x512xf32, #tpu.memory_space<vmem>>, vector<1x512xf32>
    %223 = vector.broadcast %222 : vector<1x512xf32> to vector<20x512xf32>
    %224 = arith.mulf %221, %223 : vector<20x512xf32>
    %c140 = arith.constant 140 : index
    %c0_203 = arith.constant 0 : index
    %225 = vector.load %arg13[%c140, %c0_203] : memref<180x512xf32, #tpu.memory_space<vmem>>, vector<20x512xf32>
    tpu.vector_store %arg13[%c140, %c0_203], %224 {strides = array<i32>} : memref<180x512xf32, #tpu.memory_space<vmem>>, vector<20x512xf32>,
    %c0_204 = arith.constant 0 : index
    %c34_205 = arith.constant 34 : index
    %226 = vector.load %arg12[%c0_204, %c34_205] : memref<20x546xf32, #tpu.memory_space<vmem>>, vector<20x512xf32>
    %c8_206 = arith.constant 8 : index
    %c0_207 = arith.constant 0 : index
    %227 = vector.load %arg1[%c8_206, %c0_207] : memref<9x512xf32, #tpu.memory_space<vmem>>, vector<1x512xf32>
    %228 = vector.broadcast %227 : vector<1x512xf32> to vector<20x512xf32>
    %229 = arith.mulf %226, %228 : vector<20x512xf32>
    %c160 = arith.constant 160 : index
    %c0_208 = arith.constant 0 : index
    %230 = vector.load %arg13[%c160, %c0_208] : memref<180x512xf32, #tpu.memory_space<vmem>>, vector<20x512xf32>
    tpu.vector_store %arg13[%c160, %c0_208], %229 {strides = array<i32>} : memref<180x512xf32, #tpu.memory_space<vmem>>, vector<20x512xf32>,
    %c0_209 = arith.constant 0 : index
    %c0_210 = arith.constant 0 : index
    %231 = vector.load %arg13[%c0_209, %c0_210] : memref<180x512xf32, #tpu.memory_space<vmem>>, vector<180x512xf32>
    %cst_211 = arith.constant dense<0.000000e+00> : vector<8x512xf32>
    %232 = tpu.matmul %176, %231, %cst_211 {dimension_numbers = #tpu.dot_dimension_numbers<[1], [0], [0], [1], [0, 0, 1, 1], [], []>} : vector<8x180xf32>, vector<180x512xf32>, vector<8x512xf32> -> vector<8x512xf32>
    %c0_212 = arith.constant 0 : index
    %c0_213 = arith.constant 0 : index
    %233 = vector.load %arg11[%c0_212, %c0_213] : memref<28x512xf32, #tpu.memory_space<vmem>>, vector<8x512xf32>
    tpu.vector_store %arg11[%c0_212, %c0_213], %232 {strides = array<i32>} : memref<28x512xf32, #tpu.memory_space<vmem>>, vector<8x512xf32>,
    return
  }
}

</mosaic_0001>

<bundles_post_ra>
// kernel: tpu_custom_call.1
= control target key start
LH: loop header
LB: loop body
LE: loop exit
PB: predicated region body
PF: predicated region fallthrough
CT: control target
= control target key end

     0   :  { %16 = vsyncpa [#allocation7], 0  ;;  %s6219_s0 = inlined_call_operand.vmem [shape: f32[4,512], index: 0, kind: input, shape index: {}]   ;;  %s6220_s1 = inlined_call_operand.vmem [shape: f32[9,512], index: 1, kind: input, shape index: {}]   ;;  %s6221_s2 = inlined_call_operand.vmem [shape: f32[4,1], index: 2, kind: input, shape index: {}]   ;;  %s6222_s3 = inlined_call_operand.vmem [shape: f32[4,1], index: 3, kind: input, shape index: {}]   ;;  %s6223_s4 = inlined_call_operand.hbm [shape: f32[8,36], index: 4, kind: input, shape index: {}]   ;;  %s6224_s5 = inlined_call_operand.vmem [shape: f32[12,1], index: 5, kind: input, shape index: {}]   ;;  %s6225_s6 = inlined_call_operand.vmem [shape: f32[12,1], index: 6, kind: input, shape index: {}]   ;;  %s6226_s7 = inlined_call_operand.vmem [shape: f32[8,108], index: 7, kind: input, shape index: {}]   ;;  %s6227_s8 = inlined_call_operand.vmem [shape: f32[20,1], index: 8, kind: input, shape index: {}]   ;;  %s6228_s9 = inlined_call_operand.vmem [shape: f32[20,1], index: 9, kind: input, shape index: {}]   ;;  %s6229_s10 = inlined_call_operand.vmem [shape: f32[8,180], index: 10, kind: input, shape index: {}]   ;;  %s6230_s11 = inlined_call_operand.hbm [shape: f32[28,512], index: 11, kind: output, shape index: {}]  }
   0x1   :  { %17 = vsyncpa [#allocation8], 0  ;;  %s3941_s17 = smov [#allocation6]  }
   0x2   :  { %s32_s18 = sshll.u32 %s3941_s17, 4  ;;  %s33_s18 = int_to_ptr.vmem [resolvable:$true] %s32_s18 }
   0x3   :  { %s3905_s19 = scalar_lea.vmem %s33_s18, 128  ;;  %p3910_p1 = scmp.lt.s32.totalorder %s33_s18, %s33_s18 }
   0x4   :  { %p3906_p0 = scmp.ne.s32.totalorder %s33_s18, %s3905_s19  ;;  %p3911_p2 = scmp.lt.s32.totalorder %s3905_s19, %s3905_s19 }
   0x6   :  { %p3912_p3 = por %p3911_p2, %p3910_p1 }
   0x8   :  { %p3913_p4 = pnand %p3912_p3, %p3906_p0 }
   0xa   :  { %3916 = shalt.err (!%p3913_p4)
}
   0xb   :  { %35 = dma.hbm_to_vmem [thread:$0]  %s6223_s4, 128, %s33_s18, [#allocation7]  }
   0xc   :  { %3937 = dma.done.wait [#allocation7], 128  }
   0xd   :  { %3938 = vsyncadd [#allocation7], 4294967168  ;;  %vm73_vm0 = vcmask 1043456   ;;  %v61_v0 = vld [vmem:[%s6219_s0] sm:$0xff]  ;;  %v62_v1 = vld [vmem:[%s6219_s0 + $0x8] sm:$0xff]  ;;  %v89_v13 = vlaneseq  ;;  %vm114_vm1 = vcmask 3072  }
   0xe   :  { %v65_v2 = vcombine.high %v61_v0, %v61_v0  ;;  %v66_v3 = vcombine.high %v62_v1, %v62_v1  ;;  %69 = vst [vmem:[#allocation9 + $0x60] sm:$0xf] %v61_v0  ;;  %71 = vst [vmem:[#allocation9 + $0x70] sm:$0xf] %v62_v1  ;;  %v74_v4 = vsel %vm73_vm0, %v61_v0, 0.0  ;;  %v77_v6 = vsel %vm73_vm0, %v62_v1, 0.0 }
   0xf   :  { %v3942_v11 = vmov 839922192   ;;  %v90_v15 = vshrl.u32 %v89_v13, 7  ;;  %v3943_v33 = vmov 0   ;;  %s3944_s26 = smov 34   ;;  %s3945_s12 = smov 18  }
  0x10   :  { %72 = vst [vmem:[#allocation9 + $0x78] sm:$0xf] %v66_v3  ;;  %v75_v5 = vsel %vm73_vm0, %v65_v2, 0.0  ;;  %70 = vst [vmem:[#allocation9 + $0x68] sm:$0xf] %v65_v2  ;;  %v79_v8 = vsel %vm73_vm0, %v66_v3, 0.0  ;;  %v87_v12 = vunpack.c.l.s4 %v3942_v11  ;;  %3883 = vset.pattern.permute.xlu1 %v3943_v33  ;;  %3884 = vset.pattern.permute.xlu0 %v3943_v33 }
  0x11   :  { %v76_v7 = vadd.f32 %v75_v5, %v74_v4  ;;  %v4040_v34 = vsub.s32 0, %v90_v15  ;;  %v4042_v35 = vsub.s32 2, %v90_v15  ;;  %v4047_v36 = vld [vmem:[%s6220_s1 + $0x20] ss:$8 sm:$0xf]  ;;  %v4051_v38 = vsub.s32 1, %v90_v15 }
  0x12   :  { %v88_v14 = vunpack.c.0.s8 %v87_v12  ;;  %v4059_v40 = vld [vmem:[%s6220_s1 + $0x5] ss:$8 sm:$0xf]  ;;  %v4067_v42 = vld [vmem:[%s6220_s1 + $0x6] ss:$8 sm:$0xf] }
  0x13   :  { %v78_v9 = vadd.f32 %v77_v6, %v76_v7  ;;  %v692_v37 = vrot.slane %v4047_v36, %v4040_v34  ;;  %v700_v39 = vrot.slane %v4047_v36, %v4042_v35  ;;  %v464_v41 = vrot.slane %v4059_v40, %v4051_v38  ;;  %s3946_s13 = smov 32   ;;  %v4078_v45 = vld [vmem:[%s6220_s1 + $0x3] ss:$8 sm:$0xf]  ;;  %s3947_s18 = smov 16  }
  0x14   :  { %v91_v16 = vsub.s32 %v88_v14, %v90_v15  ;;  %v539_v43 = vrot.slane %v4067_v42, %v4040_v34  ;;  %v547_v44 = vrot.slane %v4067_v42, %v4042_v35  ;;  %v4080_v46 = vsub.s32 3, %v90_v15  ;;  %v3828_v48 = vld [vmem:[%s6220_s1 + $0x7] ss:$8 sm:$0xf]  ;;  %s3948_s19 = smov 33   ;;  %s3949_s22 = smov 1  }
  0x15   :  { %v80_v10 = vadd.f32 %v79_v8, %v78_v9  ;;  %v381_v47 = vrot.slane %v4078_v45, %v4051_v38  ;;  %v4094_v50 = vld [vmem:[%s6220_s1 + $0x1] ss:$8 sm:$0xf]  ;;  %v621_v2 = vrot.slane %v3828_v48, %v4042_v35  ;;  %v696_v3 = vrot.slane %v4047_v36, %v4051_v38  ;;  %v3824_v11 = vld [vmem:[%s6220_s1 + $0x2] ss:$8 sm:$0xf] }
  0x16   :  { %v625_v49 = vrot.slane %v3828_v48, %v4080_v46  ;;  %v224_v51 = vrot.slane %v4094_v50, %v4040_v34  ;;  %v232_v52 = vrot.slane %v4094_v50, %v4042_v35  ;;  %v119_v57 = vld [vmem:[%s6221_s2] sm:$0xf]  ;;  %v460_v4 = vrot.slane %v4059_v40, %v4040_v34  ;;  %s3950_s4 = smov 2   ;;  %s3952_s27 = smov 17  }
  0x17   :  { %81 = vadd.xlane.f32.xlu0 %v80_v10  ;;  %v120_v61 = vld [vmem:[%s6222_s3] sm:$0xf]  ;;  %v468_v5 = vrot.slane %v4059_v40, %v4042_v35  ;;  %v543_v6 = vrot.slane %v4067_v42, %v4051_v38  ;;  %v377_v7 = vrot.slane %v4078_v45, %v4040_v34  ;;  %v385_v8 = vrot.slane %v4078_v45, %v4042_v35  ;;  %s3953_s30 = smov 94   ;;  %s3954_s14 = smov 96  }
  0x18   :  { %v704_v9 = vrot.slane %v4047_v36, %v4080_v46  ;;  %v228_v10 = vrot.slane %v4094_v50, %v4051_v38  ;;  %v303_v12 = vrot.slane %v3824_v11, %v4040_v34  ;;  %vm51_vm2 = vcmask 138240   ;;  %v127_v15 = vld [vmem:[#allocation9 + $0x60] sm:$0xf]  ;;  %s3955_s15 = smov 126   ;;  %s3956_s16 = smov 110  }
  0x19   :  { %v311_v13 = vrot.slane %v3824_v11, %v4042_v35  ;;  %v6236_v14 = vmov 0.0   ;;  %vm56_vm3 = vcmask 277640   ;;  %vm54_vm4 = vcmask 134144   ;;  %s3957_s17 = smov 95   ;;  %s3958_s20 = smov 112  }
  0x1a   :  { %52 = vst.msk [vmem:[#allocation2] sm:$0xff] %vm51_vm2, %v6236_v14  ;;  %53 = vst.msk [vmem:[#allocation2 + $0x28] sm:$0xff] %vm51_vm2, %v6236_v14  ;;  %855 = vmatprep.mubr.f32.mxu0 %v6236_v14  ;;  %926 = vmatprep.mubr.f32.mxu1 %v6236_v14  ;;  %v307_v33 = vrot.slane %v3824_v11, %v4051_v38  ;;  %v472_v36 = vrot.slane %v4059_v40, %v4080_v46  ;;  %vm173_vm5 = vcmask 1043592   ;;  %vm713_vm6 = vcmask 277504   ;;  %s3959_s21 = smov 127  }
  0x1b   :  { %57 = vst.msk [vmem:[#allocation2 + $0x20] sm:$0xff] %vm56_vm3, %v6236_v14  ;;  %58 = vst.msk [vmem:[#allocation2 + $0x48] sm:$0xff] %vm56_vm3, %v6236_v14  ;;  %vm6234_vm7 = vcmask 261120   ;;  %vm324_vm8 = vcmask 15360   ;;  %vm6235_vm9 = vcmask 269312   ;;  %vm6232_vm10 = vcmask 146432  }
  0x1c   :  { %55 = vst.msk [vmem:[#allocation2 + $0x50] sm:$0xf] %vm54_vm4, %v6236_v14  ;;  %vm6231_vm11 = vcmask 130048   ;;  %vm245_vm12 = vcmask 7168   ;;  %vm589_vm13 = vcmask 785408   ;;  %vm6242_vm14 = vcmask 769024  }
  0x1d   :  { %vm353_vm15 = vcmask 1031168   ;;  %vm515_vm3 = vcmask 900096  }
  0xa0   :  { %v82_v17 = vpop.xlane.xlu0 %81 }
  0xa1   :  { %v84_v18 = vmul.f32 0.001953125, %v82_v17  ;;  %v128_v17 = vld [vmem:[#allocation9 + $0x68] sm:$0xf] }
  0xa3   :  { %v92_v19 = vrot.slane %v84_v18, %v91_v16  ;;  %115 = vst.msk [vmem:[#allocation4 + $0x18] sm:$0xf] %vm114_vm1, %v84_v18  ;;  %v129_v18 = vld [vmem:[#allocation9 + $0x70] sm:$0xf] }
  0xa5   :  { %v94_v20 = vsub.f32 %v61_v0, %v92_v19  ;;  %v95_v21 = vsub.f32 %v62_v1, %v92_v19  ;;  %v613_v0 = vrot.slane %v3828_v48, %v4040_v34  ;;  %v617_v1 = vrot.slane %v3828_v48, %v4051_v38  ;;  %v130_v19 = vld [vmem:[#allocation9 + $0x78] sm:$0xf] }
  0xa7   :  { %v96_v22 = vmul.f32 %v94_v20, %v94_v20  ;;  %v97_v23 = vmul.f32 %v95_v21, %v95_v21 }
  0xa9   :  { %v100_v24 = vcombine.high %v96_v22, %v96_v22  ;;  %v101_v25 = vcombine.high %v97_v23, %v97_v23  ;;  %v104_v26 = vsel %vm73_vm0, %v96_v22, 0.0  ;;  %v107_v29 = vsel %vm73_vm0, %v97_v23, 0.0 }
  0xaa   :  { %v124_v60 = vld [vmem:[#allocation4 + $0x18] sm:$0xf] }
  0xab   :  { %v105_v27 = vsel %vm73_vm0, %v100_v24, 0.0  ;;  %v109_v31 = vsel %vm73_vm0, %v101_v25, 0.0 }
  0xac   :  { %v106_v28 = vadd.f32 %v105_v27, %v104_v26 }
  0xae   :  { %v108_v30 = vadd.f32 %v107_v29, %v106_v28 }
  0xb0   :  { %v110_v32 = vadd.f32 %v109_v31, %v108_v30 }
  0xb2   :  { %111 = vadd.xlane.f32.xlu0 %v110_v32 }
  0xc8   :  { %705 = vrot.lane.b32.xlu0 %v692_v37, %s3944_s26  ;;  %v389_v37 = vrot.slane %v4078_v45, %v4080_v46 }
  0xcc   :  { %709 = vrot.lane.b32.xlu0 %v700_v39, %s3944_s26  ;;  %v551_v39 = vrot.slane %v4067_v42, %v4080_v46 }
  0xd0   :  { %475 = vrot.lane.b32.xlu0 %v464_v41, %s3945_s12  ;;  %v315_v41 = vrot.slane %v3824_v11, %v4080_v46 }
  0xd4   :  { %552 = vrot.lane.b32.xlu0 %v539_v43, %s3946_s13  ;;  %v236_v43 = vrot.slane %v4094_v50, %v4080_v46 }
  0xd8   :  { %556 = vrot.lane.b32.xlu0 %v547_v44, %s3946_s13 }
  0xdc   :  { %392 = vrot.lane.b32.xlu0 %v381_v47, %s3947_s18 }
  0xe0   :  { %632 = vrot.lane.b32.xlu0 %v625_v49, %s3948_s19 }
  0xe4   :  { %237 = vrot.lane.b32.xlu0 %v224_v51, %s3949_s22 }
  0xe8   :  { %241 = vrot.lane.b32.xlu0 %v232_v52, %s3949_s22 }
 0x13b   :  { %v112_v53 = vpop.xlane.xlu0 %111 }
 0x13c   :  { %v113_v54 = vmul.f32 0.001953125, %v112_v53 }
 0x13e   :  { %v116_v55 = vadd.f32 1e-05, %v113_v54 }
 0x13f   :  { %v4186_v48 = vpop.permute.xlu0 %705 }
 0x140   :  { %3887 = vrsqrt.f32 %v116_v55 }
 0x143   :  { %v4190_v51 = vpop.permute.xlu0 %709 }
 0x147   :  { %v4194_v52 = vpop.permute.xlu0 %475 }
 0x14b   :  { %v4198_v54 = vpop.permute.xlu0 %552 }
 0x14d   :  { %v3888_v56 = vpop.eup %3887 }
 0x14e   :  { %118 = vst.msk [vmem:[#allocation5 + $0x18] sm:$0xf] %vm114_vm1, %v3888_v56  ;;  %vm668_vm1 = vcmask 777216  }
 0x14f   :  { %v4202_v56 = vpop.permute.xlu0 %556 }
 0x155   :  { %v122_v58 = vld [vmem:[#allocation5 + $0x18] sm:$0xf] }
 0x156   :  { %v123_v59 = vmul.f32 %v122_v58, %v119_v57  ;;  %v4206_v58 = vpop.permute.xlu0 %392 }
 0x158   :  { %133 = vperm.xlu1 %3883, %v123_v59   ;;  %v125_v62 = vmul.f32 %v124_v60, %v123_v59 }
 0x15a   :  { %v126_v63 = vsub.f32 %v120_v61, %v125_v62  ;;  %v4210_v60 = vpop.permute.xlu0 %632 }
 0x15c   :  { %142 = vperm.xlu1 %3883, %v126_v63  }
 0x15e   :  { %v4214_v62 = vpop.permute.xlu0 %237 }
 0x160   :  { %626 = vrot.lane.b32.xlu1 %v613_v0, %s3948_s19 }
 0x162   :  { %v4218_v0 = vpop.permute.xlu0 %241 }
 0x164   :  { %628 = vrot.lane.b32.xlu1 %v617_v1, %s3948_s19 }
 0x168   :  { %630 = vrot.lane.b32.xlu1 %v621_v2, %s3948_s19 }
 0x16c   :  { %707 = vrot.lane.b32.xlu1 %v696_v3, %s3944_s26 }
 0x170   :  { %473 = vrot.lane.b32.xlu1 %v460_v4, %s3945_s12  ;;  %v183_v4 = vld [vmem:[%s6220_s1] ss:$8 sm:$0xf] }
 0x174   :  { %477 = vrot.lane.b32.xlu1 %v468_v5, %s3945_s12 }
 0x178   :  { %554 = vrot.lane.b32.xlu1 %v543_v6, %s3946_s13 }
 0x17c   :  { %390 = vrot.lane.b32.xlu1 %v377_v7, %s3947_s18 }
 0x180   :  { %394 = vrot.lane.b32.xlu1 %v385_v8, %s3947_s18  ;;  %v192_v8 = vrot.slane %v183_v4, %v4051_v38 }
 0x184   :  { %711 = vrot.lane.b32.xlu1 %v704_v9, %s3944_s26  ;;  %v188_v9 = vrot.slane %v183_v4, %v4040_v34 }
 0x188   :  { %239 = vrot.lane.b32.xlu1 %v228_v10, %s3949_s22 }
 0x18c   :  { %316 = vrot.lane.b32.xlu1 %v303_v12, %s3950_s4 }
 0x190   :  { %320 = vrot.lane.b32.xlu1 %v311_v13, %s3950_s4 }
 0x1d3   :  { %v134_v16 = vpop.permute.xlu1 %133 }
 0x1d4   :  { %v136_v20 = vmul.f32 %v134_v16, %v127_v15  ;;  %v137_v21 = vmul.f32 %v134_v16, %v128_v17  ;;  %v138_v22 = vmul.f32 %v134_v16, %v129_v18  ;;  %v139_v23 = vmul.f32 %v134_v16, %v130_v19 }
 0x1d7   :  { %v143_v24 = vpop.permute.xlu1 %142 }
 0x1d8   :  { %v145_v25 = vadd.f32 %v143_v24, %v136_v20  ;;  %v146_v26 = vadd.f32 %v143_v24, %v137_v21  ;;  %v147_v27 = vadd.f32 %v143_v24, %v138_v22  ;;  %v148_v28 = vadd.f32 %v143_v24, %v139_v23 }
 0x1d9   :  { %v196_v22 = vrot.slane %v183_v4, %v4042_v35  ;;  %v200_v24 = vrot.slane %v183_v4, %v4080_v46 }
 0x1da   :  { %v149_v29 = vmax.f32 %v145_v25, 0.0  ;;  %v150_v30 = vmax.f32 %v146_v26, 0.0  ;;  %v151_v31 = vmax.f32 %v147_v27, 0.0  ;;  %v152_v32 = vmax.f32 %v148_v28, 0.0 }
 0x1db   :  { %v4176_v40 = vpop.permute.xlu1 %626 }
 0x1dc   :  { %157 = vrot.lane.b32.xlu0 %v149_v29, %s3952_s27  ;;  %445 = vst [vmem:[#allocation3 + $0x128] sm:$0xf] %v149_v29  ;;  %159 = vrot.lane.b32.xlu1 %v150_v30, %s3952_s27  ;;  %446 = vst [vmem:[#allocation3 + $0xe0] sm:$0xf] %v150_v30 }
 0x1dd   :  { %447 = vst [vmem:[#allocation3] sm:$0xf] %v151_v31  ;;  %448 = vst [vmem:[#allocation3 + $0x298] sm:$0xf] %v152_v32 }
 0x1df   :  { %v4178_v44 = vpop.permute.xlu1 %628 }
 0x1e0   :  { %318 = vrot.lane.b32.xlu0 %v307_v33, %s3950_s4  ;;  %161 = vrot.lane.b32.xlu1 %v151_v31, %s3952_s27 }
 0x1e3   :  { %v4180_v45 = vpop.permute.xlu1 %630 }
 0x1e4   :  { %479 = vrot.lane.b32.xlu0 %v472_v36, %s3945_s12  ;;  %163 = vrot.lane.b32.xlu1 %v152_v32, %s3952_s27 }
 0x1e7   :  { %v4182_v42 = vpop.permute.xlu1 %707 }
 0x1e8   :  { %396 = vrot.lane.b32.xlu0 %v389_v37, %s3947_s18  ;;  %558 = vrot.lane.b32.xlu1 %v551_v39, %s3946_s13  ;;  %v715_v39 = vsel %vm713_vm6, %v4182_v42, %v4190_v51 }
 0x1eb   :  { %v4184_v47 = vpop.permute.xlu1 %473 }
 0x1ec   :  { %322 = vrot.lane.b32.xlu0 %v315_v41, %s3950_s4  ;;  %243 = vrot.lane.b32.xlu1 %v236_v43, %s3949_s22 }
 0x1ef   :  { %v4188_v49 = vpop.permute.xlu1 %477 }
 0x1f3   :  { %v4192_v50 = vpop.permute.xlu1 %554 }
 0x1f4   :  { %v561_v4 = vsel %vm6234_vm7, %v4198_v54, %v4192_v50 }
 0x1f7   :  { %v4196_v53 = vpop.permute.xlu1 %390 }
 0x1fb   :  { %v4200_v55 = vpop.permute.xlu1 %394 }
 0x1ff   :  { %v4204_v57 = vpop.permute.xlu1 %711 }
 0x203   :  { %v4208_v59 = vpop.permute.xlu1 %239 }
 0x207   :  { %v4212_v61 = vpop.permute.xlu1 %316 }
 0x20b   :  { %v4216_v63 = vpop.permute.xlu1 %320 }
 0x24e   :  { %v158_v1 = vpop.permute.xlu0 %157  ;;  %v160_v2 = vpop.permute.xlu1 %159 }
 0x24f   :  { %174 = vst.msk [vmem:[#allocation2] sm:$0xf] %vm173_vm5, %v158_v1  ;;  %v165_v3 = vsel %vm51_vm2, %v158_v1, %v160_v2 }
 0x250   :  { %175 = vst [vmem:[#allocation2 + $0x8] sm:$0xf] %v165_v3 }
 0x252   :  { %v162_v5 = vpop.permute.xlu1 %161  ;;  %v4225_v6 = vpop.permute.xlu0 %318 }
 0x253   :  { %v166_v7 = vsel %vm51_vm2, %v160_v2, %v162_v5 }
 0x254   :  { %176 = vst [vmem:[#allocation2 + $0x10] sm:$0xf] %v166_v7 }
 0x256   :  { %v179_v10 = vld [vmem:[#allocation2] sm:$0xf]  ;;  %v164_v11 = vpop.permute.xlu1 %163  ;;  %v4234_v21 = vpop.permute.xlu0 %479 }
 0x257   :  { %v681_v12 = vld [vmem:[#allocation2] sm:$0xf]  ;;  %v180_v15 = vld [vmem:[#allocation2 + $0x8] sm:$0xf]  ;;  %v167_v16 = vsel %vm51_vm2, %v162_v5, %v164_v11  ;;  %178 = vst.msk [vmem:[#allocation2 + $0x20] sm:$0xf] %vm54_vm4, %v164_v11  ;;  %v205_v20 = vmul.f32 %v188_v9, %v179_v10  ;;  %v716_v10 = vsel %vm713_vm6, %v4190_v51, %v4204_v57  ;;  %v714_v11 = vsel %vm713_vm6, %v4186_v48, %v4182_v42 }
 0x258   :  { %v528_v13 = vld [vmem:[#allocation2] sm:$0xf]  ;;  %v722_v17 = vmul.f32 %v4186_v48, %v681_v12  ;;  %177 = vst [vmem:[#allocation2 + $0x18] sm:$0xf] %v167_v16  ;;  %v206_v19 = vmul.f32 %v192_v8, %v180_v15  ;;  %v529_v1 = vld [vmem:[#allocation2 + $0x8] sm:$0xf]  ;;  %v326_v16 = vsel %vm324_vm8, %v4225_v6, %v4216_v63  ;;  %v562_v51 = vsel %vm6234_vm7, %v4192_v50, %v4202_v56 }
 0x259   :  { %v569_v18 = vmul.f32 %v4198_v54, %v528_v13  ;;  %209 = vst [vmem:[#allocation3 + $0x2b0] sm:$0xf] %v205_v20  ;;  %v292_v37 = vld [vmem:[#allocation2] sm:$0xf]  ;;  %v570_v5 = vmul.f32 %v561_v4, %v529_v1  ;;  %v682_v9 = vld [vmem:[#allocation2 + $0x8] sm:$0xf]  ;;  %v325_v20 = vsel %vm324_vm8, %v4212_v61, %v4225_v6 }
 0x25a   :  { %732 = vrot.lane.b32.xlu1 %v722_v17, %s3953_s30  ;;  %210 = vst [vmem:[#allocation3 + $0xd0] sm:$0xf] %v206_v19  ;;  %v559_v25 = vpop.permute.xlu1 %558  ;;  %v4240_v29 = vpop.permute.xlu0 %396  ;;  %v333_v43 = vmul.f32 %v4212_v61, %v292_v37  ;;  %v723_v12 = vmul.f32 %v714_v11, %v682_v9  ;;  %v293_v19 = vld [vmem:[#allocation2 + $0x8] sm:$0xf]  ;;  %v366_v6 = vld [vmem:[#allocation2] sm:$0xf] }
 0x25b   :  { %579 = vrot.lane.b32.xlu0 %v569_v18, %s3954_s14  ;;  %v181_v23 = vld [vmem:[#allocation2 + $0x10] sm:$0xf]  ;;  %v449_v18 = vld [vmem:[#allocation2] sm:$0xf]  ;;  %v334_v50 = vmul.f32 %v325_v20, %v293_v19 }
 0x25c   :  { %v207_v27 = vmul.f32 %v196_v22, %v181_v23  ;;  %v683_v33 = vld [vmem:[#allocation2 + $0x10] sm:$0xf]  ;;  %v490_v23 = vmul.f32 %v4184_v47, %v449_v18 }
 0x25d   :  { %v724_v41 = vmul.f32 %v715_v39, %v683_v33  ;;  %v294_v13 = vld [vmem:[#allocation2 + $0x10] sm:$0xf] }
 0x25e   :  { %v532_v26 = vld [vmem:[#allocation2 + $0x20] sm:$0xf]  ;;  %211 = vst [vmem:[#allocation3 + $0x10] sm:$0xf] %v207_v27  ;;  %v323_v2 = vpop.permute.xlu0 %322  ;;  %v530_v15 = vld [vmem:[#allocation2 + $0x10] sm:$0xf]  ;;  %v563_v27 = vsel %vm6234_vm7, %v4202_v56, %v559_v25 }
 0x25f   :  { %v182_v28 = vld [vmem:[#allocation2 + $0x18] sm:$0xf]  ;;  %v573_v30 = vmul.f32 %v559_v25, %v532_v26  ;;  %v685_v31 = vld [vmem:[#allocation2 + $0x20] sm:$0xf]  ;;  %v327_v42 = vsel %vm324_vm8, %v4216_v63, %v323_v2  ;;  %v571_v48 = vmul.f32 %v562_v51, %v530_v15  ;;  %v604_v4 = vld [vmem:[#allocation2 + $0x10] sm:$0xf] }
 0x260   :  { %v726_v32 = vmul.f32 %v4204_v57, %v685_v31  ;;  %v208_v36 = vmul.f32 %v200_v24, %v182_v28  ;;  %v296_v3 = vld [vmem:[#allocation2 + $0x20] sm:$0xf]  ;;  %v684_v8 = vld [vmem:[#allocation2 + $0x18] sm:$0xf]  ;;  %v335_v57 = vmul.f32 %v326_v16, %v294_v13  ;;  %v500_v28 = vrot.slane %v490_v23, 4 }
 0x261   :  { %587 = vrot.lane.b32.xlu0 %v573_v30, %s3954_s14  ;;  %v337_v7 = vmul.f32 %v323_v2, %v296_v3  ;;  %v725_v54 = vmul.f32 %v716_v10, %v684_v8  ;;  %v295_v17 = vld [vmem:[#allocation2 + $0x18] sm:$0xf]  ;;  %v606_v24 = vld [vmem:[#allocation2 + $0x20] sm:$0xf]  ;;  %v603_v3 = vld [vmem:[#allocation2 + $0x8] sm:$0xf]  ;;  %v483_v13 = vsel %vm6232_vm10, %v4194_v52, %v4188_v49  ;;  %v247_v23 = vsel %vm245_vm12, %v4208_v59, %v4218_v0 }
 0x262   :  { %740 = vrot.lane.b32.xlu1 %v726_v32, %s3953_s30  ;;  %212 = vst [vmem:[#allocation3 + $0x48] sm:$0xf] %v208_v36  ;;  %v336_v22 = vmul.f32 %v327_v42, %v295_v17  ;;  %v531_v63 = vld [vmem:[#allocation2 + $0x18] sm:$0xf]  ;;  %v602_v26 = vld [vmem:[#allocation2] sm:$0xf]  ;;  %v647_v30 = vmul.f32 %v4210_v60, %v606_v24  ;;  %v407_v36 = vmul.f32 %v4196_v53, %v366_v6 }
 0x263   :  { %v572_v31 = vmul.f32 %v563_v27, %v531_v63  ;;  %v643_v61 = vmul.f32 %v4176_v40, %v602_v26  ;;  %v213_v32 = vld [vmem:[#allocation2] sm:$0xf]  ;;  %v367_v42 = vld [vmem:[#allocation2 + $0x8] sm:$0xf]  ;;  %v215_v20 = vld [vmem:[#allocation2 + $0x10] sm:$0xf]  ;;  %v244_v27 = vpop.permute.xlu1 %243 }
 0x264   :  { %v657_v33 = vrot.slane %v647_v30, 4  ;;  %v254_v39 = vmul.f32 %v4214_v62, %v213_v32  ;;  %v453_v56 = vld [vmem:[#allocation2 + $0x20] sm:$0xf]  ;;  %v369_v26 = vld [vmem:[#allocation2 + $0x18] sm:$0xf]  ;;  %v401_v30 = vsel %vm6231_vm11, %v4200_v55, %v4240_v29 }
 0x265   :  { %736 = vrot.lane.b32.xlu0 %v724_v41, %s3953_s30  ;;  %v653_v37 = vrot.slane %v643_v61, 4  ;;  %v370_v25 = vld [vmem:[#allocation2 + $0x20] sm:$0xf]  ;;  %v417_v41 = vrot.slane %v407_v36, 4  ;;  %v248_v61 = vsel %vm245_vm12, %v4218_v0, %v244_v27  ;;  %v452_v36 = vld [vmem:[#allocation2 + $0x18] sm:$0xf] }
 0x266   :  { %343 = vrot.lane.b32.xlu1 %v333_v43, %s3955_s15  ;;  %v494_v43 = vmul.f32 %v4234_v21, %v453_v56  ;;  %v411_v1 = vmul.f32 %v4240_v29, %v370_v25  ;;  %v264_v2 = vrot.slane %v254_v39, 4  ;;  %v217_v39 = vld [vmem:[#allocation2 + $0x20] sm:$0xf] }
 0x267   :  { %v258_v56 = vmul.f32 %v244_v27, %v217_v39 }
 0x268   :  { %v504_v8 = vrot.slane %v494_v43, 4  ;;  %v421_v10 = vrot.slane %v411_v1, 4 }
 0x269   :  { %581 = vrot.lane.b32.xlu0 %v570_v5, %s3954_s14  ;;  %v635_v5 = vsel %vm6235_vm9, %v4176_v40, %v4178_v44  ;;  %v482_v40 = vsel %vm6232_vm10, %v4184_v47, %v4194_v52  ;;  %v399_v47 = vsel %vm6231_vm11, %v4196_v53, %v4206_v58 }
 0x26a   :  { %351 = vrot.lane.b32.xlu1 %v337_v7, %s3955_s15  ;;  %v636_v7 = vsel %vm6235_vm9, %v4178_v44, %v4180_v45  ;;  %v644_v9 = vmul.f32 %v635_v5, %v603_v3  ;;  %v408_v19 = vmul.f32 %v399_v47, %v367_v42 }
 0x26b   :  { %v645_v11 = vmul.f32 %v636_v7, %v604_v4 }
 0x26c   :  { %v654_v44 = vrot.slane %v644_v9, 4  ;;  %v418_v24 = vrot.slane %v408_v19, 4 }
 0x26d   :  { %738 = vrot.lane.b32.xlu0 %v725_v54, %s3953_s30  ;;  %v450_v54 = vld [vmem:[#allocation2 + $0x8] sm:$0xf]  ;;  %v655_v16 = vrot.slane %v645_v11, 4 }
 0x26e   :  { %734 = vrot.lane.b32.xlu1 %v723_v12, %s3953_s30  ;;  %v451_v12 = vld [vmem:[#allocation2 + $0x10] sm:$0xf]  ;;  %v491_v15 = vmul.f32 %v482_v40, %v450_v54 }
 0x26f   :  { %v492_v51 = vmul.f32 %v483_v13, %v451_v12 }
 0x270   :  { %v501_v52 = vrot.slane %v491_v15, 4 }
 0x271   :  { %347 = vrot.lane.b32.xlu0 %v335_v57, %s3955_s15  ;;  %v368_v57 = vld [vmem:[#allocation2 + $0x10] sm:$0xf]  ;;  %v502_v18 = vrot.slane %v492_v51, 4 }
 0x272   :  { %583 = vrot.lane.b32.xlu1 %v571_v48, %s3954_s14  ;;  %v400_v48 = vsel %vm6231_vm11, %v4206_v58, %v4200_v55  ;;  %v256_v58 = vmul.f32 %v247_v23, %v215_v20  ;;  %v484_v55 = vsel %vm6232_vm10, %v4188_v49, %v4234_v21  ;;  %vm6233_vm11 = vcmask 916480  }
 0x273   :  { %v409_v17 = vmul.f32 %v400_v48, %v368_v57  ;;  %vm279_vm10 = vcmask 1039360  }
 0x275   :  { %349 = vrot.lane.b32.xlu0 %v336_v22, %s3955_s15  ;;  %v605_v22 = vld [vmem:[#allocation2 + $0x18] sm:$0xf]  ;;  %v419_v53 = vrot.slane %v409_v17, 4 }
 0x276   :  { %345 = vrot.lane.b32.xlu1 %v334_v50, %s3955_s15  ;;  %v637_v50 = vsel %vm6235_vm9, %v4180_v45, %v4210_v60  ;;  %v266_v45 = vrot.slane %v256_v58, 4  ;;  %v410_v60 = vmul.f32 %v401_v30, %v369_v26 }
 0x277   :  { %v646_v63 = vmul.f32 %v637_v50, %v605_v22 }
 0x278   :  { %v420_v29 = vrot.slane %v410_v60, 4 }
 0x279   :  { %505 = vrot.lane.b32.xlu0 %v500_v28, %s3956_s16  ;;  %v214_v28 = vld [vmem:[#allocation2 + $0x8] sm:$0xf]  ;;  %v656_v6 = vrot.slane %v646_v63, 4 }
 0x27a   :  { %585 = vrot.lane.b32.xlu1 %v572_v31, %s3954_s14  ;;  %v246_v31 = vsel %vm245_vm12, %v4214_v62, %v4208_v59  ;;  %v493_v62 = vmul.f32 %v484_v55, %v452_v36 }
 0x27b   :  { %v255_v32 = vmul.f32 %v246_v31, %v214_v28 }
 0x27c   :  { %v503_v25 = vrot.slane %v493_v62, 4 }
 0x27d   :  { %666 = vrot.lane.b32.xlu0 %v657_v33, %s3957_s17  ;;  %v216_v33 = vld [vmem:[#allocation2 + $0x18] sm:$0xf]  ;;  %v265_v59 = vrot.slane %v255_v32, 4 }
 0x27e   :  { %658 = vrot.lane.b32.xlu1 %v653_v37, %s3957_s17  ;;  %v257_v37 = vmul.f32 %v248_v61, %v216_v33 }
 0x280   :  { %v267_v0 = vrot.slane %v257_v37, 4 }
 0x281   :  { %422 = vrot.lane.b32.xlu0 %v417_v41, %s3958_s20  ;;  %v268_v41 = vrot.slane %v258_v56, 4 }
 0x282   :  { %269 = vrot.lane.b32.xlu1 %v264_v2, %s3959_s21 }
 0x285   :  { %513 = vrot.lane.b32.xlu0 %v504_v8, %s3956_s16 }
 0x286   :  { %430 = vrot.lane.b32.xlu1 %v421_v10, %s3958_s20 }
 0x289   :  { %660 = vrot.lane.b32.xlu0 %v654_v44, %s3957_s17 }
 0x28a   :  { %662 = vrot.lane.b32.xlu1 %v655_v16, %s3957_s17 }
 0x28d   :  { %507 = vrot.lane.b32.xlu0 %v501_v52, %s3956_s16 }
 0x28e   :  { %509 = vrot.lane.b32.xlu1 %v502_v18, %s3956_s16 }
 0x291   :  { %426 = vrot.lane.b32.xlu0 %v419_v53, %s3958_s20 }
 0x292   :  { %424 = vrot.lane.b32.xlu1 %v418_v24, %s3958_s20 }
 0x295   :  { %273 = vrot.lane.b32.xlu0 %v266_v45, %s3959_s21 }
 0x296   :  { %664 = vrot.lane.b32.xlu1 %v656_v6, %s3957_s17 }
 0x299   :  { %428 = vrot.lane.b32.xlu0 %v420_v29, %s3958_s20 }
 0x29a   :  { %271 = vrot.lane.b32.xlu1 %v265_v59, %s3959_s21 }
 0x29d   :  { %275 = vrot.lane.b32.xlu0 %v267_v0, %s3959_s21 }
 0x29e   :  { %511 = vrot.lane.b32.xlu1 %v503_v25, %s3956_s16 }
 0x2a2   :  { %277 = vrot.lane.b32.xlu1 %v268_v41, %s3959_s21 }
 0x2cc   :  { %v733_v21 = vpop.permute.xlu1 %732 }
 0x2cd   :  { %v580_v49 = vpop.permute.xlu0 %579 }
 0x2d3   :  { %v588_v43 = vpop.permute.xlu0 %587 }
 0x2d4   :  { %v741_v1 = vpop.permute.xlu1 %740 }
 0x2d7   :  { %v737_v2 = vpop.permute.xlu0 %736 }
 0x2d8   :  { %v344_v3 = vpop.permute.xlu1 %343 }
 0x2db   :  { %v582_v4 = vpop.permute.xlu0 %581 }
 0x2dc   :  { %v590_v5 = vsel %vm589_vm13, %v580_v49, %v582_v4  ;;  %v352_v7 = vpop.permute.xlu1 %351 }
 0x2dd   :  { %598 = vst [vmem:[#allocation3 + $0x160] sm:$0xf] %v590_v5 }
 0x2df   :  { %v739_v8 = vpop.permute.xlu0 %738 }
 0x2e0   :  { %v745_v9 = vsel %vm6242_vm14, %v737_v2, %v739_v8  ;;  %v746_v10 = vsel %vm6242_vm14, %v739_v8, %v741_v1  ;;  %v735_v11 = vpop.permute.xlu1 %734 }
 0x2e1   :  { %753 = vst [vmem:[#allocation3 + $0x60] sm:$0xf] %v745_v9  ;;  %754 = vst [vmem:[#allocation3 + $0x220] sm:$0xf] %v746_v10  ;;  %v743_v54 = vsel %vm6242_vm14, %v733_v21, %v735_v11  ;;  %v744_v12 = vsel %vm6242_vm14, %v735_v11, %v737_v2 }
 0x2e2   :  { %751 = vst [vmem:[#allocation3 + $0x240] sm:$0xf] %v743_v54  ;;  %752 = vst [vmem:[#allocation3 + $0x18] sm:$0xf] %v744_v12 }
 0x2e3   :  { %v348_v40 = vpop.permute.xlu0 %347 }
 0x2e4   :  { %v584_v13 = vpop.permute.xlu1 %583 }
 0x2e5   :  { %v591_v44 = vsel %vm589_vm13, %v582_v4, %v584_v13 }
 0x2e6   :  { %599 = vst [vmem:[#allocation3 + $0x170] sm:$0xf] %v591_v44 }
 0x2e7   :  { %v350_v15 = vpop.permute.xlu0 %349 }
 0x2e8   :  { %v356_v16 = vsel %vm353_vm15, %v348_v40, %v350_v15  ;;  %v357_v51 = vsel %vm353_vm15, %v350_v15, %v352_v7  ;;  %v346_v57 = vpop.permute.xlu1 %345  ;;  %v774_v42 = vld [vmem:[#allocation3 + $0x220] sm:$0xf] }
 0x2e9   :  { %v773_v48 = vld [vmem:[#allocation3 + $0x60] sm:$0xf]  ;;  %364 = vst [vmem:[#allocation3 + $0xf8] sm:$0xf] %v356_v16  ;;  %365 = vst [vmem:[#allocation3 + $0x78] sm:$0xf] %v357_v51  ;;  %v354_v47 = vsel %vm353_vm15, %v344_v3, %v346_v57  ;;  %v355_v52 = vsel %vm353_vm15, %v346_v57, %v348_v40  ;;  %3833 = vmatprep.subr.msk.mxu1 %vm73_vm0, %v774_v42 }
 0x2ea   :  { %v772_v17 = vld [vmem:[#allocation3 + $0x18] sm:$0xf]  ;;  %v771_v18 = vld [vmem:[#allocation3 + $0x240] sm:$0xf]  ;;  %362 = vst [vmem:[#allocation3 + $0x30] sm:$0xf] %v354_v47  ;;  %3834 = vmatpush1.msk.msra.mxu1 %vm73_vm0, %v773_v48 }
 0x2eb   :  { %363 = vst [vmem:[#allocation3 + $0xf0] sm:$0xf] %v355_v52  ;;  %3830 = vmatprep.subr.msk.mxu0 %vm73_vm0, %v772_v17  ;;  %v506_v19 = vpop.permute.xlu0 %505  ;;  %v121_v15 = vld [vmem:[#allocation6] sm:$0xff] }
 0x2ec   :  { %3831 = vmatpush1.msk.msra.mxu0 %vm73_vm0, %v771_v18  ;;  %v586_v20 = vpop.permute.xlu1 %585 }
 0x2ed   :  { %v592_v22 = vsel %vm589_vm13, %v584_v13, %v586_v20  ;;  %v593_v23 = vsel %vm589_vm13, %v586_v20, %v588_v43 }
 0x2ee   :  { %600 = vst [vmem:[#allocation3 + $0x120] sm:$0xf] %v592_v22  ;;  %601 = vst [vmem:[#allocation3 + $0x2a8] sm:$0xf] %v593_v23 }
 0x2ef   :  { %v667_v50 = vpop.permute.xlu0 %666 }
 0x2f0   :  { %v659_v53 = vpop.permute.xlu1 %658 }
 0x2f3   :  { %v423_v58 = vpop.permute.xlu0 %422 }
 0x2f4   :  { %v270_v24 = vpop.permute.xlu1 %269 }
 0x2f7   :  { %v514_v63 = vpop.permute.xlu0 %513 }
 0x2f8   :  { %v431_v26 = vpop.permute.xlu1 %430 }
 0x2fb   :  { %v661_v27 = vpop.permute.xlu0 %660 }
 0x2fc   :  { %v669_v28 = vsel %vm668_vm1, %v659_v53, %v661_v27  ;;  %v663_v30 = vpop.permute.xlu1 %662  ;;  %v967_v53 = vld [vmem:[#allocation5 + $0x18] sm:$0xf] }
 0x2fd   :  { %677 = vst [vmem:[#allocation3 + $0x160] sm:$0xf0] %v669_v28  ;;  %v670_v31 = vsel %vm668_vm1, %v661_v27, %v663_v30 }
 0x2fe   :  { %678 = vst [vmem:[#allocation3 + $0x170] sm:$0xf0] %v670_v31  ;;  %v4423_v31 = vld [vmem:[%s6220_s1 + $0x6] ss:$8 sm:$0xf] }
 0x2ff   :  { %v508_v45 = vpop.permute.xlu0 %507 }
 0x300   :  { %v516_v60 = vsel %vm515_vm3, %v506_v19, %v508_v45  ;;  %v510_v61 = vpop.permute.xlu1 %509 }
 0x301   :  { %524 = vst [vmem:[#allocation3 + $0x128] sm:$0xf0] %v516_v60  ;;  %v517_v6 = vsel %vm515_vm3, %v508_v45, %v510_v61  ;;  %v1629_v45 = vrot.slane %v4423_v31, %v4051_v38  ;;  %v4431_v60 = vld [vmem:[%s6220_s1 + $0x5] ss:$8 sm:$0xf] }
 0x302   :  { %525 = vst [vmem:[#allocation3 + $0xe0] sm:$0xf0] %v517_v6  ;;  %v1510_v6 = vrot.slane %v4431_v60, %v4042_v35 }
 0x303   :  { %v427_v32 = vpop.permute.xlu0 %426 }
 0x304   :  { %v425_v33 = vpop.permute.xlu1 %424  ;;  %v767_v36 = vld [vmem:[#allocation3 + $0x160] sm:$0xff] }
 0x305   :  { %v433_v55 = vsel %vm6233_vm11, %v423_v58, %v425_v33  ;;  %v434_v29 = vsel %vm6233_vm11, %v425_v33, %v427_v32  ;;  %v768_v37 = vld [vmem:[#allocation3 + $0x170] sm:$0xff] }
 0x306   :  { %441 = vst [vmem:[#allocation3 + $0x30] sm:$0xf0] %v433_v55  ;;  %442 = vst [vmem:[#allocation3 + $0xf0] sm:$0xf0] %v434_v29  ;;  %815 = vmatprep.subr.mxu0 %v768_v37 }
 0x307   :  { %816 = vmatpush1.msra.mxu0 %v767_v36  ;;  %v274_v59 = vpop.permute.xlu0 %273 }
 0x308   :  { %v665_v62 = vpop.permute.xlu1 %664  ;;  %v763_v39 = vld [vmem:[#allocation3 + $0x128] sm:$0xff] }
 0x309   :  { %v671_v0 = vsel %vm668_vm1, %v663_v30, %v665_v62  ;;  %v672_v56 = vsel %vm668_vm1, %v665_v62, %v667_v50  ;;  %v764_v25 = vld [vmem:[#allocation3 + $0xe0] sm:$0xff]  ;;  %v962_v50 = vld [vmem:[%s6224_s5 + $0x8] sm:$0xf] }
 0x30a   :  { %679 = vst [vmem:[#allocation3 + $0x120] sm:$0xf0] %v671_v0  ;;  %680 = vst [vmem:[#allocation3 + $0x2a8] sm:$0xf0] %v672_v56  ;;  %817 = vmatprep.subr.mxu0 %v764_v25  ;;  %v969_v58 = vmul.f32 %v967_v53, %v962_v50 }
 0x30b   :  { %818 = vmatpush1.msra.mxu0 %v763_v39  ;;  %v429_v41 = vpop.permute.xlu0 %428 }
 0x30c   :  { %v435_v49 = vsel %vm6233_vm11, %v427_v32, %v429_v41  ;;  %v436_v21 = vsel %vm6233_vm11, %v429_v41, %v431_v26  ;;  %v272_v43 = vpop.permute.xlu1 %271  ;;  %vm775_vm11 = vcmask 293888  }
 0x30d   :  { %443 = vst [vmem:[#allocation3 + $0xf8] sm:$0xf0] %v435_v49  ;;  %444 = vst [vmem:[#allocation3 + $0x78] sm:$0xf0] %v436_v21  ;;  %v280_v1 = vsel %vm279_vm10, %v270_v24, %v272_v43  ;;  %v281_v2 = vsel %vm279_vm10, %v272_v43, %v274_v59  ;;  %v760_v3 = vld [vmem:[#allocation3 + $0xf0] sm:$0xff] }
 0x30e   :  { %v759_v4 = vld [vmem:[#allocation3 + $0x30] sm:$0xff]  ;;  %288 = vst [vmem:[#allocation3 + $0x2b0] sm:$0xf0] %v280_v1  ;;  %289 = vst [vmem:[#allocation3 + $0xd0] sm:$0xf0] %v281_v2  ;;  %819 = vmatprep.subr.mxu0 %v760_v3  ;;  %v1514_v2 = vrot.slane %v4431_v60, %v4080_v46 }
 0x30f   :  { %820 = vmatpush1.msra.mxu0 %v759_v4  ;;  %v276_v5 = vpop.permute.xlu0 %275  ;;  %v4402_v24 = vld [vmem:[%s6220_s1 + $0x20] ss:$8 sm:$0xf]  ;;  %v4454_v3 = vld [vmem:[%s6220_s1 + $0x3] ss:$8 sm:$0xf] }
 0x310   :  { %v282_v7 = vsel %vm279_vm10, %v274_v59, %v276_v5  ;;  %v512_v8 = vpop.permute.xlu1 %511  ;;  %v1860_v26 = vrot.slane %v4402_v24, %v4051_v38  ;;  %v971_v49 = vld [vmem:[#allocation4 + $0x18] sm:$0xf]  ;;  %v964_v43 = vld [vmem:[%s6225_s6 + $0x8] sm:$0xf]  ;;  %v1375_v4 = vrot.slane %v4454_v3, %v4051_v38 }
 0x311   :  { %290 = vst [vmem:[#allocation3 + $0x10] sm:$0xf0] %v282_v7  ;;  %v518_v9 = vsel %vm515_vm3, %v510_v61, %v512_v8  ;;  %v519_v10 = vsel %vm515_vm3, %v512_v8, %v514_v63  ;;  %v770_v11 = vld [vmem:[#allocation3 + $0x2a8] sm:$0xff]  ;;  %v769_v54 = vld [vmem:[#allocation3 + $0x120] sm:$0xff]  ;;  %v1502_v61 = vrot.slane %v4431_v60, %v4040_v34  ;;  %v973_v21 = vmul.f32 %v971_v49, %v969_v58 }
 0x312   :  { %526 = vst [vmem:[#allocation3] sm:$0xf0] %v518_v9  ;;  %527 = vst [vmem:[#allocation3 + $0x298] sm:$0xf0] %v519_v10  ;;  %886 = vmatprep.subr.mxu1 %v770_v11 }
 0x313   :  { %887 = vmatpush1.msra.mxu1 %v769_v54  ;;  %v4407_v63 = vld [vmem:[%s6220_s1 + $0x7] ss:$8 sm:$0xf]  ;;  %v975_v1 = vsub.f32 %v964_v43, %v973_v21  ;;  %v4464_v7 = vld [vmem:[%s6220_s1 + $0x2] ss:$8 sm:$0xf] }
 0x314   :  { %v278_v12 = vpop.permute.xlu1 %277  ;;  %v762_v57 = vld [vmem:[#allocation3 + $0x78] sm:$0xff]  ;;  %v1733_v27 = vrot.slane %v4407_v63, %v4040_v34  ;;  %v1741_v28 = vrot.slane %v4407_v63, %v4042_v35  ;;  %v1745_v30 = vrot.slane %v4407_v63, %v4080_v46  ;;  %v1267_v8 = vrot.slane %v4464_v7, %v4051_v38 }
 0x315   :  { %v283_v40 = vsel %vm279_vm10, %v276_v5, %v278_v12  ;;  %v756_v13 = vld [vmem:[#allocation3 + $0xd0] sm:$0xff]  ;;  %v761_v42 = vld [vmem:[#allocation3 + $0xf8] sm:$0xff]  ;;  %v1383_v5 = vrot.slane %v4454_v3, %v4080_v46  ;;  %v1263_v21 = vrot.slane %v4464_v7, %v4040_v34  ;;  %v1271_v43 = vrot.slane %v4464_v7, %v4042_v35 }
 0x316   :  { %v755_v44 = vld [vmem:[#allocation3 + $0x2b0] sm:$0xff]  ;;  %291 = vst [vmem:[#allocation3 + $0x48] sm:$0xf0] %v283_v40  ;;  %821 = vmatprep.subr.mxu0 %v756_v13  ;;  %v980_v13 = vld [vmem:[#allocation9 + $0x60] sm:$0xf] }
 0x317   :  { %822 = vmatpush1.msra.mxu0 %v755_v44  ;;  %v4472_v9 = vld [vmem:[%s6220_s1 + $0x1] ss:$8 sm:$0xf] }
 0x318   :  { %3832 = vmatmul.mubr.msk.f32.vlgmr.msra.gmra.mxu0 %vm775_vm11, %v121_v15  ;;  %v757_v47 = vld [vmem:[#allocation3 + $0x10] sm:$0xff]  ;;  %v1140_v10 = vrot.slane %v4472_v9, %v4040_v34  ;;  %v1148_v11 = vrot.slane %v4472_v9, %v4042_v35  ;;  %v1152_v54 = vrot.slane %v4472_v9, %v4080_v46 }
 0x319   :  { %v766_v16 = vld [vmem:[#allocation3 + $0x298] sm:$0xff]  ;;  %v765_v51 = vld [vmem:[#allocation3] sm:$0xff]  ;;  %2085 = vmatprep.mubr.f32.mxu0 %v6236_v14  ;;  %v981_v44 = vld [vmem:[#allocation9 + $0x68] sm:$0xf] }
 0x31a   :  { %888 = vmatprep.subr.mxu1 %v766_v16 }
 0x31b   :  { %889 = vmatpush1.msra.mxu1 %v765_v51  ;;  %v983_v51 = vld [vmem:[#allocation9 + $0x78] sm:$0xf] }
 0x31c   :  { %890 = vmatprep.subr.mxu1 %v762_v57 }
 0x31d   :  { %891 = vmatpush1.msra.mxu1 %v761_v42  ;;  %v758_v48 = vld [vmem:[#allocation3 + $0x48] sm:$0xff] }
 0x31e   :  { %892 = vmatprep.subr.mxu1 %v758_v48 }
 0x31f   :  { %893 = vmatpush1.msra.mxu1 %v757_v47 }
 0x320   :  { %3835 = vmatmul.mubr.msk.f32.vlgmr.msra.gmra.mxu1 %vm775_vm11, %v121_v15  ;;  %v982_v15 = vld [vmem:[#allocation9 + $0x70] sm:$0xf]  ;;  %vm1068_vm11 = vcmask 1047688  }
 0x321   :  { %2156 = vmatprep.mubr.f32.mxu1 %v6236_v14 }
 0x3d8   :  { %v4380_v52 = vpop.f32.mrf.mxu0 }
 0x3d9   :  { %933 = vst [vmem:[#allocation9 + $0x40] sm:$0xff] %v4380_v52 }
 0x3da   :  { %v4383_v17 = vpop.f32.mrf.mxu0 }
 0x3db   :  { %934 = vst [vmem:[#allocation9 + $0x48] sm:$0xff] %v4383_v17  ;;  %v937_v18 = vadd.f32 %v4383_v17, %v4380_v52 }
 0x3e0   :  { %v4388_v19 = vpop.f32.mrf.mxu1 }
 0x3e1   :  { %935 = vst [vmem:[#allocation9 + $0x50] sm:$0xff] %v4388_v19  ;;  %v938_v20 = vadd.f32 %v937_v18, %v4388_v19 }
 0x3e2   :  { %v4392_v22 = vpop.f32.mrf.mxu1 }
 0x3e3   :  { %936 = vst [vmem:[#allocation9 + $0x58] sm:$0xff] %v4392_v22  ;;  %v939_v23 = vadd.f32 %v938_v20, %v4392_v22 }
 0x3e5   :  { %940 = vadd.xlane.f32.xlu0 %v939_v23 }
 0x3fb   :  { %991 = vperm.xlu0 %3884, %v969_v58  }
 0x3ff   :  { %1871 = vrot.lane.b32.xlu0 %v1860_v26, %s3944_s26 }
 0x403   :  { %1746 = vrot.lane.b32.xlu0 %v1733_v27, %s3948_s19 }
 0x407   :  { %1750 = vrot.lane.b32.xlu0 %v1741_v28, %s3948_s19 }
 0x40b   :  { %1752 = vrot.lane.b32.xlu0 %v1745_v30, %s3948_s19 }
 0x40f   :  { %1640 = vrot.lane.b32.xlu0 %v1629_v45, %s3946_s13 }
 0x413   :  { %1515 = vrot.lane.b32.xlu0 %v1502_v61, %s3945_s12  ;;  %v1856_v61 = vrot.slane %v4402_v24, %v4040_v34 }
 0x417   :  { %1519 = vrot.lane.b32.xlu0 %v1510_v6, %s3945_s12  ;;  %v2192_v6 = vld [vmem:[%s6227_s8 + $0x8] sm:$0xff] }
 0x41b   :  { %1521 = vrot.lane.b32.xlu0 %v1514_v2, %s3945_s12  ;;  %v1275_v2 = vrot.slane %v4464_v7, %v4080_v46 }
 0x41f   :  { %1386 = vrot.lane.b32.xlu0 %v1375_v4, %s3947_s18  ;;  %v1087_v4 = vld [vmem:[%s6220_s1] ss:$8 sm:$0xf] }
 0x423   :  { %1390 = vrot.lane.b32.xlu0 %v1383_v5, %s3947_s18 }
 0x427   :  { %1278 = vrot.lane.b32.xlu0 %v1267_v8, %s3950_s4  ;;  %v4550_v8 = vrot.slane %v1087_v4, %v4040_v34 }
 0x42b   :  { %1153 = vrot.lane.b32.xlu0 %v1140_v10, %s3949_s22 }
 0x42f   :  { %1157 = vrot.lane.b32.xlu0 %v1148_v11, %s3949_s22 }
 0x433   :  { %1159 = vrot.lane.b32.xlu0 %v1152_v54, %s3949_s22 }
 0x46e   :  { %v941_v32 = vpop.xlane.xlu0 %940 }
 0x46f   :  { %v942_v33 = vmul.f32 0.001953125, %v941_v32  ;;  %v1864_v32 = vrot.slane %v4402_v24, %v4042_v35 }
 0x471   :  { %957 = vst.msk [vmem:[#allocation4 + $0x10] sm:$0xff] %vm245_vm12, %v942_v33  ;;  %v943_v36 = vsub.f32 %v4380_v52, %v942_v33  ;;  %v944_v55 = vsub.f32 %v4383_v17, %v942_v33  ;;  %v945_v29 = vsub.f32 %v4388_v19, %v942_v33  ;;  %v946_v37 = vsub.f32 %v4392_v22, %v942_v33 }
 0x473   :  { %v947_v59 = vmul.f32 %v943_v36, %v943_v36  ;;  %v948_v62 = vmul.f32 %v944_v55, %v944_v55  ;;  %v949_v39 = vmul.f32 %v945_v29, %v945_v29  ;;  %v950_v56 = vmul.f32 %v946_v37, %v946_v37 }
 0x474   :  { %v1737_v29 = vrot.slane %v4407_v63, %v4051_v38  ;;  %v1506_v63 = vrot.slane %v4431_v60, %v4051_v38  ;;  %v963_v60 = vld [vmem:[%s6225_s6] sm:$0xff] }
 0x475   :  { %v951_v0 = vadd.f32 %v948_v62, %v947_v59  ;;  %v1868_v59 = vrot.slane %v4402_v24, %v4080_v46  ;;  %v1625_v62 = vrot.slane %v4423_v31, %v4040_v34  ;;  %v1637_v24 = vrot.slane %v4423_v31, %v4080_v46 }
 0x476   :  { %v992_v12 = vpop.permute.xlu0 %991 }
 0x477   :  { %v952_v25 = vadd.f32 %v951_v0, %v949_v39  ;;  %v998_v42 = vmul.f32 %v992_v12, %v980_v13  ;;  %v999_v48 = vmul.f32 %v992_v12, %v981_v44  ;;  %v1000_v47 = vmul.f32 %v992_v12, %v982_v15  ;;  %v961_v0 = vld [vmem:[%s6224_s5] sm:$0xff] }
 0x478   :  { %v1001_v20 = vmul.f32 %v992_v12, %v983_v51  ;;  %v970_v55 = vld [vmem:[#allocation4 + $0x10] sm:$0xff]  ;;  %v1633_v39 = vrot.slane %v4423_v31, %v4042_v35  ;;  %v1379_v31 = vrot.slane %v4454_v3, %v4042_v35 }
 0x479   :  { %v953_v41 = vadd.f32 %v952_v25, %v950_v56  ;;  %v1371_v56 = vrot.slane %v4454_v3, %v4040_v34 }
 0x47a   :  { %v1872_v10 = vpop.permute.xlu0 %1871 }
 0x47b   :  { %954 = vadd.xlane.f32.xlu1 %v953_v41 }
 0x48c   :  { %1009 = vperm.xlu1 %3883, %v975_v1   ;;  %v1144_v1 = vrot.slane %v4472_v9, %v4051_v38 }
 0x504   :  { %v955_v40 = vpop.xlane.xlu1 %954 }
 0x505   :  { %v956_v16 = vmul.f32 0.001953125, %v955_v40  ;;  %v4556_v40 = vrot.slane %v1087_v4, %v4051_v38 }
 0x507   :  { %v958_v57 = vadd.f32 1e-05, %v956_v16  ;;  %v4560_v16 = vpop.permute.xlu0 %1746 }
 0x508   :  { %v1010_v18 = vpop.permute.xlu1 %1009 }
 0x509   :  { %3889 = vrsqrt.f32 %v958_v57  ;;  %v1016_v23 = vadd.f32 %v1010_v18, %v998_v42  ;;  %v1017_v50 = vadd.f32 %v1010_v18, %v999_v48  ;;  %v1018_v53 = vadd.f32 %v1010_v18, %v1000_v47 }
 0x50a   :  { %v1019_v58 = vadd.f32 %v1010_v18, %v1001_v20  ;;  %v4564_v57 = vrot.slane %v1087_v4, %v4042_v35 }
 0x50b   :  { %v1024_v26 = vmax.f32 %v1016_v23, 0.0  ;;  %v1025_v27 = vmax.f32 %v1017_v50, 0.0  ;;  %v1026_v28 = vmax.f32 %v1018_v53, 0.0  ;;  %v4574_v23 = vrot.slane %v1087_v4, %v4080_v46  ;;  %v4577_v53 = vpop.permute.xlu0 %1750 }
 0x50c   :  { %v1027_v30 = vmax.f32 %v1019_v58, 0.0 }
 0x50d   :  { %1044 = vrot.lane.b32.xlu1 %v1024_v26, %s3952_s27  ;;  %1483 = vst [vmem:[#allocation3 + $0x90] sm:$0xf] %v1024_v26  ;;  %1484 = vst [vmem:[#allocation3 + $0x2d8] sm:$0xf] %v1025_v27 }
 0x50e   :  { %1485 = vst [vmem:[#allocation3 + $0x288] sm:$0xf] %v1026_v28  ;;  %1486 = vst [vmem:[#allocation3 + $0xb0] sm:$0xf] %v1027_v30 }
 0x511   :  { %1046 = vrot.lane.b32.xlu1 %v1025_v27, %s3952_s27 }
 0x515   :  { %1048 = vrot.lane.b32.xlu1 %v1026_v28, %s3952_s27 }
 0x516   :  { %v3890_v45 = vpop.eup %3889 }
 0x517   :  { %960 = vst.msk [vmem:[#allocation5 + $0x10] sm:$0xff] %vm245_vm12, %v3890_v45 }
 0x519   :  { %1050 = vrot.lane.b32.xlu1 %v1027_v30, %s3952_s27 }
 0x51d   :  { %1869 = vrot.lane.b32.xlu1 %v1856_v61, %s3944_s26 }
 0x51e   :  { %v966_v33 = vld [vmem:[#allocation5 + $0x10] sm:$0xff] }
 0x51f   :  { %v4497_v36 = vmul.f32 %v2192_v6, %v966_v33  ;;  %v968_v25 = vmul.f32 %v966_v33, %v961_v0  ;;  %v4590_v33 = vpop.permute.xlu0 %1752 }
 0x521   :  { %1873 = vrot.lane.b32.xlu1 %v1864_v32, %s3944_s26  ;;  %v4503_v37 = vmul.f32 %v4497_v36, %v970_v55  ;;  %v972_v41 = vmul.f32 %v970_v55, %v968_v25 }
 0x523   :  { %v974_v49 = vsub.f32 %v963_v60, %v972_v41 }
 0x525   :  { %1748 = vrot.lane.b32.xlu1 %v1737_v29, %s3948_s19 }
 0x529   :  { %1875 = vrot.lane.b32.xlu1 %v1868_v59, %s3944_s26 }
 0x52d   :  { %1638 = vrot.lane.b32.xlu1 %v1625_v62, %s3946_s13 }
 0x531   :  { %1642 = vrot.lane.b32.xlu1 %v1633_v39, %s3946_s13 }
 0x535   :  { %1517 = vrot.lane.b32.xlu1 %v1506_v63, %s3945_s12 }
 0x539   :  { %1644 = vrot.lane.b32.xlu1 %v1637_v24, %s3946_s13  ;;  %v1641_v24 = vpop.permute.xlu0 %1640 }
 0x53d   :  { %1384 = vrot.lane.b32.xlu1 %v1371_v56, %s3947_s18 }
 0x541   :  { %986 = vperm.xlu1 %3883, %v968_v25  }
 0x545   :  { %1004 = vperm.xlu1 %3883, %v974_v49  }
 0x549   :  { %1388 = vrot.lane.b32.xlu1 %v1379_v31, %s3947_s18 }
 0x54d   :  { %1276 = vrot.lane.b32.xlu1 %v1263_v21, %s3950_s4 }
 0x551   :  { %1280 = vrot.lane.b32.xlu1 %v1271_v43, %s3950_s4 }
 0x555   :  { %1155 = vrot.lane.b32.xlu1 %v1144_v1, %s3949_s22 }
 0x559   :  { %1282 = vrot.lane.b32.xlu1 %v1275_v2, %s3950_s4 }
 0x57f   :  { %v1045_v3 = vpop.permute.xlu1 %1044 }
 0x580   :  { %1074 = vst.msk [vmem:[#allocation2 + $0x28] sm:$0xf] %vm173_vm5, %v1045_v3 }
 0x583   :  { %v1047_v5 = vpop.permute.xlu1 %1046 }
 0x584   :  { %v1055_v9 = vsel %vm51_vm2, %v1045_v3, %v1047_v5  ;;  %v4619_v3 = vpop.permute.xlu0 %1515 }
 0x585   :  { %1075 = vst [vmem:[#allocation2 + $0x30] sm:$0xf] %v1055_v9 }
 0x587   :  { %v1083_v11 = vld [vmem:[#allocation2 + $0x28] sm:$0xf]  ;;  %v1049_v54 = vpop.permute.xlu1 %1048 }
 0x588   :  { %v1113_v7 = vmul.f32 %v4550_v8, %v1083_v11  ;;  %v1056_v12 = vsel %vm51_vm2, %v1047_v5, %v1049_v54  ;;  %v1846_v27 = vld [vmem:[#allocation2 + $0x28] sm:$0xf] }
 0x589   :  { %1076 = vst [vmem:[#allocation2 + $0x38] sm:$0xf] %v1056_v12  ;;  %v1615_v49 = vld [vmem:[#allocation2 + $0x28] sm:$0xf] }
 0x58a   :  { %1121 = vst [vmem:[#allocation3 + $0x30] sm:$0xf] %v1113_v7  ;;  %v4631_v7 = vpop.permute.xlu0 %1519 }
 0x58b   :  { %v1051_v13 = vpop.permute.xlu1 %1050 }
 0x58c   :  { %v1084_v44 = vld [vmem:[#allocation2 + $0x30] sm:$0xf]  ;;  %v1057_v15 = vsel %vm51_vm2, %v1049_v54, %v1051_v13  ;;  %1078 = vst.msk [vmem:[#allocation2 + $0x48] sm:$0xf] %vm54_vm4, %v1051_v13 }
 0x58d   :  { %v1114_v51 = vmul.f32 %v4556_v40, %v1084_v44  ;;  %1077 = vst [vmem:[#allocation2 + $0x40] sm:$0xf] %v1057_v15  ;;  %v1847_v47 = vld [vmem:[#allocation2 + $0x30] sm:$0xf] }
 0x58e   :  { %v1616_v56 = vld [vmem:[#allocation2 + $0x30] sm:$0xf]  ;;  %v4633_v12 = vpop.permute.xlu0 %1521 }
 0x58f   :  { %1122 = vst [vmem:[#allocation3 + $0xf0] sm:$0xf] %v1114_v51  ;;  %v4566_v42 = vpop.permute.xlu1 %1869 }
 0x590   :  { %v1085_v48 = vld [vmem:[#allocation2 + $0x38] sm:$0xf]  ;;  %v4570_v18 = vsel %vm713_vm6, %v4566_v42, %v1872_v10  ;;  %v1890_v61 = vmul.f32 %v4566_v42, %v1846_v27 }
 0x591   :  { %v1115_v20 = vmul.f32 %v4564_v57, %v1085_v48  ;;  %v1891_v50 = vmul.f32 %v4570_v18, %v1847_v47  ;;  %v1848_v28 = vld [vmem:[#allocation2 + $0x38] sm:$0xf] }
 0x592   :  { %v1617_v31 = vld [vmem:[#allocation2 + $0x38] sm:$0xf]  ;;  %v4637_v44 = vpop.permute.xlu0 %1386 }
 0x593   :  { %1123 = vst [vmem:[#allocation3 + $0xf8] sm:$0xf] %v1115_v20  ;;  %v1874_v58 = vpop.permute.xlu1 %1873  ;;  %1917 = vrot.lane.b32.xlu1 %v1891_v50, %s3953_s30  ;;  %v1850_v55 = vld [vmem:[#allocation2 + $0x48] sm:$0xf] }
 0x594   :  { %v1086_v26 = vld [vmem:[#allocation2 + $0x40] sm:$0xf]  ;;  %v4581_v30 = vsel %vm713_vm6, %v1872_v10, %v1874_v58  ;;  %v1619_v4 = vld [vmem:[#allocation2 + $0x48] sm:$0xf] }
 0x595   :  { %v1116_v45 = vmul.f32 %v4574_v23, %v1086_v26  ;;  %v1892_v6 = vmul.f32 %v4581_v30, %v1848_v28  ;;  %v1849_v59 = vld [vmem:[#allocation2 + $0x40] sm:$0xf]  ;;  %v1365_v14 = vld [vmem:[#allocation2 + $0x48] sm:$0xf] }
 0x596   :  { %v1618_v9 = vld [vmem:[#allocation2 + $0x40] sm:$0xf]  ;;  %v4639_v48 = vpop.permute.xlu0 %1390 }
 0x597   :  { %1124 = vst [vmem:[#allocation3 + $0x78] sm:$0xf] %v1116_v45  ;;  %v4586_v32 = vpop.permute.xlu1 %1748  ;;  %1919 = vrot.lane.b32.xlu0 %v1892_v6, %s3953_s30  ;;  %1915 = vrot.lane.b32.xlu1 %v1890_v61, %s3953_s30  ;;  %v1253_v45 = vld [vmem:[#allocation2 + $0x28] sm:$0xf]  ;;  %v1255_v61 = vld [vmem:[#allocation2 + $0x38] sm:$0xf] }
 0x59a   :  { %v1279_v20 = vpop.permute.xlu0 %1278 }
 0x59b   :  { %v4592_v29 = vpop.permute.xlu1 %1875 }
 0x59c   :  { %v4596_v62 = vsel %vm713_vm6, %v1874_v58, %v4592_v29  ;;  %v1894_v39 = vmul.f32 %v4592_v29, %v1850_v55  ;;  %v1254_v58 = vld [vmem:[#allocation2 + $0x30] sm:$0xf] }
 0x59d   :  { %v1893_v63 = vmul.f32 %v4596_v62, %v1849_v59 }
 0x59e   :  { %1923 = vrot.lane.b32.xlu0 %v1894_v39, %s3953_s30 }
 0x59f   :  { %v4601_v0 = vpop.permute.xlu1 %1638  ;;  %1921 = vrot.lane.b32.xlu1 %v1893_v63, %s3953_s30 }
 0x5a0   :  { %v4606_v25 = vsel %vm6234_vm7, %v4601_v0, %v1641_v24  ;;  %v1659_v43 = vmul.f32 %v4601_v0, %v1615_v49 }
 0x5a1   :  { %v1660_v41 = vmul.f32 %v4606_v25, %v1616_v56  ;;  %v1257_v56 = vld [vmem:[#allocation2 + $0x48] sm:$0xf] }
 0x5a3   :  { %v1643_v60 = vpop.permute.xlu1 %1642  ;;  %1686 = vrot.lane.b32.xlu0 %v1660_v41, %s3954_s14 }
 0x5a4   :  { %v4611_v21 = vsel %vm6234_vm7, %v1641_v24, %v1643_v60 }
 0x5a5   :  { %v1661_v1 = vmul.f32 %v4611_v21, %v1617_v31 }
 0x5a7   :  { %v4615_v2 = vpop.permute.xlu1 %1517  ;;  %1688 = vrot.lane.b32.xlu1 %v1661_v1, %s3954_s14  ;;  %1684 = vrot.lane.b32.xlu0 %v1659_v43, %s3954_s14 }
 0x5ab   :  { %v4621_v5 = vpop.permute.xlu1 %1644 }
 0x5ac   :  { %v4625_v10 = vsel %vm6234_vm7, %v1643_v60, %v4621_v5  ;;  %v1663_v11 = vmul.f32 %v4621_v5, %v1619_v4  ;;  %v1256_v60 = vld [vmem:[#allocation2 + $0x40] sm:$0xf]  ;;  %vm6279_vm7 = vcmask 146432  }
 0x5ad   :  { %v1662_v54 = vmul.f32 %v4625_v10, %v1618_v9 }
 0x5ae   :  { %1692 = vrot.lane.b32.xlu0 %v1663_v11, %s3954_s14 }
 0x5af   :  { %1690 = vrot.lane.b32.xlu1 %v1662_v54, %s3954_s14  ;;  %v4635_v13 = vpop.permute.xlu1 %1384 }
 0x5bc   :  { %v987_v15 = vpop.permute.xlu1 %986 }
 0x5bd   :  { %v994_v63 = vmul.f32 %v987_v15, %v4380_v52  ;;  %v995_v24 = vmul.f32 %v987_v15, %v4383_v17  ;;  %v996_v52 = vmul.f32 %v987_v15, %v4388_v19  ;;  %v997_v54 = vmul.f32 %v987_v15, %v4392_v22  ;;  %v4698_v22 = vpop.permute.xlu0 %1153 }
 0x5c0   :  { %v1005_v51 = vpop.permute.xlu1 %1004 }
 0x5c1   :  { %v4669_v43 = vadd.f32 %v1005_v51, %v994_v63  ;;  %v4672_v4 = vadd.f32 %v1005_v51, %v995_v24  ;;  %v4678_v9 = vadd.f32 %v1005_v51, %v996_v52  ;;  %v4700_v15 = vpop.permute.xlu0 %1157 }
 0x5c3   :  { %v6239_v17 = vmax.f32 %v4669_v43, 0.0  ;;  %v6240_v11 = vmax.f32 %v4672_v4, 0.0  ;;  %v6237_v19 = vmax.f32 %v4678_v9, 0.0 }
 0x5c4   :  { %v4641_v47 = vpop.permute.xlu1 %1388 }
 0x5c8   :  { %v4643_v50 = vpop.permute.xlu1 %1276 }
 0x5c9   :  { %v4647_v26 = vsel %vm324_vm8, %v4643_v50, %v1279_v20  ;;  %v1297_v55 = vmul.f32 %v4643_v50, %v1253_v45 }
 0x5ca   :  { %v1298_v27 = vmul.f32 %v4647_v26, %v1254_v58 }
 0x5cc   :  { %v1281_v28 = vpop.permute.xlu1 %1280  ;;  %1324 = vrot.lane.b32.xlu0 %v1298_v27, %s3955_s15  ;;  %v4702_v27 = vpop.permute.xlu0 %1159 }
 0x5cd   :  { %v4652_v6 = vsel %vm324_vm8, %v1279_v20, %v1281_v28  ;;  %v4689_v20 = vadd.f32 %v1005_v51, %v997_v54 }
 0x5ce   :  { %v1299_v59 = vmul.f32 %v4652_v6, %v1255_v61 }
 0x5cf   :  { %v6238_v58 = vmax.f32 %v4689_v20, 0.0 }
 0x5d0   :  { %v4656_v39 = vpop.permute.xlu1 %1155  ;;  %1326 = vrot.lane.b32.xlu1 %v1299_v59, %s3955_s15  ;;  %1322 = vrot.lane.b32.xlu0 %v1297_v55, %s3955_s15 }
 0x5d4   :  { %v4662_v41 = vpop.permute.xlu1 %1282 }
 0x5d5   :  { %v4666_v49 = vsel %vm324_vm8, %v1281_v28, %v4662_v41  ;;  %v1301_v31 = vmul.f32 %v4662_v41, %v1257_v56 }
 0x5d6   :  { %v1300_v1 = vmul.f32 %v4666_v49, %v1256_v60 }
 0x5d7   :  { %1330 = vrot.lane.b32.xlu0 %v1301_v31, %s3955_s15 }
 0x5d8   :  { %1328 = vrot.lane.b32.xlu1 %v1300_v1, %s3955_s15 }
 0x5db   :  { %1036 = vrot.lane.b32.xlu0 %v6239_v17, %s3952_s27 }
 0x5dc   :  { %1038 = vrot.lane.b32.xlu1 %v6240_v11, %s3952_s27  ;;  %v1726_v11 = vld [vmem:[#allocation2 + $0x40] sm:$0xf] }
 0x5df   :  { %1040 = vrot.lane.b32.xlu0 %v6237_v19, %s3952_s27  ;;  %v1409_v19 = vmul.f32 %v4639_v48, %v1365_v14 }
 0x5e3   :  { %1042 = vrot.lane.b32.xlu0 %v6238_v58, %s3952_s27 }
 0x605   :  { %v1918_v28 = vpop.permute.xlu1 %1917 }
 0x609   :  { %v1916_v45 = vpop.permute.xlu1 %1915  ;;  %v1920_v51 = vpop.permute.xlu0 %1919 }
 0x60a   :  { %v1929_v61 = vsel %vm6242_vm14, %v1916_v45, %v1918_v28  ;;  %v1930_v55 = vsel %vm6242_vm14, %v1918_v28, %v1920_v51 }
 0x60b   :  { %1945 = vst [vmem:[#allocation3 + $0x138] sm:$0xf] %v1929_v61  ;;  %1946 = vst [vmem:[#allocation3 + $0x108] sm:$0xf] %v1930_v55 }
 0x610   :  { %v1924_v59 = vpop.permute.xlu0 %1923 }
 0x611   :  { %v1922_v63 = vpop.permute.xlu1 %1921 }
 0x612   :  { %v1931_v24 = vsel %vm6242_vm14, %v1920_v51, %v1922_v63  ;;  %v1932_v56 = vsel %vm6242_vm14, %v1922_v63, %v1924_v59  ;;  %v2002_v60 = vld [vmem:[#allocation3 + $0x108] sm:$0xf]  ;;  %v2001_v31 = vld [vmem:[#allocation3 + $0x138] sm:$0xf] }
 0x613   :  { %1947 = vst [vmem:[#allocation3 + $0xd8] sm:$0xf] %v1931_v24  ;;  %1948 = vst [vmem:[#allocation3 + $0x290] sm:$0xf] %v1932_v56  ;;  %3843 = vmatprep.subr.msk.mxu0 %vm73_vm0, %v2002_v60 }
 0x614   :  { %3844 = vmatpush1.msk.msra.mxu0 %vm73_vm0, %v2001_v31 }
 0x615   :  { %v1687_v1 = vpop.permute.xlu0 %1686 }
 0x619   :  { %v1689_v52 = vpop.permute.xlu1 %1688  ;;  %v1685_v54 = vpop.permute.xlu0 %1684 }
 0x61a   :  { %v1699_v28 = vsel %vm589_vm13, %v1687_v1, %v1689_v52  ;;  %v1698_v45 = vsel %vm589_vm13, %v1685_v54, %v1687_v1  ;;  %v2004_v61 = vld [vmem:[#allocation3 + $0x290] sm:$0xf]  ;;  %v2003_v55 = vld [vmem:[#allocation3 + $0xd8] sm:$0xf] }
 0x61b   :  { %1715 = vst [vmem:[#allocation3 + $0x280] sm:$0xf] %v1699_v28  ;;  %1714 = vst [vmem:[#allocation3 + $0x1c8] sm:$0xf] %v1698_v45  ;;  %3846 = vmatprep.subr.msk.mxu1 %vm73_vm0, %v2004_v61 }
 0x61c   :  { %3847 = vmatpush1.msk.msra.mxu1 %vm73_vm0, %v2003_v55 }
 0x620   :  { %v1693_v51 = vpop.permute.xlu0 %1692 }
 0x621   :  { %v1691_v59 = vpop.permute.xlu1 %1690 }
 0x622   :  { %v1700_v63 = vsel %vm589_vm13, %v1689_v52, %v1691_v59  ;;  %v1701_v24 = vsel %vm589_vm13, %v1691_v59, %v1693_v51 }
 0x623   :  { %1716 = vst [vmem:[#allocation3 + $0x100] sm:$0xf] %v1700_v63  ;;  %1717 = vst [vmem:[#allocation3 + $0x1b0] sm:$0xf] %v1701_v24 }
 0x63e   :  { %v1325_v56 = vpop.permute.xlu0 %1324 }
 0x642   :  { %v1327_v60 = vpop.permute.xlu1 %1326  ;;  %v1323_v31 = vpop.permute.xlu0 %1322 }
 0x643   :  { %v1337_v1 = vsel %vm353_vm15, %v1325_v56, %v1327_v60  ;;  %v1336_v54 = vsel %vm353_vm15, %v1323_v31, %v1325_v56 }
 0x644   :  { %1353 = vst [vmem:[#allocation3 + $0x18] sm:$0xf] %v1337_v1  ;;  %1352 = vst [vmem:[#allocation3 + $0x240] sm:$0xf] %v1336_v54 }
 0x649   :  { %v1331_v28 = vpop.permute.xlu0 %1330 }
 0x64a   :  { %v1329_v45 = vpop.permute.xlu1 %1328 }
 0x64b   :  { %v1338_v61 = vsel %vm353_vm15, %v1327_v60, %v1329_v45  ;;  %v1339_v55 = vsel %vm353_vm15, %v1329_v45, %v1331_v28 }
 0x64c   :  { %1354 = vst [vmem:[#allocation3 + $0x60] sm:$0xf] %v1338_v61  ;;  %1355 = vst [vmem:[#allocation3 + $0x220] sm:$0xf] %v1339_v55 }
 0x64d   :  { %v1037_v52 = vpop.permute.xlu0 %1036 }
 0x64e   :  { %1069 = vst.msk [vmem:[#allocation2] sm:$0xff] %vm1068_vm11, %v1037_v52  ;;  %v1039_v60 = vpop.permute.xlu1 %1038 }
 0x64f   :  { %v4737_v28 = vsel %vm51_vm2, %v1037_v52, %v1039_v60 }
 0x651   :  { %v1041_v51 = vpop.permute.xlu0 %1040 }
 0x652   :  { %v4755_v61 = vsel %vm51_vm2, %v1039_v60, %v1041_v51 }
 0x655   :  { %v1043_v59 = vpop.permute.xlu0 %1042  ;;  %v4721_v63 = vld [vmem:[#allocation2] sm:$0xff] }
 0x656   :  { %1073 = vst.msk [vmem:[#allocation2 + $0x20] sm:$0xff] %vm51_vm2, %v1043_v59  ;;  %v1885_v24 = vmul.f32 %v4566_v42, %v4721_v63  ;;  %v1654_v56 = vmul.f32 %v4721_v63, %v4601_v0  ;;  %v1292_v1 = vmul.f32 %v4721_v63, %v4643_v50  ;;  %v1886_v0 = vmul.f32 %v4570_v18, %v4737_v28 }
 0x657   :  { %v4746_v45 = vsel %vm51_vm2, %v1041_v51, %v1043_v59  ;;  %v1887_v18 = vmul.f32 %v4581_v30, %v4755_v61  ;;  %v1294_v30 = vmul.f32 %v4652_v6, %v4755_v61  ;;  %v1762_v55 = vmul.f32 %v4721_v63, %v4560_v16  ;;  %v1723_v51 = vld [vmem:[#allocation2 + $0x28] sm:$0xf] }
 0x658   :  { %1905 = vrot.lane.b32.xlu0 %v1885_v24, %s3953_s30  ;;  %v1888_v50 = vmul.f32 %v4596_v62, %v4746_v45  ;;  %v1656_v62 = vmul.f32 %v4611_v21, %v4755_v61  ;;  %v4783_v52 = vmul.f32 %v4721_v63, %v4635_v13 }
 0x659   :  { %v1782_v21 = vrot.slane %v1762_v55, 4 }
 0x65a   :  { %v1420_v59 = vrot.slane %v4783_v52, 4 }
 0x65c   :  { %1674 = vrot.lane.b32.xlu0 %v1654_v56, %s3954_s14  ;;  %v4800_v56 = vsel %vm6235_vm9, %v4586_v32, %v4577_v53 }
 0x65d   :  { %v4730_v31 = vld [vmem:[#allocation2 + $0x20] sm:$0xff] }
 0x65e   :  { %v1889_v54 = vmul.f32 %v4592_v29, %v4730_v31  ;;  %v1658_v42 = vmul.f32 %v4730_v31, %v4621_v5  ;;  %v1296_v29 = vmul.f32 %v4730_v31, %v4662_v41  ;;  %v1655_v5 = vmul.f32 %v4606_v25, %v4737_v28 }
 0x65f   :  { %v1657_v41 = vmul.f32 %v4625_v10, %v4746_v45  ;;  %v1293_v25 = vmul.f32 %v4647_v26, %v4737_v28  ;;  %v1295_v10 = vmul.f32 %v4666_v49, %v4746_v45  ;;  %v1766_v6 = vmul.f32 %v4730_v31, %v4590_v33 }
 0x660   :  { %1312 = vrot.lane.b32.xlu0 %v1292_v1, %s3955_s15  ;;  %1913 = vrot.lane.b32.xlu1 %v1889_v54, %s3953_s30  ;;  %v1767_v26 = vmul.f32 %v4560_v16, %v1723_v51  ;;  %v1531_v49 = vmul.f32 %v4721_v63, %v4619_v3  ;;  %v4804_v54 = vmul.f32 %v4800_v56, %v4755_v61 }
 0x661   :  { %v1786_v24 = vrot.slane %v1766_v6, 4 }
 0x662   :  { %v1787_v60 = vrot.slane %v1767_v26, 4  ;;  %v1551_v1 = vrot.slane %v1531_v49, 4 }
 0x664   :  { %1682 = vrot.lane.b32.xlu1 %v1658_v42, %s3954_s14  ;;  %1907 = vrot.lane.b32.xlu0 %v1886_v0, %s3953_s30  ;;  %v1535_v42 = vmul.f32 %v4730_v31, %v4633_v12  ;;  %v1727_v0 = vld [vmem:[#allocation2 + $0x48] sm:$0xf] }
 0x668   :  { %1320 = vrot.lane.b32.xlu1 %v1296_v29, %s3955_s15  ;;  %1911 = vrot.lane.b32.xlu0 %v1888_v50, %s3953_s30  ;;  %v1788_v29 = vsel %vm73_vm0, %v1782_v21, %v1787_v60  ;;  %v1771_v50 = vmul.f32 %v4590_v33, %v1727_v0 }
 0x66c   :  { %1909 = vrot.lane.b32.xlu1 %v1887_v18, %s3953_s30  ;;  %1676 = vrot.lane.b32.xlu0 %v1655_v5, %s3954_s14  ;;  %v1784_v18 = vrot.slane %v4804_v54, 4  ;;  %v1555_v5 = vrot.slane %v1535_v42, 4 }
 0x670   :  { %1678 = vrot.lane.b32.xlu1 %v1656_v62, %s3954_s14  ;;  %1680 = vrot.lane.b32.xlu0 %v1657_v41, %s3954_s14  ;;  %v4815_v62 = vmul.f32 %v4730_v31, %v4639_v48  ;;  %v4824_v41 = vsel %vm6235_vm9, %v4577_v53, %v4590_v33  ;;  %v4843_v53 = vsel %vm6235_vm9, %v4560_v16, %v4586_v32  ;;  %vm6280_vm9 = vmmov %vm6279_vm7 }
 0x671   :  { %v4829_v55 = vmul.f32 %v4824_v41, %v4746_v45  ;;  %v4861_v16 = vsel %vm6279_vm7, %v4619_v3, %v4615_v2  ;;  %v1524_v32 = vsel %vm6280_vm9, %v4615_v2, %v4631_v7  ;;  %v4882_v2 = vsel %vm6279_vm7, %v4631_v7, %v4633_v12 }
 0x672   :  { %v4868_v42 = vmul.f32 %v1524_v32, %v4755_v61  ;;  %v4872_v0 = vmul.f32 %v4861_v16, %v4737_v28  ;;  %vm6281_vm9 = vcmask 130048  }
 0x673   :  { %v1785_v51 = vrot.slane %v4829_v55, 4  ;;  %v4898_v7 = vsel %vm6281_vm9, %v4635_v13, %v4637_v44  ;;  %vm6282_vm7 = vmmov %vm6281_vm9 }
 0x674   :  { %1316 = vrot.lane.b32.xlu1 %v1294_v30, %s3955_s15  ;;  %1314 = vrot.lane.b32.xlu0 %v1293_v25, %s3955_s15  ;;  %v1795_v30 = vrot.slane %v1771_v50, 4  ;;  %v1424_v25 = vrot.slane %v4815_v62, 4  ;;  %vm6283_vm9 = vmmov %vm6282_vm7 }
 0x676   :  { %v1796_v6 = vsel %vm73_vm0, %v1786_v24, %v1795_v30  ;;  %v1553_v30 = vrot.slane %v4868_v42, 4  ;;  %v4904_v42 = vmul.f32 %v4898_v7, %v4737_v28 }
 0x678   :  { %1797 = vrot.lane.b32.xlu1 %v1782_v21, %s3957_s17  ;;  %1318 = vrot.lane.b32.xlu0 %v1295_v10, %s3955_s15  ;;  %v4833_v21 = vmul.f32 %v4721_v63, %v4698_v22  ;;  %v1492_v10 = vld [vmem:[#allocation2 + $0x28] sm:$0xf] }
 0x679   :  { %v1536_v33 = vmul.f32 %v4619_v3, %v1492_v10  ;;  %v1552_v10 = vrot.slane %v4872_v0, 4 }
 0x67a   :  { %v1189_v26 = vrot.slane %v4833_v21, 4 }
 0x67b   :  { %v1556_v49 = vrot.slane %v1536_v33, 4 }
 0x67c   :  { %1435 = vrot.lane.b32.xlu1 %v1420_v59, %s3958_s20  ;;  %1805 = vrot.lane.b32.xlu0 %v1786_v24, %s3957_s17  ;;  %v4850_v24 = vmul.f32 %v4843_v53, %v4737_v28 }
 0x67d   :  { %v1557_v50 = vsel %vm73_vm0, %v1551_v1, %v1556_v49 }
 0x67e   :  { %v1783_v60 = vrot.slane %v4850_v24, 4 }
 0x680   :  { %1807 = vrot.lane.b32.xlu1 %v1788_v29, %s3957_s17  ;;  %1566 = vrot.lane.b32.xlu0 %v1551_v1, %s3956_s16  ;;  %v1496_v29 = vld [vmem:[#allocation2 + $0x48] sm:$0xf]  ;;  %v4889_v1 = vmul.f32 %v4882_v2, %v4746_v45 }
 0x681   :  { %v1540_v3 = vmul.f32 %v4633_v12, %v1496_v29 }
 0x682   :  { %v1554_v49 = vrot.slane %v4889_v1, 4 }
 0x683   :  { %v1564_v33 = vrot.slane %v1540_v3, 4  ;;  %v4917_v3 = vsel %vm245_vm12, %v4698_v22, %v4656_v39 }
 0x684   :  { %1801 = vrot.lane.b32.xlu1 %v1784_v18, %s3957_s17  ;;  %1574 = vrot.lane.b32.xlu0 %v1555_v5, %s3956_s16 }
 0x685   :  { %v1565_v29 = vsel %vm73_vm0, %v1555_v5, %v1564_v33  ;;  %v4923_v33 = vmul.f32 %v4917_v3, %v4737_v28 }
 0x687   :  { %v6241_v17 = vrot.slane %v4923_v33, 4 }
 0x688   :  { %1815 = vrot.lane.b32.xlu1 %v1796_v6, %s3957_s17  ;;  %1443 = vrot.lane.b32.xlu0 %v1424_v25, %s3958_s20  ;;  %v1361_v6 = vld [vmem:[#allocation2 + $0x28] sm:$0xf] }
 0x689   :  { %v1405_v12 = vmul.f32 %v4635_v13, %v1361_v6  ;;  %v1393_v13 = vsel %vm6282_vm7, %v4637_v44, %v4641_v47  ;;  %v1421_v6 = vrot.slane %v4904_v42, 4  ;;  %vm6285_vm7 = vcmask 916480  }
 0x68a   :  { %v1402_v5 = vmul.f32 %v1393_v13, %v4755_v61 }
 0x68c   :  { %1803 = vrot.lane.b32.xlu1 %v1785_v51, %s3957_s17  ;;  %1204 = vrot.lane.b32.xlu0 %v1189_v26, %s3959_s21  ;;  %v1422_v58 = vrot.slane %v1402_v5, 4 }
 0x690   :  { %1576 = vrot.lane.b32.xlu1 %v1557_v50, %s3956_s16  ;;  %1799 = vrot.lane.b32.xlu0 %v1783_v60, %s3957_s17  ;;  %v1425_v50 = vrot.slane %v1405_v12, 4 }
 0x692   :  { %v1426_v12 = vsel %vm73_vm0, %v1420_v59, %v1425_v50  ;;  %v1394_v59 = vsel %vm6283_vm9, %v4641_v47, %v4639_v48  ;;  %v1433_v50 = vrot.slane %v1409_v19, 4  ;;  %vm6286_vm9 = vmmov %vm6285_vm7 }
 0x693   :  { %v1403_v14 = vmul.f32 %v1394_v59, %v4746_v45 }
 0x694   :  { %1570 = vrot.lane.b32.xlu1 %v1553_v30, %s3956_s16  ;;  %1568 = vrot.lane.b32.xlu0 %v1552_v10, %s3956_s16  ;;  %v1434_v5 = vsel %vm73_vm0, %v1424_v25, %v1433_v50 }
 0x695   :  { %v1423_v19 = vrot.slane %v1403_v14, 4  ;;  %v1132_v14 = vld [vmem:[#allocation2 + $0x38] sm:$0xf] }
 0x698   :  { %1572 = vrot.lane.b32.xlu1 %v1554_v49, %s3956_s16  ;;  %1584 = vrot.lane.b32.xlu0 %v1565_v29, %s3956_s16  ;;  %v1725_v29 = vld [vmem:[#allocation2 + $0x38] sm:$0xf] }
 0x699   :  { %v1769_v44 = vmul.f32 %v4800_v56, %v1725_v29  ;;  %v1770_v56 = vmul.f32 %v4824_v41, %v1726_v11  ;;  %v1363_v41 = vld [vmem:[#allocation2 + $0x38] sm:$0xf] }
 0x69a   :  { %v1407_v25 = vmul.f32 %v1393_v13, %v1363_v41  ;;  %v1362_v41 = vld [vmem:[#allocation2 + $0x30] sm:$0xf] }
 0x69b   :  { %v1791_v52 = vrot.slane %v1769_v44, 4  ;;  %v1793_v11 = vrot.slane %v1770_v56, 4  ;;  %v1162_v44 = vsel %vm245_vm12, %v4656_v39, %v4700_v15 }
 0x69c   :  { %1445 = vrot.lane.b32.xlu1 %v1426_v12, %s3958_s20  ;;  %1437 = vrot.lane.b32.xlu0 %v1421_v6, %s3958_s20  ;;  %v1130_v12 = vld [vmem:[#allocation2 + $0x28] sm:$0xf]  ;;  %v1429_v50 = vrot.slane %v1407_v25, 4  ;;  %v1131_v25 = vld [vmem:[#allocation2 + $0x30] sm:$0xf] }
 0x69d   :  { %v1792_v29 = vsel %vm73_vm0, %v1784_v18, %v1791_v52  ;;  %v1174_v48 = vmul.f32 %v4698_v22, %v1130_v12  ;;  %v1794_v62 = vsel %vm73_vm0, %v1785_v51, %v1793_v11  ;;  %v1724_v51 = vld [vmem:[#allocation2 + $0x30] sm:$0xf] }
 0x69e   :  { %v1768_v13 = vmul.f32 %v4843_v53, %v1724_v51  ;;  %v1430_v39 = vsel %vm73_vm0, %v1422_v58, %v1429_v50  ;;  %v1493_v12 = vld [vmem:[#allocation2 + $0x30] sm:$0xf]  ;;  %v6284_v51 = vrot.slane %v4923_v33, 4 }
 0x69f   :  { %v1194_v54 = vrot.slane %v1174_v48, 4  ;;  %v1495_v48 = vld [vmem:[#allocation2 + $0x40] sm:$0xf] }
 0x6a0   :  { %1439 = vrot.lane.b32.xlu1 %v1422_v58, %s3958_s20  ;;  %1206 = vrot.lane.b32.xlu0 %v6241_v17, %s3959_s21  ;;  %v1494_v17 = vld [vmem:[#allocation2 + $0x38] sm:$0xf]  ;;  %v1789_v21 = vrot.slane %v1768_v13, 4  ;;  %v1173_v58 = vmul.f32 %v4730_v31, %v4702_v27 }
 0x6a1   :  { %v1538_v47 = vmul.f32 %v1524_v32, %v1494_v17  ;;  %v1171_v17 = vmul.f32 %v1162_v44, %v4755_v61  ;;  %v1195_v22 = vsel %vm73_vm0, %v1189_v26, %v1194_v54  ;;  %v1364_v32 = vld [vmem:[#allocation2 + $0x40] sm:$0xf]  ;;  %v1537_v26 = vmul.f32 %v4861_v16, %v1493_v12 }
 0x6a2   :  { %v1408_v52 = vmul.f32 %v1394_v59, %v1364_v32  ;;  %v1790_v53 = vsel %vm73_vm0, %v1783_v60, %v1789_v21  ;;  %v1406_v54 = vmul.f32 %v4898_v7, %v1362_v41  ;;  %v1163_v7 = vsel %vm245_vm12, %v4700_v15, %v4702_v27  ;;  %v2195_v15 = vld [vmem:[%s6228_s9 + $0x8] sm:$0xff] }
 0x6a3   :  { %v1560_v18 = vrot.slane %v1538_v47, 4  ;;  %v1191_v56 = vrot.slane %v1171_v17, 4  ;;  %v1558_v16 = vrot.slane %v1537_v26, 4  ;;  %v1133_v17 = vld [vmem:[#allocation2 + $0x40] sm:$0xf] }
 0x6a4   :  { %1453 = vrot.lane.b32.xlu1 %v1434_v5, %s3958_s20  ;;  %1811 = vrot.lane.b32.xlu0 %v1792_v29, %s3957_s17  ;;  %v1176_v5 = vmul.f32 %v1162_v44, %v1132_v14  ;;  %v1134_v29 = vld [vmem:[#allocation2 + $0x48] sm:$0xf]  ;;  %v1175_v44 = vmul.f32 %v4917_v3, %v1131_v25 }
 0x6a5   :  { %v1561_v55 = vsel %vm73_vm0, %v1553_v30, %v1560_v18  ;;  %v1431_v30 = vrot.slane %v1408_v52, 4  ;;  %v1178_v47 = vmul.f32 %v4702_v27, %v1134_v29  ;;  %v1559_v24 = vsel %vm73_vm0, %v1552_v10, %v1558_v16 }
 0x6a6   :  { %v1198_v11 = vrot.slane %v1176_v5, 4  ;;  %v1427_v10 = vrot.slane %v1406_v54, 4 }
 0x6a7   :  { %v1432_v59 = vsel %vm73_vm0, %v1423_v19, %v1431_v30  ;;  %v1202_v31 = vrot.slane %v1178_v47, 4 }
 0x6a8   :  { %1441 = vrot.lane.b32.xlu1 %v1423_v19, %s3958_s20  ;;  %1813 = vrot.lane.b32.xlu0 %v1794_v62, %s3957_s17  ;;  %v1539_v62 = vmul.f32 %v4882_v2, %v1495_v48  ;;  %v1199_v60 = vsel %vm73_vm0, %v1191_v56, %v1198_v11  ;;  %v1193_v19 = vrot.slane %v1173_v58, 4  ;;  %v1428_v1 = vsel %vm73_vm0, %v1421_v6, %v1427_v10 }
 0x6a9   :  { %v2212_v6 = vsub.f32 %v2195_v15, %v4503_v37 }
 0x6aa   :  { %v1562_v18 = vrot.slane %v1539_v62, 4  ;;  %v1203_v0 = vsel %vm73_vm0, %v1193_v19, %v1202_v31 }
 0x6ac   :  { %1214 = vrot.lane.b32.xlu1 %v1195_v22, %s3959_s21  ;;  %1580 = vrot.lane.b32.xlu0 %v1561_v55, %s3956_s16  ;;  %v1563_v2 = vsel %vm73_vm0, %v1554_v49, %v1562_v18  ;;  %v1172_v49 = vmul.f32 %v1163_v7, %v4746_v45  ;;  %v1177_v22 = vmul.f32 %v1163_v7, %v1133_v17  ;;  %v1196_v55 = vrot.slane %v1175_v44, 4 }
 0x6ae   :  { %v1197_v3 = vsel %vm73_vm0, %v6284_v51, %v1196_v55  ;;  %v1192_v27 = vrot.slane %v1172_v49, 4  ;;  %v1200_v42 = vrot.slane %v1177_v22, 4 }
 0x6b0   :  { %1208 = vrot.lane.b32.xlu1 %v1191_v56, %s3959_s21  ;;  %1449 = vrot.lane.b32.xlu0 %v1430_v39, %s3958_s20  ;;  %v1201_v32 = vsel %vm73_vm0, %v1192_v27, %v1200_v42 }
 0x6b4   :  { %1809 = vrot.lane.b32.xlu1 %v1790_v53, %s3957_s17  ;;  %1451 = vrot.lane.b32.xlu0 %v1432_v59, %s3958_s20 }
 0x6b8   :  { %1578 = vrot.lane.b32.xlu1 %v1559_v24, %s3956_s16  ;;  %1218 = vrot.lane.b32.xlu0 %v1199_v60, %s3959_s21 }
 0x6bc   :  { %1582 = vrot.lane.b32.xlu1 %v1563_v2, %s3956_s16  ;;  %1222 = vrot.lane.b32.xlu0 %v1203_v0, %s3959_s21 }
 0x6c0   :  { %1447 = vrot.lane.b32.xlu1 %v1428_v1, %s3958_s20  ;;  %1212 = vrot.lane.b32.xlu0 %v1193_v19, %s3959_s21 }
 0x6c4   :  { %2233 = vperm.xlu0 %3884, %v4497_v36   ;;  %1216 = vrot.lane.b32.xlu1 %v1197_v3, %s3959_s21 }
 0x6c8   :  { %2260 = vperm.xlu0 %3884, %v2212_v6   ;;  %1220 = vrot.lane.b32.xlu1 %v1201_v32, %s3959_s21 }
 0x6ca   :  { %v1906_v33 = vpop.permute.xlu0 %1905 }
 0x6cc   :  { %1210 = vrot.lane.b32.xlu1 %v1192_v27, %s3959_s21 }
 0x6ce   :  { %v5018_v13 = vpop.permute.xlu0 %1674 }
 0x6d2   :  { %v5020_v52 = vpop.permute.xlu0 %1312  ;;  %v1914_v50 = vpop.permute.xlu1 %1913 }
 0x6d6   :  { %v1908_v56 = vpop.permute.xlu0 %1907  ;;  %v5022_v36 = vpop.permute.xlu1 %1682 }
 0x6d7   :  { %v1925_v39 = vsel %vm6242_vm14, %v1906_v33, %v1908_v56 }
 0x6d8   :  { %1941 = vst [vmem:[#allocation3 + $0x2c8] sm:$0xff] %v1925_v39 }
 0x6da   :  { %v1912_v37 = vpop.permute.xlu0 %1911  ;;  %v5025_v12 = vpop.permute.xlu1 %1320 }
 0x6db   :  { %v1928_v14 = vsel %vm6242_vm14, %v1912_v37, %v1914_v50 }
 0x6dc   :  { %1944 = vst [vmem:[#allocation3 + $0x248] sm:$0xff] %v1928_v14  ;;  %2098 = vmatprep.subr.mxu1 %v1928_v14 }
 0x6de   :  { %v5028_v21 = vpop.permute.xlu0 %1676  ;;  %v1910_v26 = vpop.permute.xlu1 %1909 }
 0x6df   :  { %v1926_v30 = vsel %vm6242_vm14, %v1908_v56, %v1910_v26  ;;  %v1927_v5 = vsel %vm6242_vm14, %v1910_v26, %v1912_v37  ;;  %vm6287_vm14 = vmmov %vm6285_vm7 }
 0x6e0   :  { %1942 = vst [vmem:[#allocation3 + $0x1e8] sm:$0xff] %v1926_v30  ;;  %1943 = vst [vmem:[#allocation3 + $0xe8] sm:$0xff] %v1927_v5  ;;  %2027 = vmatprep.subr.mxu0 %v1926_v30  ;;  %2099 = vmatpush1.msra.mxu1 %v1927_v5 }
 0x6e1   :  { %2028 = vmatpush1.msra.mxu0 %v1925_v39 }
 0x6e2   :  { %v5032_v29 = vpop.permute.xlu0 %1680  ;;  %v5034_v48 = vpop.permute.xlu1 %1678 }
 0x6e6   :  { %v5036_v53 = vpop.permute.xlu0 %1314  ;;  %v5038_v59 = vpop.permute.xlu1 %1316 }
 0x6ea   :  { %v5040_v58 = vpop.permute.xlu0 %1318  ;;  %v1798_v47 = vpop.permute.xlu1 %1797 }
 0x6ee   :  { %v1806_v16 = vpop.permute.xlu0 %1805  ;;  %v1436_v11 = vpop.permute.xlu1 %1435 }
 0x6f2   :  { %v1567_v62 = vpop.permute.xlu0 %1566  ;;  %v5042_v24 = vpop.permute.xlu1 %1807 }
 0x6f6   :  { %v1575_v60 = vpop.permute.xlu0 %1574  ;;  %v1802_v19 = vpop.permute.xlu1 %1801 }
 0x6fa   :  { %v1444_v41 = vpop.permute.xlu0 %1443  ;;  %v1816_v31 = vpop.permute.xlu1 %1815 }
 0x6fe   :  { %v1205_v54 = vpop.permute.xlu0 %1204  ;;  %v1804_v18 = vpop.permute.xlu1 %1803 }
 0x6ff   :  { %v1819_v2 = vsel %vm668_vm1, %v1802_v19, %v1804_v18  ;;  %v1820_v0 = vsel %vm668_vm1, %v1804_v18, %v1806_v16 }
 0x700   :  { %1835 = vst [vmem:[#allocation3 + $0x100] sm:$0xf0] %v1819_v2  ;;  %1836 = vst [vmem:[#allocation3 + $0x1b0] sm:$0xf0] %v1820_v0 }
 0x702   :  { %v1800_v25 = vpop.permute.xlu0 %1799  ;;  %v5046_v10 = vpop.permute.xlu1 %1576 }
 0x703   :  { %v1817_v44 = vsel %vm668_vm1, %v1798_v47, %v1800_v25  ;;  %v1818_v17 = vsel %vm668_vm1, %v1800_v25, %v1802_v19 }
 0x704   :  { %1833 = vst [vmem:[#allocation3 + $0x1c8] sm:$0xf0] %v1817_v44  ;;  %1834 = vst [vmem:[#allocation3 + $0x280] sm:$0xf0] %v1818_v17 }
 0x706   :  { %v1569_v7 = vpop.permute.xlu0 %1568  ;;  %v1571_v1 = vpop.permute.xlu1 %1570 }
 0x707   :  { %v1586_v49 = vsel %vm515_vm3, %v1567_v62, %v1569_v7  ;;  %v1587_v22 = vsel %vm515_vm3, %v1569_v7, %v1571_v1  ;;  %v1991_v19 = vld [vmem:[#allocation3 + $0x100] sm:$0xff] }
 0x708   :  { %1602 = vst [vmem:[#allocation3 + $0x90] sm:$0xf0] %v1586_v49  ;;  %1603 = vst [vmem:[#allocation3 + $0x2d8] sm:$0xf0] %v1587_v22  ;;  %v1694_v49 = vsel %vm589_vm13, %v5018_v13, %v5028_v21 }
 0x70a   :  { %v5052_v55 = vpop.permute.xlu0 %1584  ;;  %v1573_v51 = vpop.permute.xlu1 %1572 }
 0x70b   :  { %v1588_v3 = vsel %vm515_vm3, %v1571_v1, %v1573_v51  ;;  %v1589_v15 = vsel %vm515_vm3, %v1573_v51, %v1575_v60  ;;  %v1990_v17 = vld [vmem:[#allocation3 + $0x280] sm:$0xff]  ;;  %v1989_v7 = vld [vmem:[#allocation3 + $0x1c8] sm:$0xff]  ;;  %v1695_v1 = vsel %vm589_vm13, %v5028_v21, %v5034_v48 }
 0x70c   :  { %1604 = vst [vmem:[#allocation3 + $0x288] sm:$0xf0] %v1588_v3  ;;  %1605 = vst [vmem:[#allocation3 + $0xb0] sm:$0xf0] %v1589_v15 }
 0x70e   :  { %v1438_v27 = vpop.permute.xlu0 %1437  ;;  %v5056_v42 = vpop.permute.xlu1 %1445 }
 0x70f   :  { %v1455_v6 = vsel %vm6285_vm7, %v1436_v11, %v1438_v27  ;;  %v1992_v11 = vld [vmem:[#allocation3 + $0x1b0] sm:$0xff] }
 0x710   :  { %1471 = vst [vmem:[#allocation3 + $0x240] sm:$0xf0] %v1455_v6  ;;  %v1977_v13 = vld [vmem:[#allocation3 + $0x90] sm:$0xff] }
 0x712   :  { %v1207_v32 = vpop.permute.xlu0 %1206  ;;  %v1440_v33 = vpop.permute.xlu1 %1439 }
 0x713   :  { %v1224_v50 = vsel %vm279_vm10, %v1205_v54, %v1207_v32  ;;  %v1456_v56 = vsel %vm6286_vm9, %v1438_v27, %v1440_v33  ;;  %v1697_v54 = vsel %vm589_vm13, %v5032_v29, %v5022_v36  ;;  %v1978_v27 = vld [vmem:[#allocation3 + $0x2d8] sm:$0xff]  ;;  %v1980_v21 = vld [vmem:[#allocation3 + $0xb0] sm:$0xff]  ;;  %vm6290_vm9 = vmmov %vm6285_vm7 }
 0x714   :  { %1240 = vst [vmem:[#allocation3 + $0x30] sm:$0xf0] %v1224_v50  ;;  %1472 = vst [vmem:[#allocation3 + $0x18] sm:$0xf0] %v1456_v56  ;;  %v6292_v56 = vmax.f32 %v4689_v20, 0.0  ;;  %v1333_v20 = vsel %vm353_vm15, %v5036_v53, %v5038_v59 }
 0x716   :  { %v1812_v39 = vpop.permute.xlu0 %1811  ;;  %v5061_v37 = vpop.permute.xlu1 %1453 }
 0x71a   :  { %v1814_v14 = vpop.permute.xlu0 %1813  ;;  %v1442_v26 = vpop.permute.xlu1 %1441 }
 0x71b   :  { %v1823_v30 = vsel %vm668_vm1, %v1812_v39, %v1814_v14  ;;  %v1824_v5 = vsel %vm668_vm1, %v1814_v14, %v1816_v31  ;;  %v1457_v47 = vsel %vm6287_vm14, %v1440_v33, %v1442_v26  ;;  %v1458_v16 = vsel %vm6285_vm7, %v1442_v26, %v1444_v41  ;;  %vm6289_vm14 = vmmov %vm6285_vm7  ;;  %v1966_v26 = vld [vmem:[#allocation3 + $0x18] sm:$0xff] }
 0x71c   :  { %1473 = vst [vmem:[#allocation3 + $0x60] sm:$0xf0] %v1457_v47  ;;  %1474 = vst [vmem:[#allocation3 + $0x220] sm:$0xf0] %v1458_v16  ;;  %2100 = vmatprep.subr.mxu1 %v1824_v5  ;;  %v1696_v31 = vsel %vm589_vm13, %v5034_v48, %v5032_v29  ;;  %v1332_v47 = vsel %vm353_vm15, %v5020_v52, %v5036_v53 }
 0x71d   :  { %2101 = vmatpush1.msra.mxu1 %v1823_v30 }
 0x71e   :  { %v1581_v62 = vpop.permute.xlu0 %1580  ;;  %v5067_v60 = vpop.permute.xlu1 %1214  ;;  %2102 = vmatprep.subr.mxu1 %v1992_v11  ;;  %v1335_v11 = vsel %vm353_vm15, %v5040_v58, %v5025_v12  ;;  %v1953_v12 = vld [vmem:[#allocation3 + $0x30] sm:$0xff] }
 0x71f   :  { %2103 = vmatpush1.msra.mxu1 %v1991_v19 }
 0x720   :  { %2104 = vmatprep.subr.mxu1 %v1697_v54 }
 0x721   :  { %2105 = vmatpush1.msra.mxu1 %v1696_v31  ;;  %v1110_v31 = vmul.f32 %v4556_v40, %v4737_v28  ;;  %v2218_v40 = vld [vmem:[#allocation9 + $0x40] sm:$0xff]  ;;  %v2221_v28 = vld [vmem:[#allocation9 + $0x58] sm:$0xff] }
 0x722   :  { %v5075_v41 = vpop.permute.xlu1 %1208  ;;  %v1450_v18 = vpop.permute.xlu0 %1449 }
 0x723   :  { %v1225_v2 = vsel %vm279_vm10, %v1207_v32, %v5075_v41  ;;  %v1979_v32 = vld [vmem:[#allocation3 + $0x288] sm:$0xff]  ;;  %v1967_v16 = vld [vmem:[#allocation3 + $0x60] sm:$0xff] }
 0x724   :  { %1241 = vst [vmem:[#allocation3 + $0xf0] sm:$0xf0] %v1225_v2 }
 0x726   :  { %v1810_v0 = vpop.permute.xlu1 %1809  ;;  %v1452_v44 = vpop.permute.xlu0 %1451 }
 0x727   :  { %v1821_v25 = vsel %vm668_vm1, %v5042_v24, %v1810_v0  ;;  %v1822_v36 = vsel %vm668_vm1, %v1810_v0, %v1812_v39  ;;  %v1462_v39 = vsel %vm6285_vm7, %v1452_v44, %v5061_v37 }
 0x728   :  { %2029 = vmatprep.subr.mxu0 %v1822_v36 }
 0x729   :  { %2030 = vmatpush1.msra.mxu0 %v1821_v25 }
 0x72a   :  { %v1579_v29 = vpop.permute.xlu1 %1578  ;;  %2031 = vmatprep.subr.mxu0 %v1990_v17  ;;  %v1219_v3 = vpop.permute.xlu0 %1218 }
 0x72b   :  { %2032 = vmatpush1.msra.mxu0 %v1989_v7  ;;  %v1591_v24 = vsel %vm515_vm3, %v1579_v29, %v1581_v62  ;;  %v1590_v22 = vsel %vm515_vm3, %v5046_v10, %v1579_v29  ;;  %v6288_v10 = vmax.f32 %v4672_v4, 0.0  ;;  %v6293_v4 = vmax.f32 %v4678_v9, 0.0  ;;  %v1968_v9 = vld [vmem:[#allocation3 + $0x220] sm:$0xff]  ;;  %v1954_v54 = vld [vmem:[#allocation3 + $0xf0] sm:$0xff] }
 0x72c   :  { %2033 = vmatprep.subr.mxu0 %v1695_v1 }
 0x72d   :  { %2034 = vmatpush1.msra.mxu0 %v1694_v49 }
 0x72e   :  { %v1583_v51 = vpop.permute.xlu1 %1582  ;;  %2035 = vmatprep.subr.mxu0 %v1591_v24  ;;  %v1223_v14 = vpop.permute.xlu0 %1222 }
 0x72f   :  { %v1592_v15 = vsel %vm515_vm3, %v1581_v62, %v1583_v51  ;;  %v1593_v48 = vsel %vm515_vm3, %v1583_v51, %v5052_v55  ;;  %2036 = vmatpush1.msra.mxu0 %v1590_v22  ;;  %v6291_v55 = vmax.f32 %v4669_v43, 0.0  ;;  %v1965_v43 = vld [vmem:[#allocation3 + $0x240] sm:$0xff]  ;;  %v1334_v62 = vsel %vm353_vm15, %v5038_v59, %v5040_v58  ;;  %v965_v58 = vld [vmem:[%s6226_s7] sm:$0xff] }
 0x730   :  { %2037 = vmatprep.subr.mxu0 %v1978_v27  ;;  %2106 = vmatprep.subr.mxu1 %v1593_v48  ;;  %v1109_v59 = vmul.f32 %v4721_v63, %v4550_v8  ;;  %v2219_v8 = vld [vmem:[#allocation9 + $0x48] sm:$0xff]  ;;  %v2220_v63 = vld [vmem:[#allocation9 + $0x50] sm:$0xff] }
 0x731   :  { %2038 = vmatpush1.msra.mxu0 %v1977_v13  ;;  %2107 = vmatpush1.msra.mxu1 %v1592_v15  ;;  %v1112_v13 = vmul.f32 %v4574_v23, %v4746_v45 }
 0x732   :  { %v1448_v6 = vpop.permute.xlu1 %1447  ;;  %2108 = vmatprep.subr.mxu1 %v1980_v21  ;;  %2039 = vmatprep.subr.mxu0 %v6288_v10  ;;  %v1213_v19 = vpop.permute.xlu0 %1212  ;;  %v1111_v21 = vmul.f32 %v4564_v57, %v4755_v61 }
 0x733   :  { %v1459_v33 = vsel %vm6289_vm14, %v5056_v42, %v1448_v6  ;;  %v1460_v50 = vsel %vm6290_vm9, %v1448_v6, %v1450_v18  ;;  %2040 = vmatpush1.msra.mxu0 %v6291_v55  ;;  %2109 = vmatpush1.msra.mxu1 %v1979_v32  ;;  %vm6294_vm14 = vmmov %vm6285_vm7  ;;  %vm2005_vm9 = vcmask 883712   ;;  %v2193_v55 = vld [vmem:[%s6227_s8 + $0x10] sm:$0xf]  ;;  %vm59_vm7 = vcmask 273544  }
 0x734   :  { %2041 = vmatprep.subr.mxu0 %v1460_v50  ;;  %2110 = vmatprep.subr.mxu1 %v6292_v56  ;;  %v1461_v42 = vsel %vm6294_vm14, %v1450_v18, %v1452_v44  ;;  %v2201_v56 = vld [vmem:[#allocation5 + $0x18] sm:$0xf] }
 0x735   :  { %2042 = vmatpush1.msra.mxu0 %v1459_v33  ;;  %2111 = vmatpush1.msra.mxu1 %v6293_v4 }
 0x736   :  { %v1217_v30 = vpop.permute.xlu1 %1216  ;;  %2112 = vmatprep.subr.mxu1 %v1462_v39  ;;  %2043 = vmatprep.subr.mxu0 %v1966_v26  ;;  %v2204_v39 = vmul.f32 %v2201_v56, %v2193_v55  ;;  %v2196_v26 = vld [vmem:[%s6228_s9 + $0x10] sm:$0xf] }
 0x737   :  { %v1228_v5 = vsel %vm279_vm10, %v5067_v60, %v1217_v30  ;;  %v1229_v37 = vsel %vm279_vm10, %v1217_v30, %v1219_v3  ;;  %2044 = vmatpush1.msra.mxu0 %v1965_v43  ;;  %2113 = vmatpush1.msra.mxu1 %v1461_v42 }
 0x738   :  { %1244 = vst [vmem:[#allocation3 + $0x128] sm:$0xff] %v1228_v5  ;;  %1245 = vst [vmem:[#allocation3 + $0xe0] sm:$0xff] %v1229_v37  ;;  %2045 = vmatprep.subr.mxu0 %v1333_v20  ;;  %2114 = vmatprep.subr.mxu1 %v1968_v9  ;;  %v2222_v20 = vld [vmem:[#allocation9 + $0x60] sm:$0xf]  ;;  %v2225_v9 = vld [vmem:[#allocation9 + $0x78] sm:$0xf] }
 0x739   :  { %2046 = vmatpush1.msra.mxu0 %v1332_v47  ;;  %2115 = vmatpush1.msra.mxu1 %v1967_v16 }
 0x73a   :  { %v1221_v60 = vpop.permute.xlu1 %1220  ;;  %2047 = vmatprep.subr.mxu0 %v1229_v37  ;;  %2116 = vmatprep.subr.mxu1 %v1335_v11  ;;  %v2224_v37 = vld [vmem:[#allocation9 + $0x70] sm:$0xf] }
 0x73b   :  { %v1230_v52 = vsel %vm279_vm10, %v1219_v3, %v1221_v60  ;;  %v1231_v53 = vsel %vm279_vm10, %v1221_v60, %v1223_v14  ;;  %2048 = vmatpush1.msra.mxu0 %v1228_v5  ;;  %2117 = vmatpush1.msra.mxu1 %v1334_v62  ;;  %v2207_v14 = vld [vmem:[#allocation4 + $0x18] sm:$0xf]  ;;  %v2223_v5 = vld [vmem:[#allocation9 + $0x68] sm:$0xf] }
 0x73c   :  { %1246 = vst [vmem:[#allocation3] sm:$0xff] %v1230_v52  ;;  %1247 = vst [vmem:[#allocation3 + $0x298] sm:$0xff] %v1231_v53  ;;  %2049 = vmatprep.subr.mxu0 %v1954_v54  ;;  %2118 = vmatprep.subr.mxu1 %v1231_v53  ;;  %v2210_v4 = vmul.f32 %v2207_v14, %v2204_v39 }
 0x73d   :  { %2050 = vmatpush1.msra.mxu0 %v1953_v12  ;;  %2119 = vmatpush1.msra.mxu1 %v1230_v52 }
 0x73e   :  { %v1211_v18 = vpop.permute.xlu1 %1210  ;;  %2051 = vmatprep.subr.mxu0 %v1110_v31  ;;  %v2213_v42 = vsub.f32 %v2196_v26, %v2210_v4  ;;  %v3849_v26 = vld [vmem:[%s6220_s1 + $0x1] ss:$8 sm:$0xf] }
 0x73f   :  { %v1226_v2 = vsel %vm279_vm10, %v5075_v41, %v1211_v18  ;;  %v1227_v0 = vsel %vm279_vm10, %v1211_v18, %v1213_v19  ;;  %v2234_v25 = vpop.permute.xlu0 %2233  ;;  %2052 = vmatpush1.msra.mxu0 %v1109_v59  ;;  %v2379_v19 = vld [vmem:[%s6220_s1] ss:$8 sm:$0xf] }
 0x740   :  { %1242 = vst [vmem:[#allocation3 + $0xf8] sm:$0xf0] %v1226_v2  ;;  %1243 = vst [vmem:[#allocation3 + $0x78] sm:$0xf0] %v1227_v0  ;;  %3845 = vmatmul.mubr.msk.f32.vlgmr.msra.gmra.mxu0 %vm2005_vm9, %v965_v58  ;;  %v2245_v36 = vmul.f32 %v2234_v25, %v2218_v40  ;;  %v2246_v44 = vmul.f32 %v2234_v25, %v2219_v8  ;;  %v2247_v17 = vmul.f32 %v2234_v25, %v2220_v63  ;;  %v6295_v63 = vmov 0.0  }
 0x741   :  { %v2248_v29 = vmul.f32 %v2234_v25, %v2221_v28  ;;  %v5181_v59 = vrot.slane %v2379_v19, %v4051_v38  ;;  %v3852_v8 = vld [vmem:[%s6220_s1 + $0x5] ss:$8 sm:$0xf]  ;;  %60 = vst.msk [vmem:[#allocation2 + $0x70] sm:$0xf] %vm59_vm7, %v6295_v63 }
 0x743   :  { %v2261_v7 = vpop.permute.xlu0 %2260 }
 0x744   :  { %v2273_v1 = vadd.f32 %v2261_v7, %v2246_v44  ;;  %v2275_v49 = vadd.f32 %v2261_v7, %v2248_v29  ;;  %v2272_v41 = vadd.f32 %v2261_v7, %v2245_v36  ;;  %v2274_v24 = vadd.f32 %v2261_v7, %v2247_v17 }
 0x745   :  { %v5198_v36 = vrot.slane %v2379_v19, %v4042_v35  ;;  %v5201_v44 = vrot.slane %v2379_v19, %v4080_v46  ;;  %v2946_v29 = vrot.slane %v3852_v8, %v4051_v38  ;;  %v2942_v7 = vrot.slane %v3852_v8, %v4040_v34 }
 0x746   :  { %v2285_v22 = vmax.f32 %v2273_v1, 0.0  ;;  %v2287_v51 = vmax.f32 %v2275_v49, 0.0  ;;  %v2284_v3 = vmax.f32 %v2272_v41, 0.0  ;;  %v2286_v15 = vmax.f32 %v2274_v24, 0.0 }
 0x747   :  { %v1956_v48 = vld [vmem:[#allocation3 + $0x78] sm:$0xff]  ;;  %v5216_v41 = vrot.slane %v2379_v19, %v4040_v34 }
 0x748   :  { %v1955_v27 = vld [vmem:[#allocation3 + $0xf8] sm:$0xff]  ;;  %2314 = vrot.lane.b32.xlu0 %v2285_v22, %s3952_s27  ;;  %2915 = vst [vmem:[#allocation3 + $0x2a0] sm:$0xff] %v2285_v22  ;;  %2120 = vmatprep.subr.mxu1 %v1956_v48  ;;  %2917 = vst [vmem:[#allocation3 + $0x1e0] sm:$0xff] %v2287_v51 }
 0x749   :  { %2914 = vst [vmem:[#allocation3 + $0xa8] sm:$0xff] %v2284_v3  ;;  %2916 = vst [vmem:[#allocation3 + $0x210] sm:$0xff] %v2286_v15  ;;  %2121 = vmatpush1.msra.mxu1 %v1955_v27  ;;  %v3853_v27 = vld [vmem:[%s6220_s1 + $0x6] ss:$8 sm:$0xf] }
 0x74a   :  { %2122 = vmatprep.subr.mxu1 %v1112_v13  ;;  %v3116_v13 = vrot.slane %v3853_v27, %v4051_v38 }
 0x74b   :  { %2123 = vmatpush1.msra.mxu1 %v1111_v21  ;;  %v3112_v21 = vrot.slane %v3853_v27, %v4040_v34 }
 0x74c   :  { %2318 = vrot.lane.b32.xlu0 %v2287_v51, %s3952_s27  ;;  %3848 = vmatmul.mubr.msk.f32.vlgmr.msra.gmra.mxu1 %vm2005_vm9, %v965_v58  ;;  %vm6302_vm9 = vcmask 130048  }
 0x74d   :  { %vm6304_vm7 = vmmov %vm6302_vm9 }
 0x7ba   :  { %v5143_v6 = vpop.permute.xlu0 %2314 }
 0x7be   :  { %v5145_v10 = vpop.permute.xlu0 %2318 }
 0x7bf   :  { %2361 = vst.msk [vmem:[#allocation2 + $0x48] sm:$0xff] %vm51_vm2, %v5145_v10 }
 0x800   :  { %v5149_v23 = vpop.f32.mrf.mxu0 }
 0x801   :  { %2163 = vst [vmem:[#allocation9 + $0x20] sm:$0xff] %v5149_v23 }
 0x802   :  { %v5152_v45 = vpop.f32.mrf.mxu0 }
 0x803   :  { %2164 = vst [vmem:[#allocation9 + $0x28] sm:$0xff] %v5152_v45  ;;  %v2167_v57 = vadd.f32 %v5152_v45, %v5149_v23 }
 0x80c   :  { %v5157_v61 = vpop.f32.mrf.mxu1 }
 0x80d   :  { %2165 = vst [vmem:[#allocation9 + $0x30] sm:$0xff] %v5157_v61  ;;  %v2168_v32 = vadd.f32 %v2167_v57, %v5157_v61  ;;  %v3851_v57 = vld [vmem:[%s6220_s1 + $0x3] ss:$8 sm:$0xf] }
 0x80e   :  { %v5161_v33 = vpop.f32.mrf.mxu1  ;;  %v2772_v55 = vrot.slane %v3851_v57, %v4080_v46  ;;  %v2768_v56 = vrot.slane %v3851_v57, %v4042_v35 }
 0x80f   :  { %2166 = vst [vmem:[#allocation9 + $0x38] sm:$0xff] %v5161_v33  ;;  %v2169_v50 = vadd.f32 %v2168_v32, %v5161_v33  ;;  %v2764_v32 = vrot.slane %v3851_v57, %v4051_v38 }
 0x811   :  { %2170 = vadd.xlane.f32.xlu1 %v2169_v50  ;;  %v2760_v50 = vrot.slane %v3851_v57, %v4040_v34 }
 0x822   :  { %2238 = vperm.xlu1 %3883, %v2204_v39   ;;  %v3850_v39 = vld [vmem:[%s6220_s1 + $0x2] ss:$8 sm:$0xf] }
 0x823   :  { %v2615_v14 = vrot.slane %v3850_v39, %v4040_v34  ;;  %v2623_v4 = vrot.slane %v3850_v39, %v4042_v35 }
 0x826   :  { %2265 = vperm.xlu1 %3883, %v2213_v42   ;;  %v2445_v42 = vrot.slane %v3849_v26, %v4040_v34 }
 0x82a   :  { %2312 = vrot.lane.b32.xlu1 %v2284_v3, %s3952_s27  ;;  %v2954_v3 = vrot.slane %v3852_v8, %v4080_v46 }
 0x82e   :  { %2316 = vrot.lane.b32.xlu1 %v2286_v15, %s3952_s27  ;;  %v2950_v15 = vrot.slane %v3852_v8, %v4042_v35 }
 0x89a   :  { %v2171_v30 = vpop.xlane.xlu1 %2170 }
 0x89b   :  { %v5173_v43 = vmul.f32 0.001953125, %v2171_v30  ;;  %v2453_v30 = vrot.slane %v3849_v26, %v4042_v35 }
 0x89d   :  { %2187 = vst.msk [vmem:[#allocation4 + $0x8] sm:$0xff] %vm245_vm12, %v5173_v43 }
 0x89e   :  { %v2239_v47 = vpop.permute.xlu1 %2238 }
 0x89f   :  { %v2249_v16 = vmul.f32 %v2239_v47, %v2222_v20  ;;  %v2250_v11 = vmul.f32 %v2239_v47, %v2223_v5  ;;  %v2251_v62 = vmul.f32 %v2239_v47, %v2224_v37  ;;  %v2252_v60 = vmul.f32 %v2239_v47, %v2225_v9  ;;  %v3855_v20 = vld [vmem:[%s6220_s1 + $0x20] ss:$8 sm:$0xf] }
 0x8a0   :  { %v2173_v5 = vsub.f32 %v5149_v23, %v5173_v43  ;;  %v2174_v37 = vsub.f32 %v5152_v45, %v5173_v43  ;;  %v3427_v9 = vrot.slane %v3855_v20, %v4040_v34  ;;  %v3854_v23 = vld [vmem:[%s6220_s1 + $0x7] ss:$8 sm:$0xf]  ;;  %v2176_v45 = vsub.f32 %v5161_v33, %v5173_v43 }
 0x8a2   :  { %v2266_v52 = vpop.permute.xlu1 %2265  ;;  %v2177_v47 = vmul.f32 %v2173_v5, %v2173_v5 }
 0x8a3   :  { %v2277_v53 = vadd.f32 %v2266_v52, %v2250_v11  ;;  %v2276_v54 = vadd.f32 %v2266_v52, %v2249_v16  ;;  %v2279_v12 = vadd.f32 %v2266_v52, %v2252_v60  ;;  %v2278_v31 = vadd.f32 %v2266_v52, %v2251_v62 }
 0x8a4   :  { %v2178_v16 = vmul.f32 %v2174_v37, %v2174_v37  ;;  %v2175_v11 = vsub.f32 %v5157_v61, %v5173_v43  ;;  %v3435_v62 = vrot.slane %v3855_v20, %v4042_v35  ;;  %v3257_v52 = vrot.slane %v3854_v23, %v4040_v34 }
 0x8a5   :  { %v2289_v58 = vmax.f32 %v2277_v53, 0.0  ;;  %v2288_v18 = vmax.f32 %v2276_v54, 0.0  ;;  %v2291_v2 = vmax.f32 %v2279_v12, 0.0  ;;  %v2290_v0 = vmax.f32 %v2278_v31, 0.0 }
 0x8a6   :  { %v2313_v25 = vpop.permute.xlu1 %2312  ;;  %v2181_v60 = vadd.f32 %v2178_v16, %v2177_v47  ;;  %v2179_v19 = vmul.f32 %v2175_v11, %v2175_v11  ;;  %v2180_v54 = vmul.f32 %v2176_v45, %v2176_v45  ;;  %v3265_v61 = vrot.slane %v3854_v23, %v4042_v35 }
 0x8a7   :  { %v5185_v40 = vsel %vm51_vm2, %v2313_v25, %v5143_v6  ;;  %2357 = vst.msk [vmem:[#allocation2 + $0x28] sm:$0xff] %vm1068_vm11, %v2313_v25  ;;  %2322 = vrot.lane.b32.xlu0 %v2289_v58, %s3952_s27  ;;  %2919 = vst [vmem:[#allocation3 + $0x1e8] sm:$0xf] %v2289_v58  ;;  %2320 = vrot.lane.b32.xlu1 %v2288_v18, %s3952_s27  ;;  %v2619_v31 = vrot.slane %v3850_v39, %v4051_v38 }
 0x8a8   :  { %2918 = vst [vmem:[#allocation3 + $0x2c8] sm:$0xf] %v2288_v18  ;;  %2921 = vst [vmem:[#allocation3 + $0x248] sm:$0xf] %v2291_v2  ;;  %v2406_v28 = vmul.f32 %v5181_v59, %v5185_v40  ;;  %v2182_v53 = vadd.f32 %v2181_v60, %v2179_v19  ;;  %v2627_v43 = vrot.slane %v3850_v39, %v4080_v46 }
 0x8a9   :  { %2920 = vst [vmem:[#allocation3 + $0xe8] sm:$0xf] %v2290_v0  ;;  %2358 = vst [vmem:[#allocation2 + $0x30] sm:$0xff] %v5185_v40  ;;  %v2449_v34 = vrot.slane %v3849_v26, %v4051_v38  ;;  %v2457_v58 = vrot.slane %v3849_v26, %v4080_v46  ;;  %v3439_v18 = vrot.slane %v3855_v20, %v4080_v46 }
 0x8aa   :  { %v2317_v17 = vpop.permute.xlu1 %2316  ;;  %2418 = vst [vmem:[#allocation3 + $0xf0] sm:$0xff] %v2406_v28  ;;  %v2183_v12 = vadd.f32 %v2182_v53, %v2180_v54 }
 0x8ab   :  { %v5207_v1 = vsel %vm51_vm2, %v5143_v6, %v2317_v17  ;;  %v5211_v49 = vsel %vm51_vm2, %v2317_v17, %v5145_v10  ;;  %2326 = vrot.lane.b32.xlu0 %v2291_v2, %s3952_s27  ;;  %2324 = vrot.lane.b32.xlu1 %v2290_v0, %s3952_s27  ;;  %v3124_v6 = vrot.slane %v3853_v27, %v4080_v46 }
 0x8ac   :  { %2359 = vst [vmem:[#allocation2 + $0x38] sm:$0xff] %v5207_v1  ;;  %2360 = vst [vmem:[#allocation2 + $0x40] sm:$0xff] %v5211_v49  ;;  %v2407_v24 = vmul.f32 %v5198_v36, %v5207_v1  ;;  %v2408_v22 = vmul.f32 %v5201_v44, %v5211_v49  ;;  %v3120_v10 = vrot.slane %v3853_v27, %v4042_v35 }
 0x8ad   :  { %v3431_v35 = vrot.slane %v3855_v20, %v4051_v38  ;;  %v3261_v2 = vrot.slane %v3854_v23, %v4051_v38  ;;  %v3269_v0 = vrot.slane %v3854_v23, %v4080_v46 }
 0x8ae   :  { %2419 = vst [vmem:[#allocation3 + $0xf8] sm:$0xff] %v2407_v24  ;;  %2420 = vst [vmem:[#allocation3 + $0x78] sm:$0xff] %v2408_v22  ;;  %v3097_v51 = vld [vmem:[#allocation2 + $0x28] sm:$0xff] }
 0x8af   :  { %2957 = vrot.lane.b32.xlu0 %v2946_v29, %s3945_s12  ;;  %2955 = vrot.lane.b32.xlu1 %v2942_v7, %s3945_s12  ;;  %v2405_v48 = vmul.f32 %v3097_v51, %v5216_v41 }
 0x8b1   :  { %2417 = vst [vmem:[#allocation3 + $0x30] sm:$0xff] %v2405_v48 }
 0x8b3   :  { %2961 = vrot.lane.b32.xlu0 %v2954_v3, %s3945_s12  ;;  %2959 = vrot.lane.b32.xlu1 %v2950_v15, %s3945_s12 }
 0x8b7   :  { %3127 = vrot.lane.b32.xlu0 %v3116_v13, %s3946_s13  ;;  %3125 = vrot.lane.b32.xlu1 %v3112_v21, %s3946_s13 }
 0x8bb   :  { %3131 = vrot.lane.b32.xlu0 %v3124_v6, %s3946_s13  ;;  %3129 = vrot.lane.b32.xlu1 %v3120_v10, %s3946_s13  ;;  %v5323_v6 = vld [vmem:[#allocation2 + $0x28] sm:$0xff] }
 0x8bf   :  { %2775 = vrot.lane.b32.xlu0 %v2764_v32, %s3947_s18  ;;  %2773 = vrot.lane.b32.xlu1 %v2760_v50, %s3947_s18 }
 0x8c3   :  { %2779 = vrot.lane.b32.xlu0 %v2772_v55, %s3947_s18  ;;  %2777 = vrot.lane.b32.xlu1 %v2768_v56, %s3947_s18  ;;  %v5332_v56 = vld [vmem:[#allocation2 + $0x48] sm:$0xff] }
 0x8c7   :  { %2628 = vrot.lane.b32.xlu1 %v2615_v14, %s3950_s4 }
 0x8cb   :  { %2632 = vrot.lane.b32.xlu1 %v2623_v4, %s3950_s4 }
 0x8cf   :  { %2458 = vrot.lane.b32.xlu1 %v2445_v42, %s3949_s22 }
 0x8d3   :  { %2462 = vrot.lane.b32.xlu1 %v2453_v30, %s3949_s22 }
 0x8d7   :  { %3440 = vrot.lane.b32.xlu1 %v3427_v9, %s3944_s26 }
 0x8db   :  { %3444 = vrot.lane.b32.xlu1 %v3435_v62, %s3944_s26 }
 0x8df   :  { %3270 = vrot.lane.b32.xlu1 %v3257_v52, %s3948_s19 }
 0x8e2   :  { %2184 = vadd.xlane.f32.xlu0 %v2183_v12 }
 0x8e3   :  { %3274 = vrot.lane.b32.xlu1 %v3265_v61, %s3948_s19 }
 0x8f8   :  { %2630 = vrot.lane.b32.xlu0 %v2619_v31, %s3950_s4 }
 0x8fc   :  { %2634 = vrot.lane.b32.xlu0 %v2627_v43, %s3950_s4 }
 0x900   :  { %2460 = vrot.lane.b32.xlu0 %v2449_v34, %s3949_s22 }
 0x904   :  { %2464 = vrot.lane.b32.xlu0 %v2457_v58, %s3949_s22 }
 0x908   :  { %3442 = vrot.lane.b32.xlu0 %v3431_v35, %s3944_s26 }
 0x90c   :  { %3446 = vrot.lane.b32.xlu0 %v3439_v18, %s3944_s26 }
 0x910   :  { %3272 = vrot.lane.b32.xlu0 %v3261_v2, %s3948_s19 }
 0x914   :  { %3276 = vrot.lane.b32.xlu0 %v3269_v0, %s3948_s19 }
 0x919   :  { %v2323_v25 = vpop.permute.xlu0 %2322  ;;  %v2321_v8 = vpop.permute.xlu1 %2320 }
 0x91a   :  { %v2334_v63 = vsel %vm51_vm2, %v2321_v8, %v2323_v25  ;;  %2362 = vst.msk [vmem:[#allocation2 + $0x50] sm:$0xf] %vm173_vm5, %v2321_v8  ;;  %vm6296_vm5 = vcmask 146432  }
 0x91b   :  { %2363 = vst [vmem:[#allocation2 + $0x58] sm:$0xf] %v2334_v63 }
 0x91d   :  { %v2327_v28 = vpop.permute.xlu0 %2326  ;;  %v2325_v17 = vpop.permute.xlu1 %2324 }
 0x91e   :  { %2366 = vst.msk [vmem:[#allocation2 + $0x70] sm:$0xf] %vm54_vm4, %v2327_v28  ;;  %v2335_v29 = vsel %vm51_vm2, %v2323_v25, %v2325_v17  ;;  %v2336_v38 = vsel %vm51_vm2, %v2325_v17, %v2327_v28  ;;  %vm6298_vm4 = vmmov %vm6296_vm5 }
 0x91f   :  { %2364 = vst [vmem:[#allocation2 + $0x60] sm:$0xf] %v2335_v29  ;;  %2365 = vst [vmem:[#allocation2 + $0x68] sm:$0xf] %v2336_v38 }
 0x920   :  { %vm6299_vm14 = vmmov %vm6298_vm4 }
 0x921   :  { %v2375_v46 = vld [vmem:[#allocation2 + $0x50] sm:$0xf]  ;;  %v2958_v7 = vpop.permute.xlu0 %2957  ;;  %v5310_v24 = vpop.permute.xlu1 %2955 }
 0x922   :  { %v2376_v22 = vld [vmem:[#allocation2 + $0x58] sm:$0xf]  ;;  %v2409_v51 = vmul.f32 %v5216_v41, %v2375_v46  ;;  %v5315_v3 = vsel %vm6296_vm5, %v5310_v24, %v2958_v7  ;;  %v2932_v21 = vld [vmem:[#allocation2 + $0x50] sm:$0xf]  ;;  %v5330_v55 = vmul.f32 %v5310_v24, %v5323_v6  ;;  %vm6305_vm5 = vmmov %vm6304_vm7 }
 0x923   :  { %v2933_v15 = vld [vmem:[#allocation2 + $0x58] sm:$0xf]  ;;  %v2410_v48 = vmul.f32 %v5181_v59, %v2376_v22  ;;  %v5320_v27 = vmul.f32 %v5315_v3, %v5185_v40  ;;  %v2981_v20 = vmul.f32 %v5310_v24, %v2932_v21 }
 0x924   :  { %v2982_v13 = vmul.f32 %v5315_v3, %v2933_v15  ;;  %2421 = vst [vmem:[#allocation3 + $0x128] sm:$0xf] %v2409_v51  ;;  %v6253_v31 = vrot.slane %v5330_v55, 4  ;;  %v2751_v29 = vld [vmem:[#allocation2 + $0x58] sm:$0xf] }
 0x925   :  { %6297 = vst [vmem:[#allocation12_spill] sm:$0xff] %v5320_v27  ;;  %2422 = vst [vmem:[#allocation3 + $0xe0] sm:$0xf] %v2410_v48  ;;  %v5325_v10 = vpop.permute.xlu0 %2961  ;;  %v2960_v57 = vpop.permute.xlu1 %2959  ;;  %v6249_v32 = vrot.slane %v5320_v27, 4  ;;  %v2936_v39 = vld [vmem:[#allocation2 + $0x70] sm:$0xf] }
 0x926   :  { %v3018_v50 = vrot.slane %v2982_v13, 4  ;;  %v2377_v14 = vld [vmem:[#allocation2 + $0x60] sm:$0xf]  ;;  %v2378_v4 = vld [vmem:[#allocation2 + $0x68] sm:$0xf]  ;;  %v5335_v42 = vsel %vm6298_vm4, %v2958_v7, %v2960_v57  ;;  %v5339_v30 = vsel %vm6299_vm14, %v2960_v57, %v5325_v10  ;;  %v5344_v5 = vmul.f32 %v5325_v10, %v5332_v56 }
 0x927   :  { %v2934_v26 = vld [vmem:[#allocation2 + $0x60] sm:$0xf]  ;;  %v2411_v37 = vmul.f32 %v5198_v36, %v2377_v14  ;;  %v2412_v9 = vmul.f32 %v5201_v44, %v2378_v4  ;;  %v2935_v47 = vld [vmem:[#allocation2 + $0x68] sm:$0xf]  ;;  %v5350_v16 = vmul.f32 %v5335_v42, %v5207_v1  ;;  %v5354_v11 = vmul.f32 %v5339_v30, %v5211_v49 }
 0x928   :  { %v2983_v62 = vmul.f32 %v5335_v42, %v2934_v26  ;;  %v2984_v23 = vmul.f32 %v5339_v30, %v2935_v47  ;;  %v3019_v60 = vsel %vm73_vm0, %v6249_v32, %v3018_v50  ;;  %v2985_v45 = vmul.f32 %v5325_v10, %v2936_v39  ;;  %v2752_v48 = vld [vmem:[#allocation2 + $0x60] sm:$0xf]  ;;  %v2753_v13 = vld [vmem:[#allocation2 + $0x68] sm:$0xf] }
 0x929   :  { %6300 = vst [vmem:[#allocation13_spill] sm:$0xff] %v5350_v16  ;;  %6301 = vst [vmem:[#allocation14_spill] sm:$0xff] %v5354_v11  ;;  %v6247_v19 = vrot.slane %v5350_v16, 4  ;;  %v6248_v52 = vrot.slane %v5354_v11, 4  ;;  %3048 = vrot.lane.b32.xlu0 %v3019_v60, %s3956_s16  ;;  %v5365_v53 = vpop.permute.xlu0 %3127  ;;  %v5367_v54 = vpop.permute.xlu1 %3125  ;;  %v3016_v43 = vrot.slane %v2981_v20, 4  ;;  %v6251_v35 = vrot.slane %v5344_v5, 4 }
 0x92a   :  { %2423 = vst [vmem:[#allocation3] sm:$0xf] %v2411_v37  ;;  %2424 = vst [vmem:[#allocation3 + $0x298] sm:$0xf] %v2412_v9  ;;  %v3020_v61 = vrot.slane %v2983_v62, 4  ;;  %v3022_v12 = vrot.slane %v2984_v23, 4 }
 0x92b   :  { %v3024_v18 = vrot.slane %v2985_v45, 4  ;;  %v3017_v25 = vsel %vm73_vm0, %v6253_v31, %v3016_v43  ;;  %v2750_v20 = vld [vmem:[#allocation2 + $0x50] sm:$0xf]  ;;  %vm6326_vm4 = vcmask 916480  }
 0x92c   :  { %v3023_v34 = vsel %vm73_vm0, %v6248_v52, %v3022_v12  ;;  %v3021_v58 = vsel %vm73_vm0, %v6247_v19, %v3020_v61  ;;  %v2754_v37 = vld [vmem:[#allocation2 + $0x70] sm:$0xf]  ;;  %vm6329_vm14 = vmmov %vm6326_vm4 }
 0x92d   :  { %3052 = vrot.lane.b32.xlu0 %v3023_v34, %s3956_s16  ;;  %3050 = vrot.lane.b32.xlu1 %v3021_v58, %s3956_s16  ;;  %v5379_v2 = vpop.permute.xlu0 %3131  ;;  %v5381_v0 = vpop.permute.xlu1 %3129  ;;  %v3025_v8 = vsel %vm73_vm0, %v6251_v35, %v3024_v18  ;;  %v2435_v31 = vld [vmem:[#allocation2 + $0x50] sm:$0xf] }
 0x92e   :  { %v3251_v11 = vld [vmem:[#allocation2 + $0x70] sm:$0xf] }
 0x931   :  { %3046 = vrot.lane.b32.xlu0 %v3017_v25, %s3956_s16  ;;  %3054 = vrot.lane.b32.xlu1 %v3025_v8, %s3956_s16  ;;  %v2776_v63 = vpop.permute.xlu0 %2775  ;;  %v5391_v28 = vpop.permute.xlu1 %2773 }
 0x932   :  { %v5395_v17 = vsel %vm6302_vm9, %v5391_v28, %v2776_v63  ;;  %v5431_v47 = vmul.f32 %v5323_v6, %v5391_v28  ;;  %v2799_v62 = vmul.f32 %v5391_v28, %v2750_v20  ;;  %v2607_v20 = vld [vmem:[#allocation2 + $0x60] sm:$0xf]  ;;  %vm6332_vm9 = vmmov %vm6326_vm4 }
 0x933   :  { %v5399_v38 = vmul.f32 %v5395_v17, %v5185_v40  ;;  %v2800_v46 = vmul.f32 %v5395_v17, %v2751_v29 }
 0x934   :  { %v6250_v25 = vrot.slane %v5431_v47, 4  ;;  %v2834_v8 = vrot.slane %v2799_v62, 4 }
 0x935   :  { %6303 = vst [vmem:[#allocation15_spill] sm:$0xff] %v5399_v38  ;;  %v5402_v7 = vpop.permute.xlu0 %2779  ;;  %v2778_v22 = vpop.permute.xlu1 %2777  ;;  %v6244_v51 = vrot.slane %v5399_v38, 4  ;;  %v2836_v15 = vrot.slane %v2800_v46, 4  ;;  %v3420_v38 = vld [vmem:[#allocation2 + $0x68] sm:$0xf] }
 0x936   :  { %v5406_v21 = vsel %vm6304_vm7, %v2776_v63, %v2778_v22  ;;  %v5410_v57 = vsel %vm6305_vm5, %v2778_v22, %v5402_v7  ;;  %v5414_v50 = vmul.f32 %v5332_v56, %v5402_v7  ;;  %v2803_v23 = vmul.f32 %v5402_v7, %v2754_v37  ;;  %vm6335_vm7 = vmmov %vm6326_vm4 }
 0x937   :  { %v5418_v39 = vmul.f32 %v5406_v21, %v5207_v1  ;;  %v5422_v14 = vmul.f32 %v5410_v57, %v5211_v49  ;;  %v2801_v4 = vmul.f32 %v5406_v21, %v2752_v48  ;;  %v2802_v26 = vmul.f32 %v5410_v57, %v2753_v13 }
 0x938   :  { %v2837_v9 = vsel %vm73_vm0, %v6244_v51, %v2836_v15  ;;  %v6252_v58 = vrot.slane %v5414_v50, 4  ;;  %v2842_v18 = vrot.slane %v2803_v23, 4  ;;  %v2835_v29 = vsel %vm73_vm0, %v6250_v25, %v2834_v8 }
 0x939   :  { %6306 = vst [vmem:[#allocation16_spill] sm:$0xff] %v5418_v39  ;;  %6307 = vst [vmem:[#allocation17_spill] sm:$0xff] %v5422_v14  ;;  %v6246_v60 = vrot.slane %v5418_v39, 4  ;;  %v6243_v45 = vrot.slane %v5422_v14, 4  ;;  %v2838_v61 = vrot.slane %v2801_v4, 4  ;;  %v2840_v12 = vrot.slane %v2802_v26, 4  ;;  %2866 = vrot.lane.b32.xlu1 %v2837_v9, %s3958_s20  ;;  %v5456_v46 = vpop.permute.xlu1 %2628 }
 0x93a   :  { %v2843_v63 = vsel %vm73_vm0, %v6252_v58, %v2842_v18  ;;  %v2606_v26 = vld [vmem:[#allocation2 + $0x58] sm:$0xf]  ;;  %v2608_v18 = vld [vmem:[#allocation2 + $0x68] sm:$0xf]  ;;  %vm6341_vm5 = vcmask 769024  }
 0x93b   :  { %v2841_v43 = vsel %vm73_vm0, %v6243_v45, %v2840_v12  ;;  %v2839_v34 = vsel %vm73_vm0, %v6246_v60, %v2838_v61  ;;  %v2438_v58 = vld [vmem:[#allocation2 + $0x68] sm:$0xf] }
 0x93c   :  { %2868 = vrot.lane.b32.xlu0 %v2839_v34, %s3958_s20 }
 0x93d   :  { %2870 = vrot.lane.b32.xlu1 %v2841_v43, %s3958_s20  ;;  %v2633_v22 = vpop.permute.xlu1 %2632  ;;  %v2609_v43 = vld [vmem:[#allocation2 + $0x70] sm:$0xf] }
 0x940   :  { %2872 = vrot.lane.b32.xlu0 %v2843_v63, %s3958_s20 }
 0x941   :  { %2864 = vrot.lane.b32.xlu1 %v2835_v29, %s3958_s20  ;;  %v5465_v62 = vpop.permute.xlu1 %2458 }
 0x942   :  { %v5560_v14 = vmul.f32 %v5323_v6, %v5465_v62 }
 0x944   :  { %6311 = vst [vmem:[#allocation21_spill] sm:$0xff] %v5560_v14 }
 0x945   :  { %v2463_v29 = vpop.permute.xlu1 %2462 }
 0x949   :  { %v5523_v60 = vpop.permute.xlu1 %3440 }
 0x96b   :  { %v2185_v15 = vpop.xlane.xlu0 %2184 }
 0x96c   :  { %v2186_v48 = vmul.f32 0.001953125, %v2185_v15 }
 0x96e   :  { %v2188_v13 = vadd.f32 1e-05, %v2186_v48 }
 0x96f   :  { %v2631_v4 = vpop.permute.xlu0 %2630 }
 0x970   :  { %3891 = vrsqrt.f32 %v2188_v13  ;;  %v5460_v37 = vsel %vm324_vm8, %v5456_v46, %v2631_v4  ;;  %v5463_v9 = vsel %vm324_vm8, %v2631_v4, %v2633_v22  ;;  %v2605_v13 = vld [vmem:[#allocation2 + $0x50] sm:$0xf] }
 0x971   :  { %v2655_v23 = vmul.f32 %v5460_v37, %v2606_v26  ;;  %v2656_v61 = vmul.f32 %v5463_v9, %v2607_v20  ;;  %v2651_v4 = vmul.f32 %v5463_v9, %v5207_v1  ;;  %v2654_v26 = vmul.f32 %v5456_v46, %v2605_v13 }
 0x973   :  { %v5469_v12 = vpop.permute.xlu0 %2634  ;;  %2696 = vrot.lane.b32.xlu1 %v2655_v23, %s3955_s15  ;;  %2698 = vrot.lane.b32.xlu0 %v2656_v61, %s3955_s15 }
 0x974   :  { %v5475_v34 = vsel %vm324_vm8, %v2633_v22, %v5469_v12  ;;  %v2658_v8 = vmul.f32 %v5469_v12, %v2609_v43  ;;  %v2437_v22 = vld [vmem:[#allocation2 + $0x60] sm:$0xf]  ;;  %v2650_v43 = vmul.f32 %v5460_v37, %v5185_v40  ;;  %vm6313_vm8 = vcmask 269312  }
 0x975   :  { %v2657_v63 = vmul.f32 %v5475_v34, %v2608_v18  ;;  %v2653_v18 = vmul.f32 %v5332_v56, %v5469_v12  ;;  %v2652_v19 = vmul.f32 %v5475_v34, %v5211_v49 }
 0x977   :  { %v2461_v15 = vpop.permute.xlu0 %2460  ;;  %2700 = vrot.lane.b32.xlu1 %v2657_v63, %s3955_s15  ;;  %2702 = vrot.lane.b32.xlu0 %v2658_v8, %s3955_s15 }
 0x978   :  { %v5482_v48 = vsel %vm245_vm12, %v2461_v15, %v2463_v29  ;;  %v5513_v51 = vsel %vm245_vm12, %v5465_v62, %v2461_v15 }
 0x979   :  { %v5489_v20 = vmul.f32 %v5482_v48, %v5207_v1  ;;  %v2486_v23 = vmul.f32 %v5482_v48, %v2437_v22  ;;  %v2191_v22 = vld [vmem:[%s6227_s8] sm:$0xff]  ;;  %v5527_v15 = vmul.f32 %v5513_v51, %v5185_v40 }
 0x97b   :  { %6308 = vst [vmem:[#allocation18_spill] sm:$0xff] %v5489_v20  ;;  %2694 = vrot.lane.b32.xlu1 %v2654_v26, %s3955_s15  ;;  %2688 = vrot.lane.b32.xlu0 %v2651_v4, %s3955_s15  ;;  %v6245_v8 = vrot.slane %v5489_v20, 4  ;;  %v2523_v63 = vrot.slane %v2486_v23, 4  ;;  %v5500_v13 = vpop.permute.xlu0 %2464  ;;  %v2439_v23 = vld [vmem:[#allocation2 + $0x70] sm:$0xf]  ;;  %6309 = vst [vmem:[#allocation19_spill] sm:$0xff] %v5527_v15 }
 0x97d   :  { %v3892_v61 = vpop.eup %3891  ;;  %v2524_v4 = vsel %vm73_vm0, %v6245_v8, %v2523_v63  ;;  %v5520_v63 = vmul.f32 %v5332_v56, %v5500_v13 }
 0x97e   :  { %2190 = vst.msk [vmem:[#allocation5 + $0x8] sm:$0xff] %vm245_vm12, %v3892_v61 }
 0x97f   :  { %2686 = vrot.lane.b32.xlu1 %v2650_v43, %s3955_s15  ;;  %2692 = vrot.lane.b32.xlu0 %v2653_v18, %s3955_s15  ;;  %v3443_v26 = vpop.permute.xlu0 %3442  ;;  %v2194_v43 = vld [vmem:[%s6228_s9] sm:$0xff]  ;;  %v6255_v25 = vrot.slane %v5520_v63, 4 }
 0x980   :  { %v2205_v18 = vld [vmem:[#allocation4 + $0x8] sm:$0xff] }
 0x983   :  { %2553 = vrot.lane.b32.xlu0 %v2524_v4, %s3959_s21  ;;  %v2488_v4 = vmul.f32 %v5500_v13, %v2439_v23  ;;  %v5532_v32 = vpop.permute.xlu0 %3446 }
 0x985   :  { %v2199_v61 = vld [vmem:[#allocation5 + $0x8] sm:$0xff]  ;;  %v2527_v23 = vrot.slane %v2488_v4, 4  ;;  %v3418_v4 = vld [vmem:[#allocation2 + $0x58] sm:$0xf] }
 0x986   :  { %v2202_v45 = vmul.f32 %v2199_v61, %v2191_v22  ;;  %v2436_v22 = vld [vmem:[#allocation2 + $0x58] sm:$0xf] }
 0x987   :  { %v2485_v61 = vmul.f32 %v5513_v51, %v2436_v22  ;;  %v2649_v22 = vmul.f32 %v5323_v6, %v5456_v46 }
 0x988   :  { %2228 = vperm.xlu1 %3883, %v2202_v45   ;;  %v2208_v8 = vmul.f32 %v2205_v18, %v2202_v45  ;;  %v5537_v45 = vsel %vm245_vm12, %v2463_v29, %v5500_v13  ;;  %v2528_v29 = vsel %vm73_vm0, %v6255_v25, %v2527_v23  ;;  %v2484_v23 = vmul.f32 %v5465_v62, %v2435_v31 }
 0x989   :  { %v2521_v35 = vrot.slane %v2485_v61, 4  ;;  %v3273_v61 = vpop.permute.xlu0 %3272 }
 0x98a   :  { %v2211_v52 = vsub.f32 %v2194_v43, %v2208_v8  ;;  %v3445_v8 = vpop.permute.xlu1 %3444  ;;  %v5545_v43 = vsel %vm713_vm6, %v5523_v60, %v3443_v26 }
 0x98b   :  { %v3467_v18 = vmul.f32 %v5545_v43, %v3418_v4  ;;  %v5565_v25 = vsel %vm713_vm6, %v3445_v8, %v5532_v32  ;;  %v5586_v16 = vsel %vm713_vm6, %v3443_v26, %v3445_v8  ;;  %v3249_v26 = vld [vmem:[#allocation2 + $0x60] sm:$0xf]  ;;  %vm6320_vm6 = vmmov %vm6313_vm8 }
 0x98c   :  { %2690 = vrot.lane.b32.xlu1 %v2652_v19, %s3955_s15  ;;  %2255 = vperm.xlu0 %3884, %v2211_v52   ;;  %v5552_v19 = vmul.f32 %v5537_v45, %v5211_v49  ;;  %v2487_v52 = vmul.f32 %v5537_v45, %v2438_v58  ;;  %v6312_v58 = vrot.slane %v5527_v15, 4  ;;  %v3469_v31 = vmul.f32 %v5565_v25, %v3420_v38  ;;  %vm6324_vm12 = vmmov %vm6320_vm6 }
 0x98d   :  { %v5576_v39 = vpop.permute.xlu0 %3276 }
 0x98e   :  { %6310 = vst [vmem:[#allocation20_spill] sm:$0xff] %v5552_v19  ;;  %v2525_v20 = vrot.slane %v2487_v52, 4  ;;  %v5573_v4 = vpop.permute.xlu1 %3270 }
 0x990   :  { %2684 = vrot.lane.b32.xlu1 %v2649_v22, %s3955_s15  ;;  %2557 = vrot.lane.b32.xlu0 %v2528_v29, %s3959_s21  ;;  %v2522_v22 = vsel %vm73_vm0, %v6312_v58, %v2521_v35  ;;  %v6262_v29 = vrot.slane %v5552_v19, 4  ;;  %v6263_v35 = vrot.slane %v5560_v14, 4  ;;  %v2519_v58 = vrot.slane %v2484_v23, 4 }
 0x991   :  { %v3463_v23 = vmul.f32 %v5586_v16, %v5207_v1 }
 0x992   :  { %v2526_v15 = vsel %vm73_vm0, %v6262_v29, %v2525_v20  ;;  %v3275_v52 = vpop.permute.xlu1 %3274  ;;  %v2520_v19 = vsel %vm73_vm0, %v6263_v35, %v2519_v58 }
 0x993   :  { %v5592_v20 = vsel %vm6313_vm8, %v3273_v61, %v3275_v52  ;;  %vm6342_vm8 = vmmov %vm6341_vm5 }
 0x994   :  { %2551 = vrot.lane.b32.xlu1 %v2522_v22, %s3959_s21  ;;  %3508 = vrot.lane.b32.xlu0 %v3467_v18, %s3953_s30  ;;  %v3417_v18 = vld [vmem:[#allocation2 + $0x50] sm:$0xf]  ;;  %6314 = vst [vmem:[#allocation22_spill] sm:$0xff] %v5592_v20  ;;  %v5601_v8 = vmul.f32 %v5592_v20, %v5207_v1  ;;  %v3298_v58 = vmul.f32 %v5592_v20, %v3249_v26 }
 0x995   :  { %v3466_v22 = vmul.f32 %v5523_v60, %v3417_v18  ;;  %v3465_v1 = vmul.f32 %v5532_v32, %v5332_v56  ;;  %v5633_v26 = vsel %vm6320_vm6, %v5573_v4, %v3273_v61  ;;  %v3464_v61 = vmul.f32 %v5565_v25, %v5211_v49  ;;  %vm6343_vm6 = vmmov %vm6341_vm5 }
 0x996   :  { %6315 = vst [vmem:[#allocation23_spill] sm:$0xff] %v5601_v8  ;;  %v3335_v20 = vrot.slane %v3298_v58, 4  ;;  %v3462_v58 = vmul.f32 %v5545_v43, %v5185_v40  ;;  %6321 = vst [vmem:[#allocation28_spill] sm:$0xff] %v5633_v26 }
 0x998   :  { %2555 = vrot.lane.b32.xlu1 %v2526_v15, %s3959_s21  ;;  %3512 = vrot.lane.b32.xlu0 %v3469_v31, %s3953_s30  ;;  %v3419_v15 = vld [vmem:[#allocation2 + $0x60] sm:$0xf] }
 0x999   :  { %v3468_v31 = vmul.f32 %v5586_v16, %v3419_v15 }
 0x99b   :  { %v3049_v38 = vpop.permute.xlu0 %3048 }
 0x99c   :  { %2549 = vrot.lane.b32.xlu1 %v2520_v19, %s3959_s21  ;;  %3506 = vrot.lane.b32.xlu0 %v3466_v22, %s3953_s30  ;;  %v3421_v22 = vld [vmem:[#allocation2 + $0x70] sm:$0xf] }
 0x99d   :  { %v3470_v15 = vmul.f32 %v5532_v32, %v3421_v22 }
 0x99f   :  { %v3053_v18 = vpop.permute.xlu0 %3052  ;;  %v3051_v29 = vpop.permute.xlu1 %3050 }
 0x9a0   :  { %v5605_v35 = vsel %vm515_vm3, %v3049_v38, %v3051_v29  ;;  %v5608_v19 = vsel %vm515_vm3, %v3051_v29, %v3053_v18  ;;  %3510 = vrot.lane.b32.xlu1 %v3468_v31, %s3953_s30  ;;  %3500 = vrot.lane.b32.xlu0 %v3463_v23, %s3953_s30  ;;  %v5618_v29 = vmul.f32 %v5576_v39, %v5332_v56  ;;  %v6322_v56 = vrot.slane %v5601_v8, 4 }
 0x9a1   :  { %6316 = vst [vmem:[#allocation24_spill] sm:$0xff] %v5605_v35  ;;  %6317 = vst [vmem:[#allocation25_spill] sm:$0xff] %v5608_v19  ;;  %v3300_v31 = vmul.f32 %v5576_v39, %v3251_v11  ;;  %v2216_v35 = vld [vmem:[#allocation9 + $0x30] sm:$0xff] }
 0x9a2   :  { %v3336_v11 = vsel %vm73_vm0, %v6322_v56, %v3335_v20  ;;  %v3461_v56 = vmul.f32 %v5523_v60, %v5323_v6 }
 0x9a3   :  { %v3047_v27 = vpop.permute.xlu0 %3046  ;;  %v3055_v14 = vpop.permute.xlu1 %3054 }
 0x9a4   :  { %v5622_v23 = vsel %vm515_vm3, %v3047_v27, %v3049_v38  ;;  %v5625_v22 = vsel %vm515_vm3, %v3053_v18, %v3055_v14  ;;  %3514 = vrot.lane.b32.xlu1 %v3470_v15, %s3953_s30  ;;  %3504 = vrot.lane.b32.xlu0 %v3465_v1, %s3953_s30  ;;  %v6268_v27 = vrot.slane %v5618_v29, 4  ;;  %v3339_v38 = vrot.slane %v3300_v31, 4  ;;  %v3248_v14 = vld [vmem:[#allocation2 + $0x58] sm:$0xf] }
 0x9a5   :  { %6318 = vst [vmem:[#allocation26_spill] sm:$0xff] %v5622_v23  ;;  %6319 = vst [vmem:[#allocation27_spill] sm:$0xff] %v5625_v22  ;;  %v5643_v18 = vmul.f32 %v5633_v26, %v5185_v40  ;;  %v3297_v15 = vmul.f32 %v5633_v26, %v3248_v14  ;;  %v5653_v31 = vsel %vm6324_vm12, %v3275_v52, %v5576_v39 }
 0x9a6   :  { %v3340_v20 = vsel %vm73_vm0, %v6268_v27, %v3339_v38  ;;  %6325 = vst [vmem:[#allocation30_spill] sm:$0xff] %v5653_v31  ;;  %v5665_v52 = vmul.f32 %v5653_v31, %v5211_v49  ;;  %v3247_v27 = vld [vmem:[#allocation2 + $0x50] sm:$0xf]  ;;  %vm6344_vm12 = vmmov %vm6341_vm5 }
 0x9a7   :  { %6323 = vst [vmem:[#allocation29_spill] sm:$0xff] %v5643_v18  ;;  %v3333_v14 = vrot.slane %v3297_v15, 4  ;;  %v5674_v15 = vmul.f32 %v5573_v4, %v5323_v6  ;;  %v6334_v22 = vrot.slane %v5643_v18, 4 }
 0x9a8   :  { %3498 = vrot.lane.b32.xlu1 %v3462_v58, %s3953_s30  ;;  %3365 = vrot.lane.b32.xlu0 %v3336_v11, %s3957_s17  ;;  %v3250_v11 = vld [vmem:[#allocation2 + $0x68] sm:$0xf]  ;;  %6328 = vst [vmem:[#allocation32_spill] sm:$0xff] %v5665_v52 }
 0x9a9   :  { %6331 = vst [vmem:[#allocation34_spill] sm:$0xff] %v5674_v15 }
 0x9ab   :  { %v2867_v1 = vpop.permute.xlu1 %2866 }
 0x9ac   :  { %3502 = vrot.lane.b32.xlu1 %v3464_v61, %s3953_s30  ;;  %3369 = vrot.lane.b32.xlu0 %v3340_v20, %s3957_s17  ;;  %v3299_v61 = vmul.f32 %v5653_v31, %v3250_v11  ;;  %v3334_v11 = vsel %vm73_vm0, %v6334_v22, %v3333_v14 }
 0x9ae   :  { %v2869_v58 = vpop.permute.xlu0 %2868 }
 0x9af   :  { %v5661_v19 = vsel %vm6326_vm4, %v2867_v1, %v2869_v58  ;;  %v2871_v38 = vpop.permute.xlu1 %2870  ;;  %vm6345_vm4 = vmmov %vm6341_vm5 }
 0x9b0   :  { %6327 = vst [vmem:[#allocation31_spill] sm:$0xff] %v5661_v19  ;;  %v5669_v20 = vsel %vm6329_vm14, %v2869_v58, %v2871_v38  ;;  %3496 = vrot.lane.b32.xlu1 %v3461_v56, %s3953_s30  ;;  %v3296_v19 = vmul.f32 %v5573_v4, %v3247_v27  ;;  %v6269_v58 = vrot.slane %v5665_v52, 4  ;;  %v6270_v27 = vrot.slane %v5674_v15, 4  ;;  %v2215_v52 = vld [vmem:[#allocation9 + $0x28] sm:$0xff]  ;;  %vm6347_vm14 = vmmov %vm6345_vm4 }
 0x9b1   :  { %6330 = vst [vmem:[#allocation33_spill] sm:$0xff] %v5669_v20  ;;  %v3337_v20 = vrot.slane %v3299_v61, 4 }
 0x9b2   :  { %v2873_v40 = vpop.permute.xlu0 %2872 }
 0x9b3   :  { %v5678_v23 = vsel %vm6332_vm9, %v2871_v38, %v2873_v40  ;;  %v2865_v49 = vpop.permute.xlu1 %2864  ;;  %v3338_v6 = vsel %vm73_vm0, %v6269_v58, %v3337_v20  ;;  %v3331_v40 = vrot.slane %v3296_v19, 4  ;;  %vm6348_vm9 = vmmov %vm6345_vm4 }
 0x9b4   :  { %6333 = vst [vmem:[#allocation35_spill] sm:$0xff] %v5678_v23  ;;  %v5685_v56 = vsel %vm6335_vm7, %v2865_v49, %v2867_v1  ;;  %3363 = vrot.lane.b32.xlu1 %v3334_v11, %s3957_s17  ;;  %v2214_v23 = vld [vmem:[#allocation9 + $0x20] sm:$0xff]  ;;  %vm6349_vm7 = vmmov %vm6345_vm4 }
 0x9b5   :  { %6336 = vst [vmem:[#allocation36_spill] sm:$0xff] %v5685_v56  ;;  %v3332_v22 = vsel %vm73_vm0, %v6270_v27, %v3331_v40 }
 0x9b8   :  { %3367 = vrot.lane.b32.xlu1 %v3338_v6, %s3957_s17 }
 0x9bc   :  { %3361 = vrot.lane.b32.xlu1 %v3332_v22, %s3957_s17 }
 0x9e5   :  { %v2699_v14 = vpop.permute.xlu0 %2698  ;;  %v2697_v1 = vpop.permute.xlu1 %2696 }
 0x9e6   :  { %v2713_v38 = vsel %vm353_vm15, %v2697_v1, %v2699_v14 }
 0x9e7   :  { %2737 = vst [vmem:[#allocation3 + $0x2d8] sm:$0xf] %v2713_v38 }
 0x9e9   :  { %v2703_v61 = vpop.permute.xlu0 %2702  ;;  %v2701_v49 = vpop.permute.xlu1 %2700 }
 0x9ea   :  { %v2714_v20 = vsel %vm353_vm15, %v2699_v14, %v2701_v49  ;;  %v2715_v11 = vsel %vm353_vm15, %v2701_v49, %v2703_v61 }
 0x9eb   :  { %2738 = vst [vmem:[#allocation3 + $0x288] sm:$0xf] %v2714_v20  ;;  %2739 = vst [vmem:[#allocation3 + $0xb0] sm:$0xf] %v2715_v11 }
 0x9ed   :  { %v2695_v19 = vpop.permute.xlu1 %2694  ;;  %v2689_v40 = vpop.permute.xlu0 %2688 }
 0x9ee   :  { %v2712_v6 = vsel %vm353_vm15, %v2695_v19, %v2697_v1 }
 0x9ef   :  { %2736 = vst [vmem:[#allocation3 + $0x90] sm:$0xf] %v2712_v6 }
 0x9f1   :  { %v2687_v58 = vpop.permute.xlu1 %2686  ;;  %v2693_v27 = vpop.permute.xlu0 %2692 }
 0x9f2   :  { %v5702_v22 = vsel %vm353_vm15, %v2687_v58, %v2689_v40 }
 0x9f3   :  { %6337 = vst [vmem:[#allocation37_spill] sm:$0xff] %v5702_v22 }
 0x9f5   :  { %v2554_v56 = vpop.permute.xlu0 %2553 }
 0xa03   :  { %v2229_v38 = vpop.permute.xlu1 %2228 }
 0xa04   :  { %v2241_v14 = vmul.f32 %v2229_v38, %v2214_v23  ;;  %v2242_v18 = vmul.f32 %v2229_v38, %v2215_v52  ;;  %v2243_v61 = vmul.f32 %v2229_v38, %v2216_v35  ;;  %v2244_v49 = vmul.f32 %v2229_v38, %v5161_v33 }
 0xa07   :  { %v2256_v20 = vpop.permute.xlu0 %2255  ;;  %v2691_v11 = vpop.permute.xlu1 %2690 }
 0xa08   :  { %v2268_v1 = vadd.f32 %v2256_v20, %v2241_v14  ;;  %v2269_v19 = vadd.f32 %v2256_v20, %v2242_v18  ;;  %v2270_v6 = vadd.f32 %v2256_v20, %v2243_v61  ;;  %v2271_v8 = vadd.f32 %v2256_v20, %v2244_v49 }
 0xa09   :  { %v5706_v31 = vsel %vm353_vm15, %v2689_v40, %v2691_v11  ;;  %v5709_v22 = vsel %vm353_vm15, %v2691_v11, %v2693_v27 }
 0xa0a   :  { %6338 = vst [vmem:[#allocation38_spill] sm:$0xff] %v5706_v31  ;;  %v5711_v26 = vmax.f32 %v2268_v1, 0.0  ;;  %v5713_v15 = vmax.f32 %v2269_v19, 0.0  ;;  %v5715_v23 = vmax.f32 %v2270_v6, 0.0  ;;  %v5717_v35 = vmax.f32 %v2271_v8, 0.0 }
 0xa0b   :  { %v2558_v33 = vpop.permute.xlu0 %2557  ;;  %v2685_v52 = vpop.permute.xlu1 %2684 }
 0xa0c   :  { %2910 = vst [vmem:[#allocation3 + $0x1c8] sm:$0xff] %v5711_v26  ;;  %2911 = vst [vmem:[#allocation3 + $0x280] sm:$0xff] %v5713_v15  ;;  %v5724_v18 = vsel %vm353_vm15, %v2685_v52, %v2687_v58  ;;  %2304 = vrot.lane.b32.xlu1 %v5711_v26, %s3952_s27  ;;  %2306 = vrot.lane.b32.xlu0 %v5713_v15, %s3952_s27 }
 0xa0d   :  { %2912 = vst [vmem:[#allocation3 + $0x100] sm:$0xff] %v5715_v23  ;;  %2913 = vst [vmem:[#allocation3 + $0x1b0] sm:$0xff] %v5717_v35 }
 0xa0f   :  { %v3509_v8 = vpop.permute.xlu0 %3508  ;;  %v2552_v27 = vpop.permute.xlu1 %2551 }
 0xa10   :  { %v5731_v40 = vsel %vm279_vm10, %v2552_v27, %v2554_v56  ;;  %2308 = vrot.lane.b32.xlu1 %v5715_v23, %s3952_s27  ;;  %2310 = vrot.lane.b32.xlu0 %v5717_v35, %s3952_s27 }
 0xa11   :  { %2592 = vst [vmem:[#allocation3 + $0x18] sm:$0xff] %v5731_v40 }
 0xa13   :  { %v3513_v58 = vpop.permute.xlu0 %3512  ;;  %v2556_v38 = vpop.permute.xlu1 %2555 }
 0xa14   :  { %v5739_v14 = vsel %vm279_vm10, %v2554_v56, %v2556_v38  ;;  %v5742_v61 = vsel %vm279_vm10, %v2556_v38, %v2558_v33 }
 0xa15   :  { %6339 = vst [vmem:[#allocation39_spill] sm:$0xff] %v5739_v14  ;;  %6340 = vst [vmem:[#allocation40_spill] sm:$0xff] %v5742_v61 }
 0xa16   :  { %2593 = vst [vmem:[#allocation3 + $0x60] sm:$0xff] %v5739_v14  ;;  %2594 = vst [vmem:[#allocation3 + $0x220] sm:$0xff] %v5742_v61 }
 0xa17   :  { %v3507_v49 = vpop.permute.xlu0 %3506  ;;  %v2550_v20 = vpop.permute.xlu1 %2549 }
 0xa18   :  { %v3524_v11 = vsel %vm6341_vm5, %v3507_v49, %v3509_v8  ;;  %v5748_v1 = vsel %vm279_vm10, %v2550_v20, %v2552_v27 }
 0xa19   :  { %3548 = vst [vmem:[#allocation3 + $0x1d0] sm:$0xf] %v3524_v11  ;;  %2591 = vst [vmem:[#allocation3 + $0x240] sm:$0xff] %v5748_v1 }
 0xa1b   :  { %v3511_v19 = vpop.permute.xlu1 %3510  ;;  %v3501_v38 = vpop.permute.xlu0 %3500 }
 0xa1c   :  { %v3525_v56 = vsel %vm6342_vm8, %v3509_v8, %v3511_v19  ;;  %v3526_v6 = vsel %vm6343_vm6, %v3511_v19, %v3513_v58  ;;  %vm3644_vm8 = vcmask 424960   ;;  %vm6394_vm6 = vmmov %vm6345_vm4 }
 0xa1d   :  { %3549 = vst [vmem:[#allocation3 + $0x88] sm:$0xf] %v3525_v56  ;;  %3550 = vst [vmem:[#allocation3 + $0x1c0] sm:$0xf] %v3526_v6 }
 0xa1f   :  { %v3515_v33 = vpop.permute.xlu1 %3514  ;;  %v3505_v27 = vpop.permute.xlu0 %3504 }
 0xa20   :  { %v3527_v52 = vsel %vm6344_vm12, %v3513_v58, %v3515_v33  ;;  %vm6395_vm12 = vmmov %vm6345_vm4 }
 0xa21   :  { %3551 = vst [vmem:[#allocation3 + $0x2d0] sm:$0xf] %v3527_v52 }
 0xa23   :  { %v3499_v14 = vpop.permute.xlu1 %3498  ;;  %v3366_v56 = vpop.permute.xlu0 %3365 }
 0xa24   :  { %v5755_v49 = vsel %vm6345_vm4, %v3499_v14, %v3501_v38 }
 0xa25   :  { %6346 = vst [vmem:[#allocation41_spill] sm:$0xff] %v5755_v49 }
 0xa27   :  { %v3503_v20 = vpop.permute.xlu1 %3502  ;;  %v3370_v33 = vpop.permute.xlu0 %3369 }
 0xa28   :  { %v3522_v11 = vsel %vm6347_vm14, %v3501_v38, %v3503_v20  ;;  %v3523_v61 = vsel %vm6348_vm9, %v3503_v20, %v3505_v27  ;;  %vm6396_vm14 = vmmov %vm6345_vm4 }
 0xa29   :  { %3546 = vst [vmem:[#allocation3 + $0x98] sm:$0xff] %v3522_v11  ;;  %3547 = vst [vmem:[#allocation3 + $0x270] sm:$0xff] %v3523_v61 }
 0xa2b   :  { %v3497_v8 = vpop.permute.xlu1 %3496 }
 0xa2c   :  { %v5760_v19 = vsel %vm6349_vm7, %v3497_v8, %v3499_v14 }
 0xa2f   :  { %v3364_v58 = vpop.permute.xlu1 %3363 }
 0xa30   :  { %v3380_v6 = vsel %vm668_vm1, %v3364_v58, %v3366_v56 }
 0xa31   :  { %3404 = vst [vmem:[#allocation3 + $0x200] sm:$0xff] %v3380_v6 }
 0xa33   :  { %v3368_v52 = vpop.permute.xlu1 %3367 }
 0xa34   :  { %v3381_v49 = vsel %vm668_vm1, %v3366_v56, %v3368_v52  ;;  %v3382_v31 = vsel %vm668_vm1, %v3368_v52, %v3370_v33 }
 0xa35   :  { %3405 = vst [vmem:[#allocation3 + $0x140] sm:$0xff] %v3381_v49  ;;  %3406 = vst [vmem:[#allocation3 + $0x80] sm:$0xff] %v3382_v31 }
 0xa37   :  { %v3362_v38 = vpop.permute.xlu1 %3361 }
 0xa38   :  { %v3379_v61 = vsel %vm668_vm1, %v3362_v38, %v3364_v58 }
 0xa39   :  { %3403 = vst [vmem:[#allocation3 + $0x68] sm:$0xff] %v3379_v61 }
 0xa7e   :  { %v2305_v27 = vpop.permute.xlu1 %2304  ;;  %v2307_v14 = vpop.permute.xlu0 %2306 }
 0xa7f   :  { %2352 = vst.msk [vmem:[#allocation2] sm:$0xff] %vm1068_vm11, %v2305_v27  ;;  %v5768_v20 = vsel %vm51_vm2, %v2305_v27, %v2307_v14 }
 0xa80   :  { %2353 = vst [vmem:[#allocation2 + $0x8] sm:$0xff] %v5768_v20  ;;  %v5773_v11 = vmul.f32 %v5181_v59, %v5768_v20 }
 0xa82   :  { %v2309_v8 = vpop.permute.xlu1 %2308  ;;  %v2311_v49 = vpop.permute.xlu0 %2310  ;;  %2414 = vst [vmem:[#allocation3 + $0xd0] sm:$0xff] %v5773_v11 }
 0xa83   :  { %v5776_v31 = vsel %vm51_vm2, %v2307_v14, %v2309_v8  ;;  %v5779_v56 = vsel %vm51_vm2, %v2309_v8, %v2311_v49  ;;  %2356 = vst.msk [vmem:[#allocation2 + $0x20] sm:$0xff] %vm51_vm2, %v2311_v49  ;;  %vm6350_vm2 = vcmask 261120  }
 0xa84   :  { %2354 = vst [vmem:[#allocation2 + $0x10] sm:$0xff] %v5776_v31  ;;  %2355 = vst [vmem:[#allocation2 + $0x18] sm:$0xff] %v5779_v56  ;;  %v5807_v27 = vsel %vm6350_vm2, %v5367_v54, %v5365_v53  ;;  %v5823_v8 = vmul.f32 %v5198_v36, %v5776_v31  ;;  %v2646_v49 = vmul.f32 %v5463_v9, %v5776_v31 }
 0xa85   :  { %v3142_v14 = vmul.f32 %v5807_v27, %v5768_v20  ;;  %vm6351_vm11 = vmmov %vm6350_vm2  ;;  %v3457_v9 = vmul.f32 %v5545_v43, %v5768_v20  ;;  %v5874_v43 = vmul.f32 %v5335_v42, %v5776_v31 }
 0xa86   :  { %v5785_v58 = vld [vmem:[#allocation2] sm:$0xff]  ;;  %vm6352_vm5 = vmmov %vm6350_vm2  ;;  %2415 = vst [vmem:[#allocation3 + $0x10] sm:$0xff] %v5823_v8 }
 0xa87   :  { %v3141_v59 = vmul.f32 %v5367_v54, %v5785_v58  ;;  %v2644_v38 = vmul.f32 %v5785_v58, %v5456_v46  ;;  %v5815_v46 = vmul.f32 %v5785_v58, %v5216_v41  ;;  %v5832_v41 = vsel %vm6351_vm11, %v5365_v53, %v5381_v0 }
 0xa88   :  { %v3143_v36 = vmul.f32 %v5832_v41, %v5776_v31  ;;  %v2645_v53 = vmul.f32 %v5460_v37, %v5768_v20 }
 0xa89   :  { %3171 = vrot.lane.b32.xlu1 %v3141_v59, %s3954_s14  ;;  %2413 = vst [vmem:[#allocation3 + $0x2b0] sm:$0xff] %v5815_v46  ;;  %v2647_v59 = vmul.f32 %v5475_v34, %v5779_v56 }
 0xa8a   :  { %v5790_v6 = vld [vmem:[#allocation2 + $0x20] sm:$0xff] }
 0xa8b   :  { %v3145_v33 = vmul.f32 %v5379_v2, %v5790_v6  ;;  %v2648_v52 = vmul.f32 %v5790_v6, %v5469_v12  ;;  %v3460_v61 = vmul.f32 %v5532_v32, %v5790_v6  ;;  %v3456_v12 = vmul.f32 %v5523_v60, %v5785_v58 }
 0xa8c   :  { %v5819_v32 = vmul.f32 %v5201_v44, %v5779_v56  ;;  %v5837_v44 = vsel %vm6352_vm5, %v5381_v0, %v5379_v2  ;;  %v3458_v0 = vmul.f32 %v5586_v16, %v5776_v31  ;;  %v2971_v16 = vmul.f32 %v5785_v58, %v5310_v24 }
 0xa8d   :  { %3179 = vrot.lane.b32.xlu0 %v3145_v33, %s3954_s14  ;;  %2682 = vrot.lane.b32.xlu1 %v2648_v52, %s3955_s15  ;;  %v3144_v60 = vmul.f32 %v5837_v44, %v5779_v56  ;;  %v2975_v33 = vmul.f32 %v5790_v6, %v5325_v10  ;;  %v2474_v52 = vmul.f32 %v5785_v58, %v5465_v62  ;;  %v6353_v62 = vrot.slane %v5330_v55, 4 }
 0xa8e   :  { %2416 = vst [vmem:[#allocation3 + $0x48] sm:$0xff] %v5819_v32  ;;  %v3459_v10 = vmul.f32 %v5565_v25, %v5779_v56  ;;  %v2793_v24 = vmul.f32 %v5790_v6, %v5402_v7  ;;  %v3003_v25 = vrot.slane %v5874_v43, 4  ;;  %v5890_v55 = vmul.f32 %v5395_v17, %v5768_v20 }
 0xa8f   :  { %v3005_v37 = vrot.slane %v2975_v33, 4  ;;  %v2504_v34 = vrot.slane %v2474_v52, 4  ;;  %v2478_v7 = vmul.f32 %v5790_v6, %v5500_v13  ;;  %v6355_v13 = vrot.slane %v5344_v5, 4 }
 0xa90   :  { %v2974_v33 = vmul.f32 %v5339_v30, %v5779_v56  ;;  %v5932_v52 = vmul.f32 %v5537_v45, %v5779_v56 }
 0xa91   :  { %2674 = vrot.lane.b32.xlu0 %v2644_v38, %s3955_s15  ;;  %3494 = vrot.lane.b32.xlu1 %v3460_v61, %s3953_s30  ;;  %v3001_v38 = vrot.slane %v2971_v16, 4  ;;  %v6357_v16 = vrot.slane %v5431_v47, 4  ;;  %v6359_v47 = vld [vmem:[#allocation21_spill] sm:$0xff] }
 0xa92   :  { %v2507_v30 = vrot.slane %v5932_v52, 4  ;;  %v6360_v43 = vrot.slane %v6359_v47, 4 }
 0xa93   :  { %v3007_v61 = vsel %vm73_vm0, %v3001_v38, %v6353_v62  ;;  %v6361_v62 = vld [vmem:[#allocation12_spill] sm:$0xff] }
 0xa95   :  { %3486 = vrot.lane.b32.xlu0 %v3456_v12, %s3953_s30  ;;  %3173 = vrot.lane.b32.xlu1 %v3142_v14, %s3954_s14  ;;  %v2823_v12 = vrot.slane %v2793_v24, 4  ;;  %v2789_v14 = vmul.f32 %v5785_v58, %v5391_v28  ;;  %v2820_v28 = vrot.slane %v5890_v55, 4  ;;  %v2510_v24 = vsel %vm73_vm0, %v2504_v34, %v6360_v43  ;;  %v6378_v55 = vld [vmem:[#allocation17_spill] sm:$0xff] }
 0xa97   :  { %v2819_v42 = vrot.slane %v2789_v14, 4 }
 0xa99   :  { %3175 = vrot.lane.b32.xlu0 %v3143_v36, %s3954_s14  ;;  %3177 = vrot.lane.b32.xlu1 %v3144_v60, %s3954_s14  ;;  %v6354_v36 = vrot.slane %v5414_v50, 4  ;;  %v2972_v50 = vmul.f32 %v5315_v3, %v5768_v20  ;;  %v6356_v3 = vrot.slane %v5520_v63, 4  ;;  %v2791_v63 = vmul.f32 %v5406_v21, %v5776_v31 }
 0xa9a   :  { %v2825_v45 = vsel %vm73_vm0, %v2819_v42, %v6357_v16  ;;  %v2476_v21 = vmul.f32 %v5482_v48, %v5776_v31 }
 0xa9b   :  { %v2833_v60 = vsel %vm73_vm0, %v2823_v12, %v6354_v36 }
 0xa9c   :  { %v2506_v14 = vrot.slane %v2476_v21, 4  ;;  %v6372_v21 = vld [vmem:[#allocation22_spill] sm:$0xff] }
 0xa9d   :  { %2676 = vrot.lane.b32.xlu0 %v2645_v53, %s3955_s15  ;;  %2678 = vrot.lane.b32.xlu1 %v2646_v49, %s3955_s15  ;;  %v2508_v53 = vrot.slane %v2478_v7, 4  ;;  %v5902_v49 = vmul.f32 %v5410_v57, %v5779_v56  ;;  %v3002_v57 = vrot.slane %v2972_v50, 4  ;;  %v3105_v50 = vld [vmem:[#allocation2 + $0x68] sm:$0xf]  ;;  %v3288_v47 = vmul.f32 %v6372_v21, %v5776_v31  ;;  %v3102_v31 = vld [vmem:[#allocation2 + $0x50] sm:$0xf] }
 0xa9f   :  { %v2822_v17 = vrot.slane %v5902_v49, 4  ;;  %v2518_v5 = vsel %vm73_vm0, %v2508_v53, %v6356_v3  ;;  %v3104_v3 = vld [vmem:[#allocation2 + $0x60] sm:$0xf]  ;;  %v6382_v49 = vld [vmem:[#allocation23_spill] sm:$0xff] }
 0xaa1   :  { %3490 = vrot.lane.b32.xlu1 %v3458_v0, %s3953_s30  ;;  %2680 = vrot.lane.b32.xlu0 %v2647_v59, %s3955_s15  ;;  %v3015_v0 = vsel %vm73_vm0, %v3005_v37, %v6355_v13  ;;  %v5920_v59 = vmul.f32 %v5513_v51, %v5768_v20  ;;  %v5936_v51 = vmul.f32 %v5576_v39, %v5790_v6  ;;  %v2821_v39 = vrot.slane %v2791_v63, 4  ;;  %v6370_v63 = vld [vmem:[#allocation16_spill] sm:$0xff] }
 0xaa2   :  { %v6358_v6 = vrot.slane %v5618_v29, 4  ;;  %v5968_v29 = vmul.f32 %v5573_v4, %v5785_v58  ;;  %v6365_v4 = vld [vmem:[#allocation34_spill] sm:$0xff]  ;;  %v3154_v13 = vmul.f32 %v5837_v44, %v3105_v50  ;;  %v6371_v16 = vrot.slane %v6370_v63, 4  ;;  %v3893_v50 = vld [vmem:[#allocation2 + $0x40] sm:$0xff] }
 0xaa3   :  { %v6366_v58 = vrot.slane %v6365_v4, 4 }
 0xaa4   :  { %v3316_v36 = vrot.slane %v5968_v29, 4 }
 0xaa5   :  { %3034 = vrot.lane.b32.xlu1 %v3005_v37, %s3956_s16  ;;  %3488 = vrot.lane.b32.xlu0 %v3457_v9, %s3953_s30  ;;  %v2505_v37 = vrot.slane %v5920_v59, 4  ;;  %v3004_v9 = vrot.slane %v2974_v33, 4 }
 0xaa9   :  { %2529 = vrot.lane.b32.xlu1 %v2504_v34, %s3959_s21  ;;  %3492 = vrot.lane.b32.xlu0 %v3459_v10, %s3953_s30  ;;  %v3320_v10 = vrot.slane %v5936_v51, 4  ;;  %v3103_v34 = vld [vmem:[#allocation2 + $0x58] sm:$0xf] }
 0xaad   :  { %3036 = vrot.lane.b32.xlu1 %v3007_v61, %s3956_s16  ;;  %3026 = vrot.lane.b32.xlu0 %v3001_v38, %s3956_s16  ;;  %v3330_v38 = vsel %vm73_vm0, %v3320_v10, %v6358_v6  ;;  %v6362_v61 = vrot.slane %v6361_v62, 4  ;;  %v3106_v6 = vld [vmem:[#allocation2 + $0x70] sm:$0xf] }
 0xab1   :  { %3030 = vrot.lane.b32.xlu1 %v3003_v25, %s3956_s16  ;;  %2852 = vrot.lane.b32.xlu0 %v2823_v12, %s3958_s20  ;;  %v3009_v12 = vsel %vm73_vm0, %v3002_v57, %v6362_v61  ;;  %v6376_v61 = vld [vmem:[#allocation18_spill] sm:$0xff] }
 0xab5   :  { %2862 = vrot.lane.b32.xlu1 %v2833_v60, %s3958_s20  ;;  %2844 = vrot.lane.b32.xlu0 %v2819_v42, %s3958_s20  ;;  %v6363_v42 = vld [vmem:[#allocation14_spill] sm:$0xff]  ;;  %v3152_v60 = vmul.f32 %v5807_v27, %v3103_v34 }
 0xab6   :  { %v6364_v7 = vrot.slane %v6363_v42, 4  ;;  %v3318_v42 = vrot.slane %v3288_v47, 4 }
 0xab8   :  { %v3013_v48 = vsel %vm73_vm0, %v3004_v9, %v6364_v7 }
 0xab9   :  { %2846 = vrot.lane.b32.xlu1 %v2820_v28, %s3958_s20  ;;  %2537 = vrot.lane.b32.xlu0 %v2508_v53, %s3959_s21  ;;  %v3322_v53 = vsel %vm73_vm0, %v3316_v36, %v6366_v58 }
 0xabd   :  { %2850 = vrot.lane.b32.xlu1 %v2822_v17, %s3958_s20  ;;  %3044 = vrot.lane.b32.xlu0 %v3015_v0, %s3956_s16  ;;  %v6367_v0 = vld [vmem:[#allocation13_spill] sm:$0xff] }
 0xac1   :  { %2547 = vrot.lane.b32.xlu1 %v2518_v5, %s3959_s21  ;;  %3028 = vrot.lane.b32.xlu0 %v3002_v57, %s3956_s16  ;;  %v6368_v57 = vrot.slane %v6367_v0, 4  ;;  %v3153_v5 = vmul.f32 %v5832_v41, %v3104_v3  ;;  %v6384_v0 = vld [vmem:[#allocation20_spill] sm:$0xff]  ;;  %v3894_v3 = vld [vmem:[#allocation2 + $0x28] sm:$0xff] }
 0xac2   :  { %v6385_v59 = vrot.slane %v6384_v0, 4 }
 0xac3   :  { %v3011_v33 = vsel %vm73_vm0, %v3003_v25, %v6368_v57  ;;  %v3155_v25 = vmul.f32 %v5379_v2, %v3106_v6 }
 0xac5   :  { %2531 = vrot.lane.b32.xlu1 %v2505_v37, %s3959_s21  ;;  %3032 = vrot.lane.b32.xlu0 %v3004_v9, %s3956_s16  ;;  %v6369_v9 = vld [vmem:[#allocation28_spill] sm:$0xff] }
 0xac6   :  { %v3287_v51 = vmul.f32 %v6369_v9, %v5768_v20  ;;  %v6373_v20 = vld [vmem:[#allocation30_spill] sm:$0xff] }
 0xac7   :  { %v3289_v43 = vmul.f32 %v6373_v20, %v5779_v56  ;;  %v3151_v56 = vmul.f32 %v5367_v54, %v3102_v31  ;;  %v6388_v20 = vld [vmem:[#allocation32_spill] sm:$0xff]  ;;  %v6392_v31 = vld [vmem:[#allocation26_spill] sm:$0xff] }
 0xac9   :  { %2854 = vrot.lane.b32.xlu0 %v2825_v45, %s3958_s20  ;;  %2535 = vrot.lane.b32.xlu1 %v2507_v30, %s3959_s21  ;;  %v2829_v45 = vsel %vm73_vm0, %v2821_v39, %v6371_v16  ;;  %v3319_v7 = vrot.slane %v3289_v43, 4  ;;  %v6386_v16 = vld [vmem:[#allocation29_spill] sm:$0xff]  ;;  %v6389_v43 = vrot.slane %v6388_v20, 4 }
 0xacd   :  { %2848 = vrot.lane.b32.xlu0 %v2821_v39, %s3958_s20  ;;  %3359 = vrot.lane.b32.xlu1 %v3330_v38, %s3957_s17  ;;  %v3317_v38 = vrot.slane %v3287_v51, 4 }
 0xad1   :  { %2539 = vrot.lane.b32.xlu0 %v2510_v24, %s3959_s21  ;;  %3038 = vrot.lane.b32.xlu1 %v3009_v12, %s3956_s16  ;;  %v6374_v24 = vld [vmem:[#allocation15_spill] sm:$0xff]  ;;  %v6377_v12 = vrot.slane %v6376_v61, 4 }
 0xad2   :  { %v6375_v39 = vrot.slane %v6374_v24, 4  ;;  %v3328_v24 = vsel %vm73_vm0, %v3319_v7, %v6389_v43 }
 0xad3   :  { %v2514_v29 = vsel %vm73_vm0, %v2506_v14, %v6377_v12  ;;  %v6390_v12 = vld [vmem:[#allocation24_spill] sm:$0xff] }
 0xad4   :  { %v2827_v62 = vsel %vm73_vm0, %v2820_v28, %v6375_v39  ;;  %v3101_v39 = vld [vmem:[#allocation2 + $0x48] sm:$0xff] }
 0xad5   :  { %2533 = vrot.lane.b32.xlu0 %v2506_v14, %s3959_s21  ;;  %3042 = vrot.lane.b32.xlu1 %v3013_v48, %s3956_s16  ;;  %v6379_v48 = vrot.slane %v6378_v55, 4  ;;  %v3098_v14 = vld [vmem:[#allocation2 + $0x30] sm:$0xff]  ;;  %v3150_v61 = vmul.f32 %v5379_v2, %v3101_v39 }
 0xad6   :  { %v3147_v34 = vmul.f32 %v5807_v27, %v3098_v14  ;;  %v3149_v27 = vmul.f32 %v3893_v50, %v5837_v44  ;;  %v3895_v44 = vld [vmem:[#allocation2 + $0x38] sm:$0xff] }
 0xad7   :  { %v2831_v28 = vsel %vm73_vm0, %v2822_v17, %v6379_v48 }
 0xad9   :  { %3351 = vrot.lane.b32.xlu0 %v3322_v53, %s3957_s17  ;;  %3193 = vrot.lane.b32.xlu1 %v3152_v60, %s3954_s14  ;;  %v6380_v60 = vld [vmem:[#allocation19_spill] sm:$0xff]  ;;  %v6383_v53 = vrot.slane %v6382_v49, 4 }
 0xada   :  { %v6381_v4 = vrot.slane %v6380_v60, 4 }
 0xadb   :  { %v3326_v17 = vsel %vm73_vm0, %v3318_v42, %v6383_v53 }
 0xadc   :  { %v2512_v58 = vsel %vm73_vm0, %v2505_v37, %v6381_v4  ;;  %v2516_v37 = vsel %vm73_vm0, %v2507_v30, %v6385_v59  ;;  %v2198_v30 = vld [vmem:[%s6229_s10 + $0x8] sm:$0xff] }
 0xadd   :  { %3040 = vrot.lane.b32.xlu0 %v3011_v33, %s3956_s16  ;;  %3197 = vrot.lane.b32.xlu1 %v3154_v13, %s3954_s14 }
 0xade   :  { %3858 = vmatprep.mubr.msk.f32.mxu0 %vm3644_vm8, %v2198_v30  ;;  %3861 = vmatprep.mubr.msk.f32.mxu1 %vm3644_vm8, %v2198_v30 }
 0xae1   :  { %3195 = vrot.lane.b32.xlu0 %v3153_v5, %s3954_s14  ;;  %2858 = vrot.lane.b32.xlu1 %v2829_v45, %s3958_s20  ;;  %v3148_v5 = vmul.f32 %v3895_v44, %v5832_v41 }
 0xae5   :  { %3199 = vrot.lane.b32.xlu0 %v3155_v25, %s3954_s14  ;;  %3343 = vrot.lane.b32.xlu1 %v3317_v38, %s3957_s17 }
 0xae9   :  { %2856 = vrot.lane.b32.xlu0 %v2827_v62, %s3958_s20  ;;  %2543 = vrot.lane.b32.xlu1 %v2514_v29, %s3959_s21 }
 0xaed   :  { %3345 = vrot.lane.b32.xlu0 %v3318_v42, %s3957_s17  ;;  %3347 = vrot.lane.b32.xlu1 %v3319_v7, %s3957_s17  ;;  %v6391_v7 = vld [vmem:[#allocation27_spill] sm:$0xff] }
 0xaf1   :  { %2860 = vrot.lane.b32.xlu0 %v2831_v28, %s3958_s20  ;;  %3191 = vrot.lane.b32.xlu1 %v3151_v56, %s3954_s14  ;;  %v6393_v56 = vld [vmem:[#allocation25_spill] sm:$0xff] }
 0xaf5   :  { %2541 = vrot.lane.b32.xlu0 %v2512_v58, %s3959_s21  ;;  %3183 = vrot.lane.b32.xlu1 %v3147_v34, %s3954_s14 }
 0xaf9   :  { %3349 = vrot.lane.b32.xlu0 %v3320_v10, %s3957_s17  ;;  %3355 = vrot.lane.b32.xlu1 %v3326_v17, %s3957_s17  ;;  %v3146_v10 = vmul.f32 %v3894_v3, %v5367_v54 }
 0xafb   :  { %v3172_v13 = vpop.permute.xlu1 %3171 }
 0xafd   :  { %3187 = vrot.lane.b32.xlu1 %v3149_v27, %s3954_s14  ;;  %2545 = vrot.lane.b32.xlu0 %v2516_v37, %s3959_s21 }
 0xaff   :  { %v3180_v57 = vpop.permute.xlu0 %3179  ;;  %v2683_v33 = vpop.permute.xlu1 %2682 }
 0xb01   :  { %3181 = vrot.lane.b32.xlu1 %v3146_v10, %s3954_s14  ;;  %3341 = vrot.lane.b32.xlu0 %v3316_v36, %s3957_s17  ;;  %v6387_v36 = vrot.slane %v6386_v16, 4 }
 0xb03   :  { %v2675_v9 = vpop.permute.xlu0 %2674  ;;  %v3495_v52 = vpop.permute.xlu1 %3494  ;;  %v3324_v45 = vsel %vm73_vm0, %v3317_v38, %v6387_v36 }
 0xb05   :  { %3185 = vrot.lane.b32.xlu0 %v3148_v5, %s3954_s14 }
 0xb07   :  { %v3487_v51 = vpop.permute.xlu0 %3486  ;;  %v3174_v54 = vpop.permute.xlu1 %3173 }
 0xb08   :  { %v3201_v63 = vsel %vm589_vm13, %v3172_v13, %v3174_v54 }
 0xb09   :  { %3353 = vrot.lane.b32.xlu0 %v3324_v45, %s3957_s17 }
 0xb0b   :  { %v3176_v41 = vpop.permute.xlu0 %3175  ;;  %v3178_v6 = vpop.permute.xlu1 %3177 }
 0xb0c   :  { %v3202_v25 = vsel %vm589_vm13, %v3174_v54, %v3176_v41  ;;  %v3203_v21 = vsel %vm589_vm13, %v3176_v41, %v3178_v6  ;;  %v3204_v47 = vsel %vm589_vm13, %v3178_v6, %v3180_v57 }
 0xb0d   :  { %3357 = vrot.lane.b32.xlu0 %v3328_v24, %s3957_s17  ;;  %3660 = vmatprep.subr.mxu0 %v3202_v25 }
 0xb0e   :  { %3731 = vmatprep.subr.mxu1 %v3204_v47  ;;  %3661 = vmatpush1.msra.mxu0 %v3201_v63 }
 0xb0f   :  { %v2677_v38 = vpop.permute.xlu0 %2676  ;;  %v2679_v62 = vpop.permute.xlu1 %2678  ;;  %3732 = vmatpush1.msra.mxu1 %v3203_v21  ;;  %3662 = vmatprep.subr.mxu0 %v6390_v12 }
 0xb10   :  { %v6069_v29 = vsel %vm353_vm15, %v2675_v9, %v2677_v38  ;;  %v6072_v42 = vsel %vm353_vm15, %v2677_v38, %v2679_v62  ;;  %3733 = vmatprep.subr.mxu1 %v6391_v7  ;;  %3663 = vmatpush1.msra.mxu0 %v6392_v31 }
 0xb11   :  { %3189 = vrot.lane.b32.xlu0 %v3150_v61, %s3954_s14  ;;  %3734 = vmatpush1.msra.mxu1 %v6393_v56 }
 0xb13   :  { %v3491_v55 = vpop.permute.xlu1 %3490  ;;  %v2681_v48 = vpop.permute.xlu0 %2680 }
 0xb14   :  { %v6079_v2 = vsel %vm353_vm15, %v2679_v62, %v2681_v48  ;;  %v6082_v28 = vsel %vm353_vm15, %v2681_v48, %v2683_v33  ;;  %vm6397_vm15 = vcmask 916480  }
 0xb15   :  { %vm6398_vm9 = vmmov %vm6397_vm15 }
 0xb16   :  { %vm6399_vm7 = vmmov %vm6398_vm9 }
 0xb17   :  { %v3035_v14 = vpop.permute.xlu1 %3034  ;;  %v3489_v34 = vpop.permute.xlu0 %3488  ;;  %vm6400_vm2 = vmmov %vm6399_vm7 }
 0xb18   :  { %v6085_v60 = vsel %vm6394_vm6, %v3487_v51, %v3489_v34  ;;  %v6088_v4 = vsel %vm6395_vm12, %v3489_v34, %v3491_v55  ;;  %vm6406_vm11 = vmmov %vm6400_vm2 }
 0xb19   :  { %vm6408_vm5 = vmmov %vm6400_vm2 }
 0xb1a   :  { %vm6409_vm8 = vmmov %vm6400_vm2 }
 0xb1b   :  { %v2530_v58 = vpop.permute.xlu1 %2529  ;;  %v3493_v49 = vpop.permute.xlu0 %3492 }
 0xb1c   :  { %v6091_v53 = vsel %vm6345_vm4, %v3491_v55, %v3493_v49  ;;  %v6094_v17 = vsel %vm6396_vm14, %v3493_v49, %v3495_v52 }
 0xb1f   :  { %v3037_v50 = vpop.permute.xlu1 %3036  ;;  %v3027_v27 = vpop.permute.xlu0 %3026 }
 0xb23   :  { %v3031_v13 = vpop.permute.xlu1 %3030  ;;  %v2853_v0 = vpop.permute.xlu0 %2852 }
 0xb27   :  { %v6096_v59 = vpop.permute.xlu1 %2862  ;;  %v2845_v37 = vpop.permute.xlu0 %2844 }
 0xb2b   :  { %v2847_v57 = vpop.permute.xlu1 %2846  ;;  %v2538_v33 = vpop.permute.xlu0 %2537 }
 0xb2c   :  { %v2874_v3 = vsel %vm6397_vm15, %v2845_v37, %v2847_v57 }
 0xb2d   :  { %2898 = vst [vmem:[#allocation3 + $0x90] sm:$0xf0] %v2874_v3 }
 0xb2f   :  { %v2851_v10 = vpop.permute.xlu1 %2850  ;;  %v3045_v44 = vpop.permute.xlu0 %3044 }
 0xb30   :  { %v2877_v5 = vsel %vm6398_vm9, %v2851_v10, %v2853_v0 }
 0xb31   :  { %2901 = vst [vmem:[#allocation3 + $0xb0] sm:$0xf0] %v2877_v5  ;;  %v3596_v5 = vld [vmem:[#allocation3 + $0xa8] sm:$0xff] }
 0xb33   :  { %v6100_v9 = vpop.permute.xlu1 %2547  ;;  %v3029_v52 = vpop.permute.xlu0 %3028 }
 0xb34   :  { %v3056_v30 = vsel %vm515_vm3, %v3027_v27, %v3029_v52  ;;  %v3057_v51 = vsel %vm515_vm3, %v3029_v52, %v3031_v13 }
 0xb35   :  { %3080 = vst [vmem:[#allocation3 + $0x2c8] sm:$0xf0] %v3056_v30  ;;  %3081 = vst [vmem:[#allocation3 + $0x1e8] sm:$0xf0] %v3057_v51 }
 0xb37   :  { %v2532_v54 = vpop.permute.xlu1 %2531  ;;  %v3033_v63 = vpop.permute.xlu0 %3032 }
 0xb38   :  { %v2559_v16 = vsel %vm279_vm10, %v2530_v58, %v2532_v54  ;;  %v3058_v36 = vsel %vm515_vm3, %v3031_v13, %v3033_v63  ;;  %v3059_v45 = vsel %vm515_vm3, %v3033_v63, %v3035_v14  ;;  %v6402_v63 = vld [vmem:[#allocation31_spill] sm:$0xff] }
 0xb39   :  { %2583 = vst [vmem:[#allocation3 + $0x128] sm:$0xf0] %v2559_v16  ;;  %3082 = vst [vmem:[#allocation3 + $0xe8] sm:$0xf0] %v3058_v36  ;;  %v6403_v16 = vld [vmem:[#allocation33_spill] sm:$0xff]  ;;  %v6404_v36 = vld [vmem:[#allocation36_spill] sm:$0xff] }
 0xb3a   :  { %3083 = vst [vmem:[#allocation3 + $0x248] sm:$0xf0] %v3059_v45 }
 0xb3b   :  { %v6107_v41 = vpop.permute.xlu0 %2854  ;;  %v2536_v6 = vpop.permute.xlu1 %2535 }
 0xb3c   :  { %v2562_v25 = vsel %vm279_vm10, %v2536_v6, %v2538_v33  ;;  %v3600_v37 = vld [vmem:[#allocation3 + $0x2c8] sm:$0xff] }
 0xb3d   :  { %2586 = vst [vmem:[#allocation3 + $0x298] sm:$0xf0] %v2562_v25 }
 0xb3f   :  { %v2849_v21 = vpop.permute.xlu0 %2848  ;;  %v6110_v47 = vpop.permute.xlu1 %3359 }
 0xb40   :  { %v2875_v20 = vsel %vm6399_vm7, %v2847_v57, %v2849_v21  ;;  %v2876_v43 = vsel %vm6400_vm2, %v2849_v21, %v2851_v10  ;;  %v3602_v27 = vld [vmem:[#allocation3 + $0xe8] sm:$0xff]  ;;  %v3599_v57 = vld [vmem:[#allocation3 + $0x1e0] sm:$0xff]  ;;  %v3580_v21 = vld [vmem:[#allocation3 + $0x90] sm:$0xff] }
 0xb41   :  { %2899 = vst [vmem:[#allocation3 + $0x2d8] sm:$0xf0] %v2875_v20  ;;  %2900 = vst [vmem:[#allocation3 + $0x288] sm:$0xf0] %v2876_v43  ;;  %v3603_v49 = vld [vmem:[#allocation3 + $0x248] sm:$0xff]  ;;  %v3597_v10 = vld [vmem:[#allocation3 + $0x2a0] sm:$0xff] }
 0xb43   :  { %v6114_v24 = vpop.permute.xlu0 %2539  ;;  %v3039_v39 = vpop.permute.xlu1 %3038 }
 0xb44   :  { %v3060_v38 = vsel %vm515_vm3, %v3037_v50, %v3039_v39  ;;  %v3601_v50 = vld [vmem:[#allocation3 + $0x1e8] sm:$0xff] }
 0xb45   :  { %3084 = vst [vmem:[#allocation3 + $0x138] sm:$0xff] %v3060_v38 }
 0xb47   :  { %v2534_v62 = vpop.permute.xlu0 %2533  ;;  %v3043_v61 = vpop.permute.xlu1 %3042 }
 0xb48   :  { %v2560_v12 = vsel %vm279_vm10, %v2532_v54, %v2534_v62  ;;  %v2561_v7 = vsel %vm279_vm10, %v2534_v62, %v2536_v6  ;;  %v3063_v31 = vsel %vm515_vm3, %v3043_v61, %v3045_v44  ;;  %v3598_v44 = vld [vmem:[#allocation3 + $0x210] sm:$0xff]  ;;  %v6401_v54 = vld [vmem:[#allocation35_spill] sm:$0xff] }
 0xb49   :  { %2584 = vst [vmem:[#allocation3 + $0xe0] sm:$0xf0] %v2560_v12  ;;  %2585 = vst [vmem:[#allocation3] sm:$0xf0] %v2561_v7  ;;  %3735 = vmatprep.subr.mxu1 %v3063_v31 }
 0xb4a   :  { %3087 = vst [vmem:[#allocation3 + $0x290] sm:$0xff] %v3063_v31  ;;  %v3582_v31 = vld [vmem:[#allocation3 + $0x288] sm:$0xff] }
 0xb4b   :  { %v6120_v56 = vpop.permute.xlu0 %3351  ;;  %v6122_v55 = vpop.permute.xlu1 %3193 }
 0xb4f   :  { %v3041_v48 = vpop.permute.xlu0 %3040  ;;  %v3198_v14 = vpop.permute.xlu1 %3197 }
 0xb50   :  { %v3061_v34 = vsel %vm515_vm3, %v3039_v39, %v3041_v48  ;;  %v3062_v58 = vsel %vm515_vm3, %v3041_v48, %v3043_v61  ;;  %vm6405_vm3 = vmmov %vm6400_vm2  ;;  %v6407_v39 = vld [vmem:[#allocation37_spill] sm:$0xff] }
 0xb51   :  { %3085 = vst [vmem:[#allocation3 + $0x108] sm:$0xff] %v3061_v34  ;;  %3086 = vst [vmem:[#allocation3 + $0xd8] sm:$0xff] %v3062_v58  ;;  %3664 = vmatprep.subr.mxu0 %v3061_v34  ;;  %3736 = vmatpush1.msra.mxu1 %v3062_v58  ;;  %v3557_v34 = vld [vmem:[#allocation3 + $0xf0] sm:$0xff] }
 0xb52   :  { %3665 = vmatpush1.msra.mxu0 %v3060_v38  ;;  %3737 = vmatprep.subr.mxu1 %v3603_v49  ;;  %v3896_v58 = vld [vmem:[#allocation3 + $0x30] sm:$0xff]  ;;  %v6412_v49 = vld [vmem:[#allocation39_spill] sm:$0xff] }
 0xb53   :  { %v3196_v13 = vpop.permute.xlu0 %3195  ;;  %v2859_v0 = vpop.permute.xlu1 %2858  ;;  %3666 = vmatprep.subr.mxu0 %v3601_v50  ;;  %3738 = vmatpush1.msra.mxu1 %v3602_v27 }
 0xb54   :  { %v3210_v33 = vsel %vm589_vm13, %v6122_v55, %v3196_v13  ;;  %v3211_v3 = vsel %vm589_vm13, %v3196_v13, %v3198_v14  ;;  %3667 = vmatpush1.msra.mxu0 %v3600_v37  ;;  %3739 = vmatprep.subr.mxu1 %v3599_v57  ;;  %v3641_v13 = vld [vmem:[#allocation3 + $0x88] sm:$0xf]  ;;  %v3563_v37 = vld [vmem:[#allocation3 + $0x298] sm:$0xff] }
 0xb55   :  { %3234 = vst [vmem:[#allocation3 + $0x1a0] sm:$0xf] %v3210_v33  ;;  %3235 = vst [vmem:[#allocation3 + $0x168] sm:$0xf] %v3211_v3  ;;  %3668 = vmatprep.subr.mxu0 %v3597_v10  ;;  %3740 = vmatpush1.msra.mxu1 %v3598_v44  ;;  %v6413_v33 = vld [vmem:[#allocation41_spill] sm:$0xff]  ;;  %v3562_v3 = vld [vmem:[#allocation3] sm:$0xff] }
 0xb56   :  { %3669 = vmatpush1.msra.mxu0 %v3596_v5  ;;  %3741 = vmatprep.subr.mxu1 %v5717_v35  ;;  %v3559_v10 = vld [vmem:[#allocation3 + $0x78] sm:$0xff]  ;;  %v3629_v5 = vld [vmem:[#allocation3 + $0x200] sm:$0xff] }
 0xb57   :  { %v3200_v52 = vpop.permute.xlu0 %3199  ;;  %v6130_v30 = vpop.permute.xlu1 %3343  ;;  %3742 = vmatpush1.msra.mxu1 %v5715_v23  ;;  %3670 = vmatprep.subr.mxu0 %v5713_v15  ;;  %v3558_v44 = vld [vmem:[#allocation3 + $0xf8] sm:$0xff] }
 0xb58   :  { %v3212_v51 = vsel %vm589_vm13, %v3198_v14, %v3200_v52  ;;  %3671 = vmatpush1.msra.mxu0 %v5711_v26  ;;  %3743 = vmatprep.subr.mxu1 %v6401_v54  ;;  %v3581_v26 = vld [vmem:[#allocation3 + $0x2d8] sm:$0xff]  ;;  %v3639_v54 = vld [vmem:[#allocation3 + $0x270] sm:$0xff] }
 0xb59   :  { %3236 = vst [vmem:[#allocation3 + $0x1f0] sm:$0xf] %v3212_v51  ;;  %3672 = vmatprep.subr.mxu0 %v6402_v63  ;;  %3744 = vmatpush1.msra.mxu1 %v6403_v16  ;;  %v3628_v51 = vld [vmem:[#allocation3 + $0x68] sm:$0xff] }
 0xb5a   :  { %3673 = vmatpush1.msra.mxu0 %v6404_v36 }
 0xb5b   :  { %v2857_v35 = vpop.permute.xlu0 %2856  ;;  %v6140_v45 = vpop.permute.xlu1 %2543 }
 0xb5c   :  { %v2878_v23 = vsel %vm6405_vm3, %v6107_v41, %v2857_v35  ;;  %v2879_v15 = vsel %vm6406_vm11, %v2857_v35, %v2859_v0  ;;  %v3631_v35 = vld [vmem:[#allocation3 + $0x80] sm:$0xff] }
 0xb5d   :  { %3674 = vmatprep.subr.mxu0 %v2879_v15  ;;  %v3630_v15 = vld [vmem:[#allocation3 + $0x140] sm:$0xff] }
 0xb5e   :  { %3675 = vmatpush1.msra.mxu0 %v2878_v23 }
 0xb5f   :  { %v3346_v6 = vpop.permute.xlu0 %3345  ;;  %v3348_v25 = vpop.permute.xlu1 %3347  ;;  %3676 = vmatprep.subr.mxu0 %v3581_v26 }
 0xb60   :  { %v3372_v20 = vsel %vm668_vm1, %v6130_v30, %v3346_v6  ;;  %v3373_v43 = vsel %vm668_vm1, %v3346_v6, %v3348_v25  ;;  %3677 = vmatpush1.msra.mxu0 %v3580_v21 }
 0xb61   :  { %3396 = vst [vmem:[#allocation3 + $0x1a0] sm:$0xf0] %v3372_v20  ;;  %3397 = vst [vmem:[#allocation3 + $0x168] sm:$0xf0] %v3373_v43  ;;  %3678 = vmatprep.subr.mxu0 %v6407_v39 }
 0xb62   :  { %3679 = vmatpush1.msra.mxu0 %v5724_v18  ;;  %v3583_v18 = vld [vmem:[#allocation3 + $0xb0] sm:$0xff] }
 0xb63   :  { %v2861_v41 = vpop.permute.xlu0 %2860  ;;  %v3192_v38 = vpop.permute.xlu1 %3191  ;;  %3680 = vmatprep.subr.mxu0 %v6072_v42 }
 0xb64   :  { %v2880_v62 = vsel %vm6408_vm5, %v2859_v0, %v2861_v41  ;;  %v2881_v61 = vsel %vm6409_vm8, %v2861_v41, %v6096_v59  ;;  %v3209_v12 = vsel %vm589_vm13, %v3192_v38, %v6122_v55  ;;  %3681 = vmatpush1.msra.mxu0 %v6069_v29  ;;  %v3640_v0 = vld [vmem:[#allocation3 + $0x1d0] sm:$0xf] }
 0xb65   :  { %3233 = vst [vmem:[#allocation3 + $0x278] sm:$0xf] %v3209_v12  ;;  %3682 = vmatprep.subr.mxu0 %v5731_v40  ;;  %3745 = vmatprep.subr.mxu1 %v2881_v61  ;;  %v6410_v40 = vld [vmem:[#allocation38_spill] sm:$0xff] }
 0xb66   :  { %3683 = vmatpush1.msra.mxu0 %v5748_v1  ;;  %3746 = vmatpush1.msra.mxu1 %v2880_v62  ;;  %v3561_v1 = vld [vmem:[#allocation3 + $0xe0] sm:$0xff] }
 0xb67   :  { %v2542_v7 = vpop.permute.xlu0 %2541  ;;  %v6159_v42 = vpop.permute.xlu1 %3183  ;;  %3747 = vmatprep.subr.mxu1 %v3583_v18 }
 0xb68   :  { %v2563_v59 = vsel %vm279_vm10, %v6114_v24, %v2542_v7  ;;  %v2564_v55 = vsel %vm279_vm10, %v2542_v7, %v6140_v45  ;;  %3748 = vmatpush1.msra.mxu1 %v3582_v31  ;;  %v3560_v24 = vld [vmem:[#allocation3 + $0x128] sm:$0xff] }
 0xb69   :  { %2587 = vst [vmem:[#allocation3 + $0x160] sm:$0xff] %v2563_v59  ;;  %2588 = vst [vmem:[#allocation3 + $0x170] sm:$0xff] %v2564_v55  ;;  %3684 = vmatprep.subr.mxu0 %v2564_v55  ;;  %3749 = vmatprep.subr.mxu1 %v5709_v22  ;;  %v6411_v22 = vld [vmem:[#allocation40_spill] sm:$0xff] }
 0xb6a   :  { %3685 = vmatpush1.msra.mxu0 %v2563_v59  ;;  %3750 = vmatpush1.msra.mxu1 %v6410_v40 }
 0xb6b   :  { %v3350_v29 = vpop.permute.xlu0 %3349  ;;  %v6167_v48 = vpop.permute.xlu1 %3355  ;;  %3751 = vmatprep.subr.mxu1 %v6082_v28  ;;  %3686 = vmatprep.subr.mxu0 %v3561_v1 }
 0xb6c   :  { %v3374_v14 = vsel %vm668_vm1, %v3348_v25, %v3350_v29  ;;  %3687 = vmatpush1.msra.mxu0 %v3560_v24  ;;  %3752 = vmatpush1.msra.mxu1 %v6079_v2  ;;  %v3622_v25 = vld [vmem:[#allocation3 + $0x168] sm:$0xff] }
 0xb6d   :  { %3398 = vst [vmem:[#allocation3 + $0x1f0] sm:$0xf0] %v3374_v14  ;;  %3688 = vmatprep.subr.mxu0 %v3557_v34  ;;  %3753 = vmatprep.subr.mxu1 %v6411_v22 }
 0xb6e   :  { %3689 = vmatpush1.msra.mxu0 %v3896_v58  ;;  %3754 = vmatpush1.msra.mxu1 %v6412_v49 }
 0xb6f   :  { %v6174_v50 = vpop.permute.xlu1 %3187  ;;  %v2546_v27 = vpop.permute.xlu0 %2545  ;;  %3690 = vmatprep.subr.mxu0 %v5773_v11 }
 0xb70   :  { %v2565_v28 = vsel %vm279_vm10, %v6140_v45, %v2546_v27  ;;  %v2566_v2 = vsel %vm279_vm10, %v2546_v27, %v6100_v9  ;;  %3691 = vmatpush1.msra.mxu0 %v5815_v46 }
 0xb71   :  { %2589 = vst [vmem:[#allocation3 + $0x120] sm:$0xff] %v2565_v28  ;;  %2590 = vst [vmem:[#allocation3 + $0x2a8] sm:$0xff] %v2566_v2  ;;  %3856 = vmatprep.subr.msk.mxu0 %vm73_vm0, %v3641_v13  ;;  %3755 = vmatprep.subr.mxu1 %v2566_v2 }
 0xb72   :  { %3857 = vmatpush2.msk.msra.mxu0 %vm73_vm0, %v3640_v0  ;;  %3756 = vmatpush1.msra.mxu1 %v2565_v28 }
 0xb73   :  { %v3182_v11 = vpop.permute.xlu1 %3181  ;;  %v3342_v57 = vpop.permute.xlu0 %3341  ;;  %3757 = vmatprep.subr.mxu1 %v3563_v37  ;;  %3712 = vmatprep.subr.mxu0 %v6413_v33 }
 0xb74   :  { %v3205_v46 = vsel %vm589_vm13, %v3182_v11, %v6159_v42  ;;  %v3371_v9 = vsel %vm668_vm1, %v3342_v57, %v6130_v30  ;;  %3713 = vmatpush2.msra.mxu0 %v5760_v19  ;;  %3758 = vmatpush1.msra.mxu1 %v3562_v3 }
 0xb75   :  { %3395 = vst [vmem:[#allocation3 + $0x278] sm:$0xf0] %v3371_v9  ;;  %3714 = vmatprep.subr.mxu0 %v6088_v4  ;;  %3759 = vmatprep.subr.mxu1 %v3559_v10  ;;  %v3643_v4 = vld [vmem:[#allocation3 + $0x2d0] sm:$0xf] }
 0xb76   :  { %3715 = vmatpush2.msra.mxu0 %v6085_v60  ;;  %3760 = vmatpush1.msra.mxu1 %v3558_v44  ;;  %v3642_v60 = vld [vmem:[#allocation3 + $0x1c0] sm:$0xf] }
 0xb77   :  { %v3186_v52 = vpop.permute.xlu0 %3185  ;;  %3716 = vmatprep.subr.mxu0 %v3629_v5  ;;  %3761 = vmatprep.subr.mxu1 %v5819_v32  ;;  %v3638_v32 = vld [vmem:[#allocation3 + $0x98] sm:$0xff] }
 0xb78   :  { %v3206_v30 = vsel %vm589_vm13, %v6159_v42, %v3186_v52  ;;  %v3207_v19 = vsel %vm589_vm13, %v3186_v52, %v6174_v50  ;;  %3717 = vmatpush2.msra.mxu0 %v3628_v51  ;;  %3762 = vmatpush1.msra.mxu1 %v5823_v8  ;;  %v3621_v8 = vld [vmem:[#allocation3 + $0x1a0] sm:$0xff] }
 0xb79   :  { %3859 = vmatprep.subr.msk.mxu1 %vm73_vm0, %v3643_v4 }
 0xb7a   :  { %3860 = vmatpush2.msk.msra.mxu1 %vm73_vm0, %v3642_v60 }
 0xb7b   :  { %v3354_v63 = vpop.permute.xlu0 %3353  ;;  %3783 = vmatprep.subr.mxu1 %v3639_v54 }
 0xb7c   :  { %v3375_v16 = vsel %vm668_vm1, %v6120_v56, %v3354_v63  ;;  %v3376_v36 = vsel %vm668_vm1, %v3354_v63, %v6167_v48  ;;  %3784 = vmatpush2.msra.mxu1 %v3638_v32  ;;  %v3620_v23 = vld [vmem:[#allocation3 + $0x278] sm:$0xff] }
 0xb7d   :  { %3718 = vmatprep.subr.mxu0 %v3376_v36  ;;  %3785 = vmatprep.subr.mxu1 %v6094_v17  ;;  %v2197_v17 = vld [vmem:[%s6229_s10] sm:$0xff]  ;;  %s3960_s10 = smov [#allocation9]  }
 0xb7e   :  { %3719 = vmatpush2.msra.mxu0 %v3375_v16  ;;  %3786 = vmatpush2.msra.mxu1 %v6091_v53  ;;  %v3623_v53 = vld [vmem:[#allocation3 + $0x1f0] sm:$0xff]  ;;  %s3811_s30 = sshll.u32 %s3960_s10, 4  ;;  %s3812_s30 = int_to_ptr.vmem [resolvable:$true] %s3811_s30 }
 0xb7f   :  { %v3358_v45 = vpop.permute.xlu0 %3357  ;;  %3720 = vmatprep.subr.mxu0 %v3621_v8  ;;  %3787 = vmatprep.subr.mxu1 %v3631_v35  ;;  %s3917_s14 = scalar_lea.vmem %s3812_s30, 2048  ;;  %p3922_p6 = scmp.lt.s32.totalorder %s3812_s30, %s3812_s30 }
 0xb80   :  { %v3377_v56 = vsel %vm668_vm1, %v6167_v48, %v3358_v45  ;;  %v3378_v26 = vsel %vm668_vm1, %v3358_v45, %v6110_v47  ;;  %3721 = vmatpush2.msra.mxu0 %v3620_v23  ;;  %3788 = vmatpush2.msra.mxu1 %v3630_v15  ;;  %p3918_p5 = scmp.ne.s32.totalorder %s3812_s30, %s3917_s14  ;;  %p3923_p7 = scmp.lt.s32.totalorder %s3917_s14, %s3917_s14 }
 0xb81   :  { %3722 = vmatprep.subr.mxu0 %v3206_v30  ;;  %3789 = vmatprep.subr.mxu1 %v3378_v26 }
 0xb82   :  { %3723 = vmatpush2.msra.mxu0 %v3205_v46  ;;  %3790 = vmatpush2.msra.mxu1 %v3377_v56  ;;  %p3924_p8 = por %p3923_p7, %p3922_p6 }
 0xb83   :  { %v3190_v6 = vpop.permute.xlu0 %3189  ;;  %3791 = vmatprep.subr.mxu1 %v3623_v53  ;;  %3725 = vmatmul.mubr.f32.vlgmr.msra.gmra.mxu0 %v2197_v17 }
 0xb84   :  { %v3208_v21 = vsel %vm589_vm13, %v6174_v50, %v3190_v6  ;;  %3792 = vmatpush2.msra.mxu1 %v3622_v25  ;;  %p3925_p9 = pnand %p3924_p8, %p3918_p5 }
 0xb85   :  { %3793 = vmatprep.subr.mxu1 %v3208_v21 }
 0xb86   :  { %3794 = vmatpush2.msra.mxu1 %v3207_v19 }
 0xb87   :  { %3796 = vmatmul.mubr.f32.vlgmr.msra.gmra.mxu1 %v2197_v17 }
 0xc43   :  { %v3726_v47 = vpop.f32.mrf.mxu0 }
 0xc44   :  { %3802 = vst [vmem:[#allocation9] sm:$0xff] %v3726_v47 }
 0xc45   :  { %v3728_v20 = vpop.f32.mrf.mxu0 }
 0xc46   :  { %3803 = vst [vmem:[#allocation9 + $0x8] sm:$0xff] %v3728_v20 }
 0xc47   :  { %v3797_v43 = vpop.f32.mrf.mxu1 }
 0xc48   :  { %3804 = vst [vmem:[#allocation9 + $0x10] sm:$0xff] %v3797_v43 }
 0xc49   :  { %v3799_v39 = vpop.f32.mrf.mxu1 }
 0xc4a   :  { %3805 = vst [vmem:[#allocation9 + $0x18] sm:$0xff] %v3799_v39 }
 0xc4b   :  { %3928 = shalt.err (!%p3925_p9)
}
 0xc4c   :  { %s3961_s15 = smov 512  }
 0xc4d   :  { %3817 = dma.vmem_to_hbm [thread:$0]  %s3812_s30, 2048, %s6230_s11, [#allocation8], %s3961_s15, %s3961_s15, %s3946_s13  }
 0xc4e   :  { %3939 = dma.done.wait [#allocation8], 2048  }
 0xc4f   :  { %3940 = vsyncadd [#allocation8], 4294965248 }
 0xc50   :  { %3821 = vsyncpa [#allocation7], 1 }
 0xc51   :  { %3822 = vsyncpa [#allocation8], 1 }

</bundles_post_ra>
